<compile_context>
chip_gen: v7x
topology: tpu7x:2x2x1
jax: 0.10.0
libtpu: 0.0.40
codegen_flags: <defaults>
</compile_context>

<pallas_src>
import functools
import math

import jax
import jax.numpy as jnp
from jax.experimental import pallas as pl
from jax.experimental.pallas import tpu as pltpu

BN_EPS = 1e-5


# ----------------------------------------------------------------------------
# Fused BasicBlock Pallas kernel
# ----------------------------------------------------------------------------
def _fused_basic_block_kernel(*refs, taps1, TR, Wo):
    """conv1(3x3,s)+bn1+relu -> VMEM scratch -> conv2(3x3,1)+bn2+res+relu."""
    n_phase = len(refs) - 7
    phase_refs = refs[:n_phase]                    # each (1, Hph, Wph, Cin) bf16
    w1_ref, sh1_ref, w2_ref, sh2_ref = refs[n_phase:n_phase + 4]
    res_ref = refs[n_phase + 4]                    # (1, TR, Wo, Coutp) bf16
    o_ref = refs[-2]                               # (1, TR, Wo, Coutp)
    mid_ref = refs[-1]                             # (TR+2, Wo+2, Cmid) bf16 scratch

    rt = pl.program_id(1)
    o0 = rt * TR                                   # first output row of this tile
    Rm = TR + 2                                    # intermediate rows incl. halo
    cin = phase_refs[0].shape[-1]
    cmid = mid_ref.shape[-1]
    coutp = o_ref.shape[-1]

    # ---- conv1 + bn1 + relu: one big-K matmul over the 9 concatenated taps -
    wins = []
    for (p, dr, dc) in taps1:
        wins.append(phase_refs[p][0, pl.ds(o0 + dr, Rm), dc:dc + Wo, :])
    patches1 = jnp.concatenate(wins, axis=-1).reshape(Rm * Wo, 9 * cin)
    mid = jnp.dot(patches1, w1_ref[...], preferred_element_type=jnp.float32)
    mid = jnp.maximum(mid + sh1_ref[...], 0.0)

    # Store into the zero-bordered scratch (cols 0 and Wo+1 are conv2's
    # 'same' padding; they are re-zeroed every step since scratch persists).
    zcol = jnp.zeros((Rm, 1, cmid), mid_ref.dtype)
    mid_ref[:, 0:1, :] = zcol
    mid_ref[:, Wo + 1:Wo + 2, :] = zcol
    mid_ref[:, 1:Wo + 1, :] = mid.reshape(Rm, Wo, cmid).astype(mid_ref.dtype)

    # Halo rows that fall outside the image are conv2 zero-padding, not data.
    @pl.when(rt == 0)
    def _():
        mid_ref[0:1, :, :] = jnp.zeros((1, Wo + 2, cmid), mid_ref.dtype)

    @pl.when(rt == pl.num_programs(1) - 1)
    def _():
        mid_ref[Rm - 1:Rm, :, :] = jnp.zeros((1, Wo + 2, cmid), mid_ref.dtype)

    # ---- conv2 + bn2 + residual + relu: second big-K matmul ----------------
    wins2 = []
    for di in range(3):
        for dj in range(3):
            wins2.append(mid_ref[di:di + TR, dj:dj + Wo, :])
    patches2 = jnp.concatenate(wins2, axis=-1).reshape(TR * Wo, 9 * cmid)
    acc = jnp.dot(patches2, w2_ref[...], preferred_element_type=jnp.float32)
    acc = acc + sh2_ref[...]
    acc = acc + res_ref[0].reshape(TR * Wo, coutp).astype(jnp.float32)
    acc = jnp.maximum(acc, 0.0)
    o_ref[0] = acc.reshape(TR, Wo, coutp).astype(o_ref.dtype)


# ----------------------------------------------------------------------------
# Wrapper
# ----------------------------------------------------------------------------
def _fold_bn(p):
    """Fold inference-mode BN into conv weight (scale) + per-channel shift."""
    kh, kw, cin, cout = p['w'].shape
    scale = p['gamma'] * jax.lax.rsqrt(p['var'] + BN_EPS)
    shift = (p['beta'] - p['mean'] * scale).astype(jnp.float32).reshape(1, cout)
    w = (p['w'] * scale).reshape(kh * kw * cin, cout).astype(jnp.bfloat16)
    return w, shift


def _round_up(v, m):
    return (v + m - 1) // m * m


def _pick_row_tile(ho, target):
    t = max(1, min(target, ho))
    while ho % t:
        t -= 1
    return t


def basic_block_forward(p, x, stride=1, residual=None, *, row_tile=8,
                        out_dtype=jnp.float32):
    """BasicBlock.forward in NHWC: conv1-bn1-relu-conv2-bn2-(+res)-relu."""
    if residual is None:
        residual = x
    N, H, W, Cin = x.shape
    Cmid = p['conv1']['w'].shape[-1]
    Cout = p['conv2']['w'].shape[-1]
    s = stride
    Ho = (H + 2 - 3) // s + 1
    Wo = (W + 2 - 3) // s + 1
    assert residual.shape == (N, Ho, Wo, Cout), (residual.shape,
                                                 (N, Ho, Wo, Cout))

    w1, sh1 = _fold_bn(p['conv1'])                 # (9*Cin, Cmid), (1, Cmid)
    w2, sh2 = _fold_bn(p['conv2'])                 # (9*Cmid, Cout), (1, Cout)

    # Lane-dense output slab: pad Cout up to a multiple of 128 (no-op for
    # planes >= 128); wrapper slices the pad back off below.
    Coutp = _round_up(Cout, 128)
    if Coutp != Cout:
        w2 = jnp.pad(w2, ((0, 0), (0, Coutp - Cout)))
        sh2 = jnp.pad(sh2, ((0, 0), (0, Coutp - Cout)))
    res = residual.astype(jnp.bfloat16)
    if Coutp != Cout:
        res = jnp.pad(res, ((0, 0), (0, 0), (0, 0), (0, Coutp - Cout)))

    # Spatial zero-pad sized exactly so conv1 can also produce the 1-row halo
    # conv2 needs, then s*s phase split (a partition, not a duplication) so
    # every conv1 tap becomes a stride-1 window read inside the kernel.
    pad_top, pad_bot = s + 1, s * Ho + 2 - H
    pad_l, pad_r = 1, max(0, s * (Wo - 1) + 2 - W)
    xp = jnp.pad(x.astype(jnp.bfloat16),
                 ((0, 0), (pad_top, pad_bot), (pad_l, pad_r), (0, 0)))
    phases = [xp[:, a::s, b::s, :] for a in range(s) for b in range(s)]
    taps1 = tuple(((di % s) * s + (dj % s), di // s, dj // s)
                  for di in range(3) for dj in range(3))

    TR = _pick_row_tile(Ho, row_tile)
    n_rt = Ho // TR

    in_specs, args = [], []
    for ph in phases:
        _, ph_h, ph_w, _ = ph.shape
        in_specs.append(pl.BlockSpec((1, ph_h, ph_w, Cin),
                                     lambda n, r: (n, 0, 0, 0)))
        args.append(ph)
    in_specs += [pl.BlockSpec((9 * Cin, Cmid), lambda n, r: (0, 0)),
                 pl.BlockSpec((1, Cmid), lambda n, r: (0, 0)),
                 pl.BlockSpec((9 * Cmid, Coutp), lambda n, r: (0, 0)),
                 pl.BlockSpec((1, Coutp), lambda n, r: (0, 0)),
                 pl.BlockSpec((1, TR, Wo, Coutp), lambda n, r: (n, r, 0, 0))]
    args += [w1, sh1, w2, sh2, res]

    kernel = functools.partial(_fused_basic_block_kernel, taps1=taps1,
                               TR=TR, Wo=Wo)
    out = pl.pallas_call(
        kernel,
        out_shape=jax.ShapeDtypeStruct((N, Ho, Wo, Coutp), out_dtype),
        grid=(N, n_rt),
        in_specs=in_specs,
        out_specs=pl.BlockSpec((1, TR, Wo, Coutp), lambda n, r: (n, r, 0, 0)),
        scratch_shapes=[pltpu.VMEM((TR + 2, Wo + 2, Cmid), jnp.bfloat16)],
        compiler_params=pltpu.CompilerParams(
            dimension_semantics=("parallel", "parallel"),
            vmem_limit_bytes=48 * 1024 * 1024),
    )(*args)
    return out[..., :Cout] if Coutp != Cout else out


def basic_block_forward_nchw(p, x_nchw, stride=1, residual_nchw=None, **kw):
    x = jnp.transpose(x_nchw, (0, 2, 3, 1))                   # NCHW -> NHWC
    r = (None if residual_nchw is None
         else jnp.transpose(residual_nchw, (0, 2, 3, 1)))
    return jnp.transpose(basic_block_forward(p, x, stride, r, **kw),
                         (0, 3, 1, 2))


# ----------------------------------------------------------------------------
# Deterministic params + pure-JAX reference (for correctness checking)
# ----------------------------------------------------------------------------
class KeyGen:
    def __init__(self, key):
        self._key = key

    def __call__(self):
        self._key, sub = jax.random.split(self._key)
        return sub


def init_conv_bn(kg, cin, cout, k=3):
    fan_in = k * k * cin
    return {
        'w': jax.random.normal(kg(), (k, k, cin, cout), jnp.float32) / math.sqrt(fan_in),
        'gamma': 1.0 + 0.1 * jax.random.normal(kg(), (cout,), jnp.float32),
        'beta': 0.1 * jax.random.normal(kg(), (cout,), jnp.float32),
        'mean': 0.1 * jax.random.normal(kg(), (cout,), jnp.float32),
        'var': jax.random.uniform(kg(), (cout,), jnp.float32, minval=0.5, maxval=1.5),
    }


def init_basic_block(kg, inplanes, planes):
    return {'conv1': init_conv_bn(kg, inplanes, planes, 3),
            'conv2': init_conv_bn(kg, planes, planes, 3)}


def _conv_bn_act_ref(x, p, stride, relu, residual):
    scale = p['gamma'] * jax.lax.rsqrt(p['var'] + BN_EPS)
    shift = p['beta'] - p['mean'] * scale
    wf = (p['w'] * scale).astype(jnp.bfloat16)
    y = jax.lax.conv_general_dilated(
        x.astype(jnp.bfloat16), wf, (stride, stride), ((1, 1), (1, 1)),
        dimension_numbers=('NHWC', 'HWIO', 'NHWC'),
        preferred_element_type=jnp.float32)
    y = y + shift
    if residual is not None:
        y = y + residual.astype(jnp.float32)
    if relu:
        y = jnp.maximum(y, 0.0)
    return y


def basic_block_ref(p, x, stride=1, residual=None):
    if residual is None:
        residual = x
    out = _conv_bn_act_ref(x, p['conv1'], stride, True, None)
    out = _conv_bn_act_ref(out, p['conv2'], 1, True, residual)
    return out


# ----------------------------------------------------------------------------
if __name__ == "__main__":
    kg = KeyGen(jax.random.PRNGKey(0))

    N, inplanes, planes, H, W = 2, 32, 32, 16, 16
    params = init_basic_block(kg, inplanes, planes)
    x = jax.random.normal(kg(), (N, inplanes, H, W), jnp.float32)   # NCHW like PyTorch
    x_nhwc = jnp.transpose(x, (0, 2, 3, 1))

    # --- stride=1, residual defaults to x; row_tile=8 -> 2 row tiles --------
    fwd = jax.jit(lambda inp: basic_block_forward_nchw(params, inp, stride=1,
                                                       row_tile=8))
    out = jax.block_until_ready(fwd(x))
    assert out.shape == (N, planes, H, W), out.shape
    assert bool(jnp.all(jnp.isfinite(out)))
    ref = jnp.transpose(basic_block_ref(params, x_nhwc, 1, None), (0, 3, 1, 2))
    err = float(jnp.max(jnp.abs(out - ref)))
    assert err < 5e-2, f"stride-1 mismatch vs reference: {err}"

    # --- stride=2 with an explicit residual (as DLA's Tree provides) --------
    params2 = init_basic_block(kg, inplanes, planes)
    res = jax.random.normal(kg(), (N, planes, H // 2, W // 2), jnp.float32)
    fwd2 = jax.jit(lambda inp, r: basic_block_forward_nchw(params2, inp, 2, r,
                                                           row_tile=4))
    out2 = jax.block_until_ready(fwd2(x, res))
    assert out2.shape == (N, planes, H // 2, W // 2), out2.shape
    assert bool(jnp.all(jnp.isfinite(out2)))
    ref2 = jnp.transpose(
        basic_block_ref(params2, x_nhwc, 2, jnp.transpose(res, (0, 2, 3, 1))),
        (0, 3, 1, 2))
    err2 = float(jnp.max(jnp.abs(out2 - ref2)))
    assert err2 < 5e-2, f"stride-2 mismatch vs reference: {err2}"

    print("KERNEL_OK")
</pallas_src>

<mosaic_0001>
module attributes {stable_mosaic.version = 11 : i64} {
  func.func @_fused_basic_block_kernel(%arg0: i32, %arg1: i32, %arg2: memref<1x20x18x32xbf16, #tpu.memory_space<vmem>>, %arg3: memref<288x32xbf16, #tpu.memory_space<vmem>>, %arg4: memref<1x32xf32, #tpu.memory_space<vmem>>, %arg5: memref<288x128xbf16, #tpu.memory_space<vmem>>, %arg6: memref<1x128xf32, #tpu.memory_space<vmem>>, %arg7: memref<1x8x16x128xbf16, #tpu.memory_space<vmem>>, %arg8: memref<1x8x16x128xf32, #tpu.memory_space<vmem>>, %arg9: memref<10x18x32xbf16, #tpu.memory_space<vmem>>) attributes {dimension_semantics = [#tpu.dimension_semantics<parallel>, #tpu.dimension_semantics<parallel>], iteration_bounds = array<i64: 2, 2>, scalar_prefetch = 0 : i64, scratch_operands = 1 : i64, tpu.core_type = #tpu.core_type<tc>, window_params = [{transform_indices = @transform_0, window_bounds = array<i64: 1, 20, 18, 32>}, {pipeline_mode = #tpu.pipeline_mode<synchronous>, transform_indices = @transform_1, window_bounds = array<i64: 288, 32>}, {pipeline_mode = #tpu.pipeline_mode<synchronous>, transform_indices = @transform_2, window_bounds = array<i64: 1, 32>}, {pipeline_mode = #tpu.pipeline_mode<synchronous>, transform_indices = @transform_3, window_bounds = array<i64: 288, 128>}, {pipeline_mode = #tpu.pipeline_mode<synchronous>, transform_indices = @transform_4, window_bounds = array<i64: 1, 128>}, {transform_indices = @transform_5, window_bounds = array<i64: 1, 8, 16, 128>}, {transform_indices = @transform_6, window_bounds = array<i64: 1, 8, 16, 128>}]} {
    %c8_i32 = arith.constant 8 : i32
    %0 = arith.muli %arg1, %c8_i32 : i32
    %c0_i32 = arith.constant 0 : i32
    %1 = arith.addi %0, %c0_i32 : i32
    %c0 = arith.constant 0 : index
    %2 = arith.index_cast %1 : i32 to index
    %c0_0 = arith.constant 0 : index
    %c0_1 = arith.constant 0 : index
    %3 = vector.load %arg2[%c0, %2, %c0_0, %c0_1] : memref<1x20x18x32xbf16, #tpu.memory_space<vmem>>, vector<1x10x16x32xbf16>
    %4 = vector.shape_cast %3 : vector<1x10x16x32xbf16> to vector<10x16x32xbf16>
    %c0_i32_2 = arith.constant 0 : i32
    %5 = arith.addi %0, %c0_i32_2 : i32
    %c0_3 = arith.constant 0 : index
    %6 = arith.index_cast %5 : i32 to index
    %c1 = arith.constant 1 : index
    %c0_4 = arith.constant 0 : index
    %7 = vector.load %arg2[%c0_3, %6, %c1, %c0_4] : memref<1x20x18x32xbf16, #tpu.memory_space<vmem>>, vector<1x10x16x32xbf16>
    %8 = vector.shape_cast %7 : vector<1x10x16x32xbf16> to vector<10x16x32xbf16>
    %c0_i32_5 = arith.constant 0 : i32
    %9 = arith.addi %0, %c0_i32_5 : i32
    %c0_6 = arith.constant 0 : index
    %10 = arith.index_cast %9 : i32 to index
    %c2 = arith.constant 2 : index
    %c0_7 = arith.constant 0 : index
    %11 = vector.load %arg2[%c0_6, %10, %c2, %c0_7] : memref<1x20x18x32xbf16, #tpu.memory_space<vmem>>, vector<1x10x16x32xbf16>
    %12 = vector.shape_cast %11 : vector<1x10x16x32xbf16> to vector<10x16x32xbf16>
    %c1_i32 = arith.constant 1 : i32
    %13 = arith.addi %0, %c1_i32 : i32
    %c0_8 = arith.constant 0 : index
    %14 = arith.index_cast %13 : i32 to index
    %c0_9 = arith.constant 0 : index
    %c0_10 = arith.constant 0 : index
    %15 = vector.load %arg2[%c0_8, %14, %c0_9, %c0_10] : memref<1x20x18x32xbf16, #tpu.memory_space<vmem>>, vector<1x10x16x32xbf16>
    %16 = vector.shape_cast %15 : vector<1x10x16x32xbf16> to vector<10x16x32xbf16>
    %c1_i32_11 = arith.constant 1 : i32
    %17 = arith.addi %0, %c1_i32_11 : i32
    %c0_12 = arith.constant 0 : index
    %18 = arith.index_cast %17 : i32 to index
    %c1_13 = arith.constant 1 : index
    %c0_14 = arith.constant 0 : index
    %19 = vector.load %arg2[%c0_12, %18, %c1_13, %c0_14] : memref<1x20x18x32xbf16, #tpu.memory_space<vmem>>, vector<1x10x16x32xbf16>
    %20 = vector.shape_cast %19 : vector<1x10x16x32xbf16> to vector<10x16x32xbf16>
    %c1_i32_15 = arith.constant 1 : i32
    %21 = arith.addi %0, %c1_i32_15 : i32
    %c0_16 = arith.constant 0 : index
    %22 = arith.index_cast %21 : i32 to index
    %c2_17 = arith.constant 2 : index
    %c0_18 = arith.constant 0 : index
    %23 = vector.load %arg2[%c0_16, %22, %c2_17, %c0_18] : memref<1x20x18x32xbf16, #tpu.memory_space<vmem>>, vector<1x10x16x32xbf16>
    %24 = vector.shape_cast %23 : vector<1x10x16x32xbf16> to vector<10x16x32xbf16>
    %c2_i32 = arith.constant 2 : i32
    %25 = arith.addi %0, %c2_i32 : i32
    %c0_19 = arith.constant 0 : index
    %26 = arith.index_cast %25 : i32 to index
    %c0_20 = arith.constant 0 : index
    %c0_21 = arith.constant 0 : index
    %27 = vector.load %arg2[%c0_19, %26, %c0_20, %c0_21] : memref<1x20x18x32xbf16, #tpu.memory_space<vmem>>, vector<1x10x16x32xbf16>
    %28 = vector.shape_cast %27 : vector<1x10x16x32xbf16> to vector<10x16x32xbf16>
    %c2_i32_22 = arith.constant 2 : i32
    %29 = arith.addi %0, %c2_i32_22 : i32
    %c0_23 = arith.constant 0 : index
    %30 = arith.index_cast %29 : i32 to index
    %c1_24 = arith.constant 1 : index
    %c0_25 = arith.constant 0 : index
    %31 = vector.load %arg2[%c0_23, %30, %c1_24, %c0_25] : memref<1x20x18x32xbf16, #tpu.memory_space<vmem>>, vector<1x10x16x32xbf16>
    %32 = vector.shape_cast %31 : vector<1x10x16x32xbf16> to vector<10x16x32xbf16>
    %c2_i32_26 = arith.constant 2 : i32
    %33 = arith.addi %0, %c2_i32_26 : i32
    %c0_27 = arith.constant 0 : index
    %34 = arith.index_cast %33 : i32 to index
    %c2_28 = arith.constant 2 : index
    %c0_29 = arith.constant 0 : index
    %35 = vector.load %arg2[%c0_27, %34, %c2_28, %c0_29] : memref<1x20x18x32xbf16, #tpu.memory_space<vmem>>, vector<1x10x16x32xbf16>
    %36 = vector.shape_cast %35 : vector<1x10x16x32xbf16> to vector<10x16x32xbf16>
    %37 = tpu.concatenate %4, %8, %12, %16, %20, %24, %28, %32, %36 in 2 : vector<10x16x32xbf16>, vector<10x16x32xbf16>, vector<10x16x32xbf16>, vector<10x16x32xbf16>, vector<10x16x32xbf16>, vector<10x16x32xbf16>, vector<10x16x32xbf16>, vector<10x16x32xbf16>, vector<10x16x32xbf16> -> vector<10x16x288xbf16>
    %38 = vector.shape_cast %37 : vector<10x16x288xbf16> to vector<160x288xbf16>
    %c0_30 = arith.constant 0 : index
    %c0_31 = arith.constant 0 : index
    %39 = vector.load %arg3[%c0_30, %c0_31] : memref<288x32xbf16, #tpu.memory_space<vmem>>, vector<288x32xbf16>
    %cst = arith.constant dense<0.000000e+00> : vector<160x32xf32>
    %40 = tpu.matmul %38, %39, %cst {dimension_numbers = #tpu.dot_dimension_numbers<[1], [0], [0], [1], [0, 0, 1, 1], [], []>} : vector<160x288xbf16>, vector<288x32xbf16>, vector<160x32xf32> -> vector<160x32xf32>
    %c0_32 = arith.constant 0 : index
    %c0_33 = arith.constant 0 : index
    %41 = vector.load %arg4[%c0_32, %c0_33] : memref<1x32xf32, #tpu.memory_space<vmem>>, vector<1x32xf32>
    %42 = vector.broadcast %41 : vector<1x32xf32> to vector<160x32xf32>
    %43 = arith.addf %40, %42 : vector<160x32xf32>
    %cst_34 = arith.constant 0.000000e+00 : f32
    %44 = vector.broadcast %cst_34 : f32 to vector<160x32xf32>
    %45 = arith.maximumf %43, %44 : vector<160x32xf32>
    %cst_35 = arith.constant 0.000000e+00 : bf16
    %46 = vector.broadcast %cst_35 : bf16 to vector<10x1x32xbf16>
    %c0_36 = arith.constant 0 : index
    %c0_37 = arith.constant 0 : index
    %c0_38 = arith.constant 0 : index
    %47 = vector.load %arg9[%c0_36, %c0_37, %c0_38] : memref<10x18x32xbf16, #tpu.memory_space<vmem>>, vector<10x1x32xbf16>
    tpu.vector_store %arg9[%c0_36, %c0_37, %c0_38], %46 {strides = array<i32>} : memref<10x18x32xbf16, #tpu.memory_space<vmem>>, vector<10x1x32xbf16>,
    %c0_39 = arith.constant 0 : index
    %c17 = arith.constant 17 : index
    %c0_40 = arith.constant 0 : index
    %48 = vector.load %arg9[%c0_39, %c17, %c0_40] : memref<10x18x32xbf16, #tpu.memory_space<vmem>>, vector<10x1x32xbf16>
    tpu.vector_store %arg9[%c0_39, %c17, %c0_40], %46 {strides = array<i32>} : memref<10x18x32xbf16, #tpu.memory_space<vmem>>, vector<10x1x32xbf16>,
    %49 = vector.shape_cast %45 : vector<160x32xf32> to vector<10x16x32xf32>
    %50 = arith.truncf %49 : vector<10x16x32xf32> to vector<10x16x32xbf16>
    %c0_41 = arith.constant 0 : index
    %c1_42 = arith.constant 1 : index
    %c0_43 = arith.constant 0 : index
    %51 = vector.load %arg9[%c0_41, %c1_42, %c0_43] : memref<10x18x32xbf16, #tpu.memory_space<vmem>>, vector<10x16x32xbf16>
    tpu.vector_store %arg9[%c0_41, %c1_42, %c0_43], %50 {strides = array<i32>} : memref<10x18x32xbf16, #tpu.memory_space<vmem>>, vector<10x16x32xbf16>,
    %c0_i32_44 = arith.constant 0 : i32
    %52 = arith.cmpi eq, %arg1, %c0_i32_44 : i32
    %53 = arith.extui %52 : i1 to i32
    %c0_i32_45 = arith.constant 0 : i32
    %54 = arith.cmpi ne, %53, %c0_i32_45 : i32
    scf.if %54 {
      %cst_89 = arith.constant 0.000000e+00 : bf16
      %85 = vector.broadcast %cst_89 : bf16 to vector<1x18x32xbf16>
      %c0_90 = arith.constant 0 : index
      %c0_91 = arith.constant 0 : index
      %c0_92 = arith.constant 0 : index
      %86 = vector.load %arg9[%c0_90, %c0_91, %c0_92] : memref<10x18x32xbf16, #tpu.memory_space<vmem>>, vector<1x18x32xbf16>
      tpu.vector_store %arg9[%c0_90, %c0_91, %c0_92], %85 {strides = array<i32>} : memref<10x18x32xbf16, #tpu.memory_space<vmem>>, vector<1x18x32xbf16>,
    } else {
    }
    %c1_i32_46 = arith.constant 1 : i32
    %55 = arith.cmpi eq, %arg1, %c1_i32_46 : i32
    %56 = arith.extui %55 : i1 to i32
    %c0_i32_47 = arith.constant 0 : i32
    %57 = arith.cmpi ne, %56, %c0_i32_47 : i32
    scf.if %57 {
      %cst_89 = arith.constant 0.000000e+00 : bf16
      %85 = vector.broadcast %cst_89 : bf16 to vector<1x18x32xbf16>
      %c9 = arith.constant 9 : index
      %c0_90 = arith.constant 0 : index
      %c0_91 = arith.constant 0 : index
      %86 = vector.load %arg9[%c9, %c0_90, %c0_91] : memref<10x18x32xbf16, #tpu.memory_space<vmem>>, vector<1x18x32xbf16>
      tpu.vector_store %arg9[%c9, %c0_90, %c0_91], %85 {strides = array<i32>} : memref<10x18x32xbf16, #tpu.memory_space<vmem>>, vector<1x18x32xbf16>,
    } else {
    }
    %c0_48 = arith.constant 0 : index
    %c0_49 = arith.constant 0 : index
    %c0_50 = arith.constant 0 : index
    %58 = vector.load %arg9[%c0_48, %c0_49, %c0_50] : memref<10x18x32xbf16, #tpu.memory_space<vmem>>, vector<8x16x32xbf16>
    %c0_51 = arith.constant 0 : index
    %c1_52 = arith.constant 1 : index
    %c0_53 = arith.constant 0 : index
    %59 = vector.load %arg9[%c0_51, %c1_52, %c0_53] : memref<10x18x32xbf16, #tpu.memory_space<vmem>>, vector<8x16x32xbf16>
    %c0_54 = arith.constant 0 : index
    %c2_55 = arith.constant 2 : index
    %c0_56 = arith.constant 0 : index
    %60 = vector.load %arg9[%c0_54, %c2_55, %c0_56] : memref<10x18x32xbf16, #tpu.memory_space<vmem>>, vector<8x16x32xbf16>
    %c1_57 = arith.constant 1 : index
    %c0_58 = arith.constant 0 : index
    %c0_59 = arith.constant 0 : index
    %61 = vector.load %arg9[%c1_57, %c0_58, %c0_59] : memref<10x18x32xbf16, #tpu.memory_space<vmem>>, vector<8x16x32xbf16>
    %c1_60 = arith.constant 1 : index
    %c1_61 = arith.constant 1 : index
    %c0_62 = arith.constant 0 : index
    %62 = vector.load %arg9[%c1_60, %c1_61, %c0_62] : memref<10x18x32xbf16, #tpu.memory_space<vmem>>, vector<8x16x32xbf16>
    %c1_63 = arith.constant 1 : index
    %c2_64 = arith.constant 2 : index
    %c0_65 = arith.constant 0 : index
    %63 = vector.load %arg9[%c1_63, %c2_64, %c0_65] : memref<10x18x32xbf16, #tpu.memory_space<vmem>>, vector<8x16x32xbf16>
    %c2_66 = arith.constant 2 : index
    %c0_67 = arith.constant 0 : index
    %c0_68 = arith.constant 0 : index
    %64 = vector.load %arg9[%c2_66, %c0_67, %c0_68] : memref<10x18x32xbf16, #tpu.memory_space<vmem>>, vector<8x16x32xbf16>
    %c2_69 = arith.constant 2 : index
    %c1_70 = arith.constant 1 : index
    %c0_71 = arith.constant 0 : index
    %65 = vector.load %arg9[%c2_69, %c1_70, %c0_71] : memref<10x18x32xbf16, #tpu.memory_space<vmem>>, vector<8x16x32xbf16>
    %c2_72 = arith.constant 2 : index
    %c2_73 = arith.constant 2 : index
    %c0_74 = arith.constant 0 : index
    %66 = vector.load %arg9[%c2_72, %c2_73, %c0_74] : memref<10x18x32xbf16, #tpu.memory_space<vmem>>, vector<8x16x32xbf16>
    %67 = tpu.concatenate %58, %59, %60, %61, %62, %63, %64, %65, %66 in 2 : vector<8x16x32xbf16>, vector<8x16x32xbf16>, vector<8x16x32xbf16>, vector<8x16x32xbf16>, vector<8x16x32xbf16>, vector<8x16x32xbf16>, vector<8x16x32xbf16>, vector<8x16x32xbf16>, vector<8x16x32xbf16> -> vector<8x16x288xbf16>
    %68 = vector.shape_cast %67 : vector<8x16x288xbf16> to vector<128x288xbf16>
    %c0_75 = arith.constant 0 : index
    %c0_76 = arith.constant 0 : index
    %69 = vector.load %arg5[%c0_75, %c0_76] : memref<288x128xbf16, #tpu.memory_space<vmem>>, vector<288x128xbf16>
    %cst_77 = arith.constant dense<0.000000e+00> : vector<128x128xf32>
    %70 = tpu.matmul %68, %69, %cst_77 {dimension_numbers = #tpu.dot_dimension_numbers<[1], [0], [0], [1], [0, 0, 1, 1], [], []>} : vector<128x288xbf16>, vector<288x128xbf16>, vector<128x128xf32> -> vector<128x128xf32>
    %c0_78 = arith.constant 0 : index
    %c0_79 = arith.constant 0 : index
    %71 = vector.load %arg6[%c0_78, %c0_79] : memref<1x128xf32, #tpu.memory_space<vmem>>, vector<1x128xf32>
    %72 = vector.broadcast %71 : vector<1x128xf32> to vector<128x128xf32>
    %73 = arith.addf %70, %72 : vector<128x128xf32>
    %c0_80 = arith.constant 0 : index
    %c0_81 = arith.constant 0 : index
    %c0_82 = arith.constant 0 : index
    %c0_83 = arith.constant 0 : index
    %74 = vector.load %arg7[%c0_80, %c0_81, %c0_82, %c0_83] : memref<1x8x16x128xbf16, #tpu.memory_space<vmem>>, vector<1x8x16x128xbf16>
    %75 = vector.shape_cast %74 : vector<1x8x16x128xbf16> to vector<8x16x128xbf16>
    %76 = vector.shape_cast %75 : vector<8x16x128xbf16> to vector<128x128xbf16>
    %77 = arith.extf %76 : vector<128x128xbf16> to vector<128x128xf32>
    %78 = arith.addf %73, %77 : vector<128x128xf32>
    %cst_84 = arith.constant 0.000000e+00 : f32
    %79 = vector.broadcast %cst_84 : f32 to vector<128x128xf32>
    %80 = arith.maximumf %78, %79 : vector<128x128xf32>
    %81 = vector.shape_cast %80 : vector<128x128xf32> to vector<8x16x128xf32>
    %c0_85 = arith.constant 0 : index
    %c0_86 = arith.constant 0 : index
    %c0_87 = arith.constant 0 : index
    %c0_88 = arith.constant 0 : index
    %82 = vector.load %arg8[%c0_85, %c0_86, %c0_87, %c0_88] : memref<1x8x16x128xf32, #tpu.memory_space<vmem>>, vector<1x8x16x128xf32>
    %83 = vector.shape_cast %82 : vector<1x8x16x128xf32> to vector<8x16x128xf32>
    %84 = vector.shape_cast %81 : vector<8x16x128xf32> to vector<1x8x16x128xf32>
    tpu.vector_store %arg8[%c0_85, %c0_86, %c0_87, %c0_88], %84 {strides = array<i32>} : memref<1x8x16x128xf32, #tpu.memory_space<vmem>>, vector<1x8x16x128xf32>,
    return
  }
  func.func @transform_0(%arg0: i32, %arg1: i32) -> (i32, i32, i32, i32) {
    %c0_i32 = arith.constant 0 : i32
    %c0_i32_0 = arith.constant 0 : i32
    %c0_i32_1 = arith.constant 0 : i32
    %c0_i32_2 = arith.constant 0 : i32
    return %arg0, %c0_i32, %c0_i32_0, %c0_i32_1 : i32, i32, i32, i32
  }
  func.func @transform_1(%arg0: i32, %arg1: i32) -> (i32, i32) {
    %c0_i32 = arith.constant 0 : i32
    %c0_i32_0 = arith.constant 0 : i32
    %c0_i32_1 = arith.constant 0 : i32
    return %c0_i32, %c0_i32_0 : i32, i32
  }
  func.func @transform_2(%arg0: i32, %arg1: i32) -> (i32, i32) {
    %c0_i32 = arith.constant 0 : i32
    %c0_i32_0 = arith.constant 0 : i32
    %c0_i32_1 = arith.constant 0 : i32
    return %c0_i32, %c0_i32_0 : i32, i32
  }
  func.func @transform_3(%arg0: i32, %arg1: i32) -> (i32, i32) {
    %c0_i32 = arith.constant 0 : i32
    %c0_i32_0 = arith.constant 0 : i32
    %c0_i32_1 = arith.constant 0 : i32
    return %c0_i32, %c0_i32_0 : i32, i32
  }
  func.func @transform_4(%arg0: i32, %arg1: i32) -> (i32, i32) {
    %c0_i32 = arith.constant 0 : i32
    %c0_i32_0 = arith.constant 0 : i32
    %c0_i32_1 = arith.constant 0 : i32
    return %c0_i32, %c0_i32_0 : i32, i32
  }
  func.func @transform_5(%arg0: i32, %arg1: i32) -> (i32, i32, i32, i32) {
    %c0_i32 = arith.constant 0 : i32
    %c0_i32_0 = arith.constant 0 : i32
    %c0_i32_1 = arith.constant 0 : i32
    return %arg0, %arg1, %c0_i32, %c0_i32_0 : i32, i32, i32, i32
  }
  func.func @transform_6(%arg0: i32, %arg1: i32) -> (i32, i32, i32, i32) {
    %c0_i32 = arith.constant 0 : i32
    %c0_i32_0 = arith.constant 0 : i32
    %c0_i32_1 = arith.constant 0 : i32
    return %arg0, %arg1, %c0_i32, %c0_i32_0 : i32, i32, i32, i32
  }
}

</mosaic_0001>

<bundles_post_ra>
// kernel: _lambda_.1
= control target key start
LH: loop header
LB: loop body
LE: loop exit
PB: predicated region body
PF: predicated region fallthrough
CT: control target
= control target key end

     0   :  { %s4794_s21 = smov 0   ;;  %s4796_s22 = smov 0   ;;  %s6473_s0 = inlined_call_operand.vmem [shape: bf16[2,20,18,32], index: 0, kind: input, shape index: {}]   ;;  %s6474_s1 = inlined_call_operand.vmem [shape: bf16[288,32], index: 1, kind: input, shape index: {}]   ;;  %s6475_s2 = inlined_call_operand.vmem [shape: f32[1,32], index: 2, kind: input, shape index: {}]   ;;  %s6476_s3 = inlined_call_operand.vmem [shape: bf16[288,128], index: 3, kind: input, shape index: {}]   ;;  %s6477_s4 = inlined_call_operand.vmem [shape: f32[1,128], index: 4, kind: input, shape index: {}]   ;;  %s6478_s5 = inlined_call_operand.vmem [shape: bf16[2,16,16,128], index: 5, kind: input, shape index: {}]   ;;  %s6479_s6 = inlined_call_operand.vmem [shape: f32[2,16,16,128], index: 6, kind: output, shape index: {}]  }
   0x1   :  { %s4798_s23 = smov 0   ;;  %s4800_s24 = smov 0  }
   0x2   :  { %s4802_s25 = smov 0  }
   0x3 LB: > { %s25_s26 = sadd.s32 1, %s4744_s23  ;;  %s28_s27 = sadd.s32 1, %s4748_s24  ;;  %s4752_s25 = sphi %s4802_s25, %s16_s25   ;;  %s4748_s24 = sphi %s4800_s24, %s6571_s24   ;;  %s4744_s23 = sphi %s4798_s23, %s6570_s23   ;;  %s4740_s22 = sphi %s4796_s22, %s6569_s22   ;;  %s4736_s21 = sphi %s4794_s21, %s6568_s21  }
   0x4   : > { %p26_p0 = scmp.ge.s32.totalorder %s25_s26, 2  ;;  %p3860_p1 = scmp.ge.s32.totalorder %s4752_s25, 1 }
   0x5   : > { %p244_p2 = scmp.lt.s32.totalorder %s4752_s25, 5 }
   0x6   : > { %s6573_s26 = smov (%p26_p0, %s25_s26), 0  ;;  %s6575_s27 = smov (!%p26_p0, %s28_s27), %s4748_s24 }
   0x7   : > { %p245_p3 = pnand %p3860_p1, %p244_p2  ;;  %p30_p4 = scmp.ge.s32.totalorder %s6575_s27, 2 }
   0x9   : > { %s6577_s27 = smov (%p30_p4, %s6575_s27), 0  ;;  %248 = sbr.rel (%p245_p3) target bundleno = 962 (0x3c2), region = 44 }
   0xa   : > { %6499 = sst [smem:[#allocation3_spill]] %s6577_s27 }
  0x10   : > { %p289_p5 = scmp.lt.s32.totalorder %s4740_s22, 1  ;;  %s3862_s28 = sshll.u32 %s4736_s21, 3  ;;  %v4593_v0 = vld [vmem:[%s6474_s1 + $0x40] sm:$0xff]   ;;  %v4597_v2 = vld [vmem:[%s6474_s1 + $0x48] sm:$0xff]   ;;  %v4603_v4 = vld [vmem:[%s6474_s1 + $0x50] sm:$0xff]   ;;  %vm700_vm0 = vcmask 1046528  }
  0x11   : > { %p297_p6 = scmp.lt.s32.totalorder %s3862_s28, 15  ;;  %4259 = vmatprep.subr.bf16.mxu0 %v4593_v0  ;;  %v4594_v1 = vld [vmem:[%s6474_s1] sm:$0xff]   ;;  %s4199_s14 = smul.u32 96, %s4736_s21  ;;  %v4598_v3 = vld [vmem:[%s6474_s1 + $0x8] sm:$0xff]   ;;  %v4604_v5 = vld [vmem:[%s6474_s1 + $0x10] sm:$0xff]   ;;  %vm1351_vm2 = vcmask 261120  }
  0x12   : > { %s6579_s22 = smov (!%p289_p5, %s4740_s22), 1  ;;  %4260 = vmatpush3.bf16.msra.mxu0 %v4594_v1  ;;  %v4608_v6 = vld [vmem:[%s6474_s1 + $0x58] sm:$0xff]   ;;  %vm529_vm1 = vsmask.f32 7424  ;;  %s4755_s19 = smov 32   ;;  %v4612_v38 = vld [vmem:[%s6474_s1 + $0x60] sm:$0xff]  }
  0x13   : > { %s6581_s28 = smov (!%p297_p6, %s3862_s28), 15  ;;  %s4469_s11 = smul.u32 240, %s6579_s22  ;;  %4261 = vmatprep.subr.bf16.mxu0 %v4597_v2  ;;  %v4609_v9 = vld [vmem:[%s6474_s1 + $0x18] sm:$0xff]   ;;  %vm1372_vm3 = vcmask 523264   ;;  %vm1393_vm4 = vcmask 785408   ;;  %vm1931_vm5 = vcmask 253952  }
  0x14   : > { %s3864_s12 = sshll.u32 %s6579_s22, 5  ;;  %s3863_s13 = sshll.u32 %s6581_s28, 1  ;;  %vm1932_vm6 = vsmask.f32 256  ;;  %vm1964_vm8 = vsmask.f32 7938 }
  0x15   : > { %s293_s29 = scalar_lea.vmem %s6473_s0, %s4469_s11  ;;  %s301_s30 = sadd.s32 %s3864_s12, %s3863_s13  ;;  %vm5599_vm7 = vmand %vm1931_vm5, %vm1932_vm6  ;;  %vm2258_vm10 = vcmask 257024   ;;  %vm2056_vm11 = vsmask.f32 4368 }
  0x16   : > { %s3865_s7 = sshll.u32 %s301_s30, 2  ;;  %s3869_s8 = sshll.u32 %s301_s30, 3  ;;  %4262 = vmatpush3.bf16.msra.mxu0 %v4598_v3  ;;  %vm5607_vm9 = vmand %vm1931_vm5, %vm1964_vm8 }
  0x17   : > { %s4852_s15 = scalar_lea.vmem %s6478_s5, %s3865_s7  ;;  %s4857_s17 = scalar_lea.vmem %s6479_s6, %s3869_s8  ;;  %4263 = vmatprep.subr.bf16.mxu0 %v4603_v4  ;;  %v4613_v4 = vld [vmem:[%s6474_s1 + $0x20] sm:$0xff]   ;;  %vm5701_vm12 = vmand %vm2258_vm10, %vm1964_vm8 }
  0x18   : > { %s4859_s18 = scalar_lea.vmem %s293_s29, %s4199_s14  ;;  %s4754_s14 = smov 64   ;;  %vm5708_vm13 = vmor %vm1932_vm6, %vm2056_vm11 }
  0x19   : > { %v3919_v7 = vld [vmem:[%s4859_s18 + $0x24] sm:$0xf]  ;;  %v4866_v8 = vld [vmem:[%s4859_s18 + $0x28] sm:$0xf]  ;;  %v3917_v11 = vld [vmem:[%s4859_s18 + $0x18] sm:$0xf] }
  0x1a   : > { %v4872_v10 = vcombine.low %v3919_v7, %v4866_v8  ;;  %v3918_v12 = vld [vmem:[%s4859_s18 + $0x1c] sm:$0xf]  ;;  %v3876_v13 = vld [vmem:[%s4859_s18 + $0x10] sm:$0xf]  ;;  %v3905_v15 = vld [vmem:[%s4859_s18 + $0xc] sm:$0xe]  ;;  %4264 = vmatpush3.bf16.msra.mxu0 %v4604_v5 }
  0x1b   : > { %v4877_v14 = vcombine.low %v3917_v11, %v3918_v12  ;;  %v3875_v16 = vld [vmem:[%s4859_s18 + $0xc] sm:$0xf]  ;;  %v4884_v17 = vld [vmem:[%s4859_s18 + $0x14] ss:$0 sps:$4 sm:$0x11]   ;;  %v4007_v18 = vcombine.low %v3905_v15, %v3876_v13  ;;  %4265 = vmatprep.subr.bf16.mxu0 %v4608_v6  ;;  %s4756_s20 = smov 96  }
  0x1c   : > { %1103 = vrot.lane.b32.xlu0 %v4872_v10, %s4754_s14  ;;  %v4889_v20 = vcombine.low %v3875_v16, %v3876_v13  ;;  %v4892_v21 = vld [vmem:[%s4859_s18 + $0x1c] sm:$0xf]  ;;  %v1166_v22 = vshll.u32 %v4872_v10, 16  ;;  %v1002_v24 = vrot.slane %v4884_v17, 1  ;;  %v3906_v25 = vld [vmem:[%s4859_s18 + $0x18] sm:$0xe] }
  0x1d   : > { %1101 = vrot.lane.b32.xlu1 %v4877_v14, %s4754_s14  ;;  %v1154_v19 = vshll.u32 %v4877_v14, 16  ;;  %v1001_v23 = vrot.slane %v4007_v18, 1  ;;  %v4898_v26 = vld [vmem:[%s4859_s18 + $0x20] ss:$0 sps:$4 sm:$0x11]   ;;  %v4008_v27 = vcombine.low %v3906_v25, %v4892_v21  ;;  %v1152_v29 = vshrl.u32 %v4877_v14, 16 }
  0x1e   : > { %v322_v28 = vld [vmem:[%s4859_s18 + $0x4] sm:$0xf]  ;;  %4266 = vmatpush3.bf16.msra.mxu0 %v4609_v9  ;;  %v351_v31 = vld [vmem:[%s4859_s18] sm:$0xe]  ;;  %v1164_v33 = vshrl.u32 %v4872_v10, 16  ;;  %v1005_v35 = vrot.slane %v4898_v26, 1 }
  0x1f   : > { %v1003_v30 = vsel %vm700_vm0, %v1001_v23, %v1002_v24  ;;  %v1156_v32 = vrot.slane %v1154_v19, 1  ;;  %v1004_v34 = vrot.slane %v4008_v27, 1  ;;  %v4523_v36 = vld [vmem:[%s4859_s18 + $0x8] ss:$0 sps:$4 sm:$0x11]   ;;  %v3977_v37 = vcombine.low %v351_v31, %v322_v28  ;;  %4267 = vmatprep.subr.bf16.mxu0 %v4612_v38  ;;  %p4096_p7 = scmp.ne.s32.totalorder %s4736_s21, 0 }
  0x20   : > { %1031 = vrot.lane.b32.xlu0 %v1003_v30, %s4755_s19  ;;  %v321_v39 = vld [vmem:[%s4859_s18] sm:$0xf]  ;;  %v323_v40 = vld [vmem:[%s4859_s18 + $0xc] sm:$0xf]  ;;  %v324_v41 = vld [vmem:[%s4859_s18 + $0x10] sm:$0xf] }
  0x21   : > { %801 = vrot.lane.b32.xlu1 %v4889_v20, %s4756_s20  ;;  %v1006_v42 = vsel %vm700_vm0, %v1004_v34, %v1005_v35  ;;  %v701_v43 = vrot.slane %v3977_v37, 1  ;;  %v702_v44 = vrot.slane %v4523_v36, 1  ;;  %v4918_v45 = vcombine.low %v321_v39, %v322_v28  ;;  %v352_v46 = vld [vmem:[%s4859_s18 + $0xc] sm:$0xe]  ;;  %v325_v3 = vld [vmem:[%s4859_s18 + $0x18] sm:$0xf] }
  0x22   : > { %v4921_v47 = vcombine.low %v323_v40, %v324_v41  ;;  %v4527_v48 = vld [vmem:[%s4859_s18 + $0x14] ss:$0 sps:$4 sm:$0x11]   ;;  %v3978_v49 = vcombine.low %v352_v46, %v324_v41  ;;  %v538_v50 = vshll.u32 %v4523_v36, 16  ;;  %v1168_v55 = vrot.slane %v1166_v22, 1  ;;  %v4614_v12 = vld [vmem:[%s6474_s1 + $0x68] sm:$0xff]   ;;  %4268 = vmatpush3.bf16.msra.mxu0 %v4613_v4 }
  0x23   : > { %v703_v51 = vsel %vm700_vm0, %v701_v43, %v702_v44  ;;  %v531_v52 = vshrl.u32 %v4918_v45, 16  ;;  %v533_v53 = vshll.u32 %v4918_v45, 16  ;;  %v4929_v54 = vld [vmem:[%s4859_s18 + $0x20] ss:$0 sps:$4 sm:$0x11]   ;;  %v705_v57 = vrot.slane %v4527_v48, 1  ;;  %4269 = vmatprep.subr.bf16.mxu0 %v4614_v12 }
  0x24   : > { %1033 = vrot.lane.b32.xlu0 %v1006_v42, %s4755_s19  ;;  %v704_v56 = vrot.slane %v3978_v49, 1  ;;  %v540_v58 = vrot.slane %v538_v50, 1  ;;  %v543_v59 = vshrl.u32 %v4921_v47, 16  ;;  %v545_v61 = vshll.u32 %v4921_v47, 16  ;;  %v326_v11 = vld [vmem:[%s4859_s18 + $0x1c] sm:$0xf] }
  0x25   : > { %731 = vrot.lane.b32.xlu1 %v703_v51, %s4754_s14  ;;  %v535_v60 = vrot.slane %v533_v53, 1  ;;  %v550_v62 = vshll.u32 %v4527_v48, 16  ;;  %v1159_v63 = vshll.u32 %v4929_v54, 16  ;;  %v1157_v1 = vor.u32 %v1156_v32, %v1152_v29  ;;  %v4937_v2 = vld [vmem:[%s4859_s18 + $0x2c] ss:$0 sps:$4 sm:$0x11]  }
  0x26   : > { %v706_v0 = vsel %vm700_vm0, %v704_v56, %v705_v57  ;;  %v547_v6 = vrot.slane %v545_v61, 1  ;;  %v3877_v13 = vld [vmem:[%s4859_s18 + $0x18] sm:$0xf]  ;;  %v1171_v14 = vshll.u32 %v4937_v2, 16  ;;  %v4950_v15 = vcombine.low %v325_v3, %v326_v11  ;;  %v4615_v16 = vld [vmem:[%s6474_s1 + $0x28] sm:$0xff]   ;;  %v4616_v44 = vld [vmem:[%s6474_s1 + $0x70] sm:$0xff]  }
  0x27   : > { %v536_v5 = vor.u32 %v535_v60, %v531_v52  ;;  %v552_v7 = vrot.slane %v550_v62, 1  ;;  %v1161_v9 = vrot.slane %v1159_v63, 1  ;;  %v4533_v22 = vld [vmem:[%s4859_s18 + $0x20] ss:$0 sps:$4 sm:$0x11]   ;;  %v1169_v30 = vor.u32 %v1168_v55, %v1164_v33  ;;  %4270 = vmatpush3.bf16.msra.mxu0 %v4615_v16 }
  0x28   : > { %v548_v19 = vor.u32 %v547_v6, %v543_v59  ;;  %v4958_v23 = vld [vmem:[%s4859_s18 + $0x28] sm:$0xf]  ;;  %v1173_v24 = vrot.slane %v1171_v14, 1  ;;  %v555_v25 = vshrl.u32 %v4950_v15, 16  ;;  %v557_v27 = vshll.u32 %v4950_v15, 16  ;;  %4271 = vmatprep.subr.bf16.mxu0 %v4616_v44 }
  0x29   : > { %733 = vrot.lane.b32.xlu1 %v706_v0, %s4754_s14  ;;  %v541_v18 = vsel %vm529_vm1, %v536_v5, %v540_v58  ;;  %v1162_v29 = vsel %vm529_vm1, %v1157_v1, %v1161_v9  ;;  %v562_v31 = vshll.u32 %v4533_v22, 16  ;;  %v3907_v32 = vld [vmem:[%s4859_s18 + $0x24] sm:$0xe]  ;;  %v4969_v34 = vld [vmem:[%s4859_s18 + $0x2c] ss:$0 sps:$4 sm:$0x11]   ;;  %v4973_v35 = vcombine.low %v3877_v13, %v4892_v21 }
  0x2a   : > { %650 = vrot.lane.b32.xlu0 %v541_v18, %s4755_s19  ;;  %v553_v28 = vsel %vm529_vm1, %v548_v19, %v552_v7  ;;  %v559_v36 = vrot.slane %v557_v27, 1  ;;  %v4009_v37 = vcombine.low %v3907_v32, %v4958_v23  ;;  %v353_v38 = vld [vmem:[%s4859_s18 + $0x18] sm:$0xe]  ;;  %v3921_v39 = vld [vmem:[%s4859_s18 + $0x30] sm:$0xf]  ;;  %v854_v41 = vshll.u32 %v4889_v20, 16 }
  0x2b   : > { %v564_v10 = vrot.slane %v562_v31, 1  ;;  %v3979_v33 = vcombine.low %v353_v38, %v326_v11  ;;  %v4979_v40 = vld [vmem:[%s4859_s18 + $0x34] sm:$0xf]  ;;  %v1008_v42 = vrot.slane %v4969_v34, 1  ;;  %v1174_v46 = vsel %vm529_vm1, %v1169_v30, %v1173_v24  ;;  %v327_v50 = vld [vmem:[%s4859_s18 + $0x24] sm:$0xf] }
  0x2c   : > { %v560_v21 = vor.u32 %v559_v36, %v555_v25  ;;  %v4019_v43 = vcombine.low %v3921_v39, %v4979_v40  ;;  %v1007_v48 = vrot.slane %v4009_v37, 1  ;;  %v4990_v49 = vld [vmem:[%s4859_s18 + $0x38] ss:$0 sps:$4 sm:$0x11]   ;;  %v328_v52 = vld [vmem:[%s4859_s18 + $0x28] sm:$0xf] }
  0x2d   : > { %652 = vrot.lane.b32.xlu1 %v553_v28, %s4755_s19  ;;  %v707_v55 = vrot.slane %v3979_v33, 1  ;;  %v708_v56 = vrot.slane %v4533_v22, 1  ;;  %v4998_v57 = vld [vmem:[%s4859_s18 + $0x2c] ss:$0 sps:$4 sm:$0x11]   ;;  %v1183_v60 = vshll.u32 %v4990_v49, 16  ;;  %v5002_v61 = vcombine.low %v327_v50, %v328_v52 }
  0x2e   : > { %1271 = vrot.lane.b32.xlu0 %v1162_v29, %s4756_s20  ;;  %v1178_v51 = vshll.u32 %v4019_v43, 16  ;;  %v565_v53 = vsel %vm529_vm1, %v560_v21, %v564_v10  ;;  %v1176_v58 = vshrl.u32 %v4019_v43, 16  ;;  %v852_v62 = vshrl.u32 %v4889_v20, 16  ;;  %v3879_v1 = vld [vmem:[%s4859_s18 + $0x24] sm:$0xf] }
  0x2f   : > { %6500 = vst [vmem:[#allocation4_spill] sm:$0xff] %v5002_v61  ;;  %v856_v63 = vrot.slane %v854_v41, 1  ;;  %v1009_v0 = vsel %vm700_vm0, %v1007_v48, %v1008_v42  ;;  %v569_v3 = vshll.u32 %v5002_v61, 16  ;;  %v5010_v4 = vld [vmem:[%s4859_s18 + $0x34] sm:$0xf]  ;;  %v859_v6 = vshll.u32 %v4884_v17, 16 }
  0x30   : > { %v1180_v59 = vrot.slane %v1178_v51, 1  ;;  %v3908_v5 = vld [vmem:[%s4859_s18 + $0x30] sm:$0xe]  ;;  %v709_v7 = vsel %vm700_vm0, %v707_v55, %v708_v56  ;;  %v567_v20 = vshrl.u32 %v5002_v61, 16  ;;  %v574_v9 = vshll.u32 %v4998_v57, 16 }
  0x31   : > { %803 = vrot.lane.b32.xlu1 %v4973_v35, %s4756_s20  ;;  %v3923_v11 = vld [vmem:[%s4859_s18 + $0x3c] sm:$0xf]  ;;  %v5019_v12 = vld [vmem:[%s4859_s18 + $0x40] sm:$0xf]  ;;  %v1185_v14 = vrot.slane %v1183_v60, 1  ;;  %v571_v16 = vrot.slane %v569_v3, 1  ;;  %v4010_v22 = vcombine.low %v3908_v5, %v5010_v4  ;;  %v857_v24 = vor.u32 %v856_v63, %v852_v62 }
  0x32   : > { %1273 = vrot.lane.b32.xlu0 %v1174_v46, %s4756_s20  ;;  %v1181_v13 = vor.u32 %v1180_v59, %v1176_v58  ;;  %v354_v18 = vld [vmem:[%s4859_s18 + $0x24] sm:$0xe]  ;;  %v5024_v17 = vcombine.low %v3923_v11, %v5019_v12  ;;  %v5027_v19 = vld [vmem:[%s4859_s18 + $0x38] ss:$0 sps:$4 sm:$0x11]   ;;  %v5032_v25 = vcombine.low %v3879_v1, %v4958_v23  ;;  %v861_v28 = vrot.slane %v859_v6, 1 }
  0x33   : > { %v329_v27 = vld [vmem:[%s4859_s18 + $0x30] sm:$0xf]  ;;  %v572_v29 = vor.u32 %v571_v16, %v567_v20  ;;  %v576_v30 = vrot.slane %v574_v9, 1  ;;  %v3980_v31 = vcombine.low %v354_v18, %v328_v52  ;;  %v5036_v32 = vld [vmem:[%s4859_s18 + $0x34] sm:$0xf]  ;;  %v1010_v23 = vrot.slane %v4010_v22, 1 }
  0x34   : > { %v1186_v36 = vsel %vm529_vm1, %v1181_v13, %v1185_v14  ;;  %v1190_v37 = vshll.u32 %v5024_v17, 16  ;;  %v5042_v38 = vld [vmem:[%s4859_s18 + $0x44] ss:$0 sps:$4 sm:$0x11]   ;;  %v1011_v39 = vrot.slane %v5027_v19, 1  ;;  %v5046_v10 = vcombine.low %v329_v27, %v5036_v32  ;;  %v4617_v48 = vld [vmem:[%s6474_s1 + $0x30] sm:$0xff]  }
  0x35   : > { %654 = vrot.lane.b32.xlu1 %v565_v53, %s4755_s19  ;;  %v5049_v33 = vsel %vm529_vm1, %v857_v24, %v861_v28  ;;  %v5054_v41 = vld [vmem:[%s4859_s18 + $0x38] ss:$0 sps:$4 sm:$0x11]   ;;  %v3948_v21 = vld [vmem:[%s4859_s18 + $0x24] sm:$0xe]  ;;  %v577_v42 = vsel %vm529_vm1, %v572_v29, %v576_v30  ;;  %v711_v44 = vrot.slane %v4998_v57, 1  ;;  %4272 = vmatpush3.bf16.msra.mxu0 %v4617_v48 }
  0x36   : > { %1035 = vrot.lane.b32.xlu0 %v1009_v0, %s4755_s19  ;;  %6501 = vst [vmem:[#allocation5_spill] sm:$0xff] %v5046_v10  ;;  %v581_v46 = vshll.u32 %v5046_v10, 16  ;;  %v3949_v50 = vld [vmem:[%s4859_s18 + $0x30] sm:$0xe]  ;;  %v1188_v51 = vshrl.u32 %v5024_v17, 16  ;;  %v1192_v52 = vrot.slane %v1190_v37, 1  ;;  %v1012_v55 = vsel %vm700_vm0, %v1010_v23, %v1011_v39 }
  0x37   : > { %v1195_v53 = vshll.u32 %v5042_v38, 16  ;;  %v3881_v56 = vld [vmem:[%s4859_s18 + $0x30] sm:$0xf]  ;;  %v5070_v57 = vld [vmem:[%s4859_s18 + $0x40] sm:$0xf]  ;;  %v866_v60 = vshll.u32 %v4973_v35, 16  ;;  %v4039_v20 = vcombine.low %v3949_v50, %v4979_v40 }
  0x38   : > { %v3925_v58 = vld [vmem:[%s4859_s18 + $0x48] sm:$0xf]  ;;  %v5074_v59 = vld [vmem:[%s4859_s18 + $0x4c] sm:$0xf]  ;;  %v586_v62 = vshll.u32 %v5054_v41, 16  ;;  %v579_v1 = vshrl.u32 %v5046_v10, 16  ;;  %v1193_v16 = vor.u32 %v1192_v52, %v1188_v51  ;;  %v5107_v27 = vcombine.low %v3881_v56, %v5010_v4 }
  0x39   : > { %735 = vrot.lane.b32.xlu1 %v709_v7, %s4754_s14  ;;  %v3909_v63 = vld [vmem:[%s4859_s18 + $0x3c] sm:$0xe]  ;;  %v583_v3 = vrot.slane %v581_v46, 1  ;;  %v355_v5 = vld [vmem:[%s4859_s18 + $0x30] sm:$0xe]  ;;  %v4038_v7 = vcombine.low %v3948_v21, %v4866_v8  ;;  %v5088_v9 = vcombine.low %v3925_v58, %v5074_v59  ;;  %v878_v14 = vshll.u32 %v5032_v25, 16 }
  0x3a   : > { %1105 = vrot.lane.b32.xlu0 %v4019_v43, %s4754_s14  ;;  %v710_v43 = vrot.slane %v3980_v31, 1  ;;  %v331_v6 = vld [vmem:[%s4859_s18 + $0x3c] sm:$0xf]  ;;  %v5091_v11 = vld [vmem:[%s4859_s18 + $0x40] sm:$0xf]  ;;  %v1197_v18 = vrot.slane %v1195_v53, 1  ;;  %v4011_v8 = vcombine.low %v3909_v63, %v5070_v57  ;;  %v3981_v28 = vcombine.low %v355_v5, %v5036_v32 }
  0x3b   : > { %v4618_v13 = vld [vmem:[%s6474_s1 + $0x78] sm:$0xff]   ;;  %v5098_v22 = vld [vmem:[%s4859_s18 + $0x44] ss:$0 sps:$4 sm:$0x11]   ;;  %v864_v24 = vshrl.u32 %v4973_v35, 16  ;;  %v868_v29 = vrot.slane %v866_v60, 1  ;;  %v584_v31 = vor.u32 %v583_v3, %v579_v1  ;;  %v5112_v37 = vcombine.low %v331_v6, %v5091_v11 }
  0x3c   : > { %v712_v0 = vsel %vm700_vm0, %v710_v43, %v711_v44  ;;  %v4619_v40 = vld [vmem:[%s6474_s1 + $0x80] sm:$0xff]   ;;  %4273 = vmatprep.subr.bf16.mxu0 %v4618_v13  ;;  %v3950_v30 = vld [vmem:[%s4859_s18 + $0x3c] sm:$0xe]  ;;  %v5117_v23 = vrot.slane %v4038_v7, 1  ;;  %v5119_v4 = vrot.slane %v4039_v20, 1  ;;  %v876_v32 = vshrl.u32 %v5032_v25, 16 }
  0x3d   : > { %805 = vrot.lane.b32.xlu1 %v5032_v25, %s4756_s20  ;;  %6502 = vst [vmem:[#allocation6_spill] sm:$0xff] %v5112_v37  ;;  %4421 = vmatprep.subr.bf16.mxu1 %v4619_v40  ;;  %v4620_v35 = vld [vmem:[%s6474_s1 + $0x38] sm:$0xff]   ;;  %v1202_v39 = vshll.u32 %v5088_v9, 16  ;;  %v5125_v21 = vrot.slane %v878_v14, 1  ;;  %v1013_v43 = vrot.slane %v4011_v8, 1  ;;  %v1014_v44 = vrot.slane %v5098_v22, 1 }
  0x3e   : > { %1275 = vrot.lane.b32.xlu0 %v1186_v36, %s4756_s20  ;;  %v588_v36 = vrot.slane %v586_v62, 1  ;;  %4422 = vmatpush3.bf16.msra.mxu1 %v4619_v40  ;;  %v5130_v46 = vld [vmem:[%s4859_s18 + $0x50] ss:$0 sps:$4 sm:$0x11]   ;;  %v4040_v48 = vcombine.low %v3950_v30, %v5019_v12  ;;  %v714_v50 = vrot.slane %v5054_v41, 1  ;;  %v4621_v52 = vld [vmem:[%s6474_s1 + $0x88] sm:$0xff]   ;;  %v869_v12 = vor.u32 %v868_v29, %v864_v24 }
  0x3f   : > { %4274 = vmatpush3.bf16.msra.mxu0 %v4620_v35  ;;  %v5137_v51 = vld [vmem:[%s4859_s18 + $0x44] ss:$0 sps:$4 sm:$0x11]   ;;  %v593_v56 = vshll.u32 %v5112_v37, 16  ;;  %v871_v58 = vshll.u32 %v4898_v26, 16  ;;  %v1200_v41 = vshrl.u32 %v5088_v9, 16  ;;  %4423 = vmatprep.subr.bf16.mxu1 %v4621_v52 }
  0x40   : > { %v589_v53 = vsel %vm529_vm1, %v584_v31, %v588_v36  ;;  %v1204_v60 = vrot.slane %v1202_v39, 1  ;;  %v3886_v62 = vld [vmem:[%s4859_s18 + $0x4c] sm:$0xf]  ;;  %v3910_v63 = vld [vmem:[%s4859_s18 + $0x48] sm:$0xe]  ;;  %v1207_v1 = vshll.u32 %v5130_v46, 16 }
  0x41   : > { %656 = vrot.lane.b32.xlu1 %v577_v42, %s4755_s19  ;;  %v1198_v42 = vsel %vm529_vm1, %v1193_v16, %v1197_v18  ;;  %v3927_v3 = vld [vmem:[%s4859_s18 + $0x54] sm:$0xf]  ;;  %v5154_v5 = vld [vmem:[%s4859_s18 + $0x58] sm:$0xf]  ;;  %v873_v6 = vrot.slane %v871_v58, 1  ;;  %v5156_v26 = vrot.slane %v4040_v48, 1  ;;  %v4012_v8 = vcombine.low %v3910_v63, %v3886_v62 }
  0x42   : > { %1037 = vrot.lane.b32.xlu0 %v1012_v55, %s4755_s19  ;;  %v3883_v55 = vld [vmem:[%s4859_s18 + $0x3c] sm:$0xf]  ;;  %4424 = vmatpush3.bf16.msra.mxu1 %v4621_v52  ;;  %v598_v20 = vshll.u32 %v5137_v51, 16  ;;  %v591_v14 = vshrl.u32 %v5112_v37, 16  ;;  %v595_v16 = vrot.slane %v593_v56, 1  ;;  %v888_v31 = vshrl.u32 %v5107_v27, 16 }
  0x43   : > { %v356_v13 = vld [vmem:[%s4859_s18 + $0x3c] sm:$0xe]  ;;  %v5164_v18 = vld [vmem:[%s4859_s18 + $0x50] ss:$0 sps:$4 sm:$0x11]   ;;  %v5167_v40 = vsel %vm529_vm1, %v869_v12, %v873_v6  ;;  %v5171_v24 = vcombine.low %v3883_v55, %v5070_v57  ;;  %v1205_v36 = vor.u32 %v1204_v60, %v1200_v41  ;;  %v1209_v35 = vrot.slane %v1207_v1, 1 }
  0x44   : > { %v333_v29 = vld [vmem:[%s4859_s18 + $0x48] sm:$0xf]  ;;  %v5178_v30 = vld [vmem:[%s4859_s18 + $0x4c] sm:$0xf]  ;;  %v3982_v39 = vcombine.low %v356_v13, %v5091_v11  ;;  %v596_v48 = vor.u32 %v595_v16, %v591_v14  ;;  %v3888_v58 = vld [vmem:[%s4859_s18 + $0x58] sm:$0xf] }
  0x45   : > { %737 = vrot.lane.b32.xlu1 %v712_v0, %s4754_s14  ;;  %v1015_v0 = vsel %vm700_vm0, %v1013_v43, %v1014_v44  ;;  %v902_v57 = vshll.u32 %v5171_v24, 16  ;;  %v600_v43 = vrot.slane %v598_v20, 1  ;;  %v717_v44 = vrot.slane %v5137_v51, 1  ;;  %v3885_v52 = vld [vmem:[%s4859_s18 + $0x48] sm:$0xf] }
  0x46   : > { %1107 = vrot.lane.b32.xlu0 %v5024_v17, %s4754_s14  ;;  %v713_v17 = vrot.slane %v3981_v28, 1  ;;  %v5174_v28 = vcombine.low %v3927_v3, %v5154_v5  ;;  %v5189_v11 = vcombine.low %v333_v29, %v5178_v30  ;;  %v5195_v55 = vld [vmem:[%s4859_s18 + $0x5c] ss:$0 sps:$4 sm:$0x11]   ;;  %v1210_v56 = vsel %vm529_vm1, %v1205_v36, %v1209_v35  ;;  %v3911_v60 = vld [vmem:[%s4859_s18 + $0x54] sm:$0xe] }
  0x47   : > { %v716_v51 = vrot.slane %v3982_v39, 1  ;;  %v5199_v12 = vld [vmem:[%s4859_s18 + $0x50] ss:$0 sps:$4 sm:$0x11]   ;;  %v5204_v41 = vcombine.low %v3885_v52, %v3886_v62  ;;  %v3929_v63 = vld [vmem:[%s4859_s18 + $0x60] sm:$0xf]  ;;  %v601_v1 = vsel %vm529_vm1, %v596_v48, %v600_v43  ;;  %v4013_v16 = vcombine.low %v3911_v60, %v3888_v58 }
  0x48   : > { %v715_v7 = vsel %vm700_vm0, %v713_v17, %v714_v50  ;;  %v1016_v17 = vrot.slane %v4012_v8, 1  ;;  %v1017_v50 = vrot.slane %v5164_v18, 1  ;;  %6503 = vst [vmem:[#allocation7_spill] sm:$0xff] %v5189_v11  ;;  %v605_v6 = vshll.u32 %v5189_v11, 16  ;;  %v5230_v43 = vld [vmem:[%s4859_s18 + $0x58] sm:$0xf] }
  0x49   : > { %807 = vrot.lane.b32.xlu1 %v5107_v27, %s4756_s20  ;;  %v1212_v62 = vshrl.u32 %v5174_v28, 16  ;;  %v1219_v13 = vshll.u32 %v5195_v55, 16  ;;  %v610_v14 = vshll.u32 %v5199_v12, 16  ;;  %v1325_v29 = vrot.slane %v4937_v2, 1  ;;  %v3933_v36 = vld [vmem:[%s4859_s18 + $0x78] sm:$0xf] }
  0x4a   : > { %1277 = vrot.lane.b32.xlu0 %v1198_v42, %s4756_s20  ;;  %v890_v42 = vshll.u32 %v5107_v27, 16  ;;  %v1018_v3 = vsel %vm700_vm0, %v1016_v17, %v1017_v50  ;;  %v5224_v35 = vrot.slane %v902_v57, 1  ;;  %v718_v39 = vsel %vm700_vm0, %v716_v51, %v717_v44  ;;  %v5235_v2 = vld [vmem:[%s4859_s18 + $0x5c] ss:$0 sps:$4 sm:$0x11]  }
  0x4b   : > { %v603_v17 = vshrl.u32 %v5189_v11, 16  ;;  %v607_v50 = vrot.slane %v605_v6, 1  ;;  %v5239_v57 = vsel %vm700_vm0, %v5117_v23, %v1325_v29  ;;  %v720_v51 = vrot.slane %v5199_v12, 1  ;;  %v3887_v6 = vld [vmem:[%s4859_s18 + $0x54] sm:$0xf] }
  0x4c   : > { %v612_v60 = vrot.slane %v610_v14, 1  ;;  %v5253_v23 = vld [vmem:[%s4859_s18 + $0x68] ss:$0 sps:$4 sm:$0x11]   ;;  %v883_v12 = vshll.u32 %v4969_v34, 16 }
  0x4d   : > { %658 = vrot.lane.b32.xlu1 %v589_v53, %s4755_s19  ;;  %v1214_v53 = vshll.u32 %v5174_v28, 16  ;;  %v5265_v14 = vld [vmem:[%s4859_s18 + $0x5c] ss:$0 sps:$4 sm:$0x11]   ;;  %v5386_v61 = vld [vmem:[%s4859_s18 + $0x70] sm:$0xf] }
  0x4e   : > { %1039 = vrot.lane.b32.xlu0 %v1015_v0, %s4755_s19  ;;  %v5209_v0 = vld [vmem:[%s4859_s18 + $0x64] sm:$0xf]  ;;  %v885_v25 = vrot.slane %v883_v12, 1  ;;  %v622_v27 = vshll.u32 %v5265_v14, 16 }
  0x4f   : > { %v1216_v20 = vrot.slane %v1214_v53, 1  ;;  %v5220_v8 = vcombine.low %v3929_v63, %v5209_v0  ;;  %v1221_v53 = vrot.slane %v1219_v13, 1  ;;  %v1019_v63 = vrot.slane %v4013_v16, 1  ;;  %v3890_v16 = vld [vmem:[%s4859_s18 + $0x64] sm:$0xf] }
  0x50   : > { %v5359_v37 = vld [vmem:[%s4859_s18 + $0x74] ss:$0 sps:$4 sm:$0x11]  }
  0x51   : > { %739 = vrot.lane.b32.xlu1 %v715_v7, %s4754_s14  ;;  %v914_v7 = vshll.u32 %v5204_v41, 16  ;;  %v1217_v44 = vor.u32 %v1216_v20, %v1212_v62  ;;  %v1020_v62 = vrot.slane %v5235_v2, 1  ;;  %v1224_v13 = vshrl.u32 %v5220_v8, 16 }
  0x52   : > { %1109 = vrot.lane.b32.xlu0 %v5088_v9, %s4754_s14  ;;  %v892_v9 = vrot.slane %v890_v42, 1  ;;  %v335_v42 = vld [vmem:[%s4859_s18 + $0x54] sm:$0xf] }
  0x53   : > { %v5242_v52 = vrot.slane %v914_v7, 1  ;;  %v5249_v48 = vcombine.low %v335_v42, %v5230_v43  ;;  %v608_v7 = vor.u32 %v607_v50, %v603_v17  ;;  %v5278_v42 = vld [vmem:[%s4859_s18 + $0x70] sm:$0xf]  ;;  %v895_v50 = vshll.u32 %v5027_v19, 16  ;;  %v337_v19 = vld [vmem:[%s4859_s18 + $0x60] sm:$0xf] }
  0x55   : > { %809 = vrot.lane.b32.xlu1 %v5171_v24, %s4756_s20  ;;  %6504 = vst [vmem:[#allocation8_spill] sm:$0xff] %v5249_v48  ;;  %v617_v29 = vshll.u32 %v5249_v48, 16 }
  0x56   : > { %1279 = vrot.lane.b32.xlu0 %v1210_v56, %s4756_s20  ;;  %v357_v56 = vld [vmem:[%s4859_s18 + $0x48] sm:$0xe] }
  0x57   : > { %v3983_v20 = vcombine.low %v357_v56, %v5178_v30  ;;  %v1231_v30 = vshll.u32 %v5253_v23, 16  ;;  %v619_v12 = vrot.slane %v617_v29, 1  ;;  %v5311_v29 = vld [vmem:[%s4859_s18 + $0x74] ss:$0 sps:$4 sm:$0x11]  }
  0x59   : > { %660 = vrot.lane.b32.xlu1 %v601_v1, %s4755_s19  ;;  %v1226_v1 = vshll.u32 %v5220_v8, 16 }
  0x5a   : > { %1041 = vrot.lane.b32.xlu0 %v1018_v3, %s4755_s19  ;;  %v881_v3 = vor.u32 %v5125_v21, %v876_v32  ;;  %v1222_v32 = vsel %vm529_vm1, %v1217_v44, %v1221_v53  ;;  %v5269_v21 = vcombine.low %v3887_v6, %v3888_v58  ;;  %v893_v58 = vor.u32 %v892_v9, %v888_v31  ;;  %v5295_v9 = vld [vmem:[%s4859_s18 + $0x64] sm:$0xf] }
  0x5b   : > { %v1228_v34 = vrot.slane %v1226_v1, 1  ;;  %v613_v44 = vsel %vm529_vm1, %v608_v7, %v612_v60  ;;  %v719_v53 = vrot.slane %v3983_v20, 1  ;;  %v1021_v6 = vsel %vm700_vm0, %v1019_v63, %v1020_v62  ;;  %v358_v7 = vld [vmem:[%s4859_s18 + $0x54] sm:$0xe] }
  0x5c   : > { %v5281_v17 = vsel %vm529_vm1, %v881_v3, %v885_v25  ;;  %v926_v56 = vshll.u32 %v5269_v21, 16  ;;  %v615_v60 = vshrl.u32 %v5249_v48, 16  ;;  %v897_v25 = vrot.slane %v895_v50, 1 }
  0x5d   : > { %741 = vrot.lane.b32.xlu1 %v718_v39, %s4754_s14  ;;  %v3912_v39 = vld [vmem:[%s4859_s18 + $0x60] sm:$0xe]  ;;  %6505 = vst [vmem:[#allocation9_spill] sm:$0xff] %v5281_v17  ;;  %v1229_v63 = vor.u32 %v1228_v34, %v1224_v13  ;;  %v1233_v62 = vrot.slane %v1231_v30, 1  ;;  %v721_v1 = vsel %vm700_vm0, %v719_v53, %v720_v51  ;;  %v624_v13 = vrot.slane %v622_v27, 1 }
  0x5e   : > { %1111 = vrot.lane.b32.xlu0 %v5174_v28, %s4754_s14  ;;  %v3931_v28 = vld [vmem:[%s4859_s18 + $0x6c] sm:$0xf]  ;;  %v4014_v31 = vcombine.low %v3912_v39, %v3890_v16  ;;  %v3889_v39 = vld [vmem:[%s4859_s18 + $0x60] sm:$0xf]  ;;  %v5308_v3 = vrot.slane %v926_v56, 1  ;;  %v5317_v50 = vsel %vm529_vm1, %v893_v58, %v897_v25  ;;  %v3984_v30 = vcombine.low %v358_v7, %v5230_v43 }
  0x5f   : > { %v5300_v20 = vcombine.low %v3931_v28, %v5278_v42  ;;  %v5314_v28 = vcombine.low %v337_v19, %v5295_v9  ;;  %6507 = vst [vmem:[#allocation11_spill] sm:$0xff] %v5317_v50  ;;  %v723_v51 = vrot.slane %v5265_v14, 1  ;;  %v620_v53 = vor.u32 %v619_v12, %v615_v60  ;;  %v5330_v58 = vld [vmem:[%s4859_s18 + $0x7c] sm:$0xf]  ;;  %v3892_v43 = vld [vmem:[%s4859_s18 + $0x70] sm:$0xf] }
  0x60   : > { %v1022_v34 = vrot.slane %v4014_v31, 1  ;;  %v5326_v19 = vcombine.low %v3889_v39, %v3890_v16  ;;  %v1328_v25 = vrot.slane %v4990_v49, 1  ;;  %v3913_v27 = vld [vmem:[%s4859_s18 + $0x6c] sm:$0xe]  ;;  %v1243_v60 = vshll.u32 %v5311_v29, 16 }
  0x61   : > { %811 = vrot.lane.b32.xlu1 %v5204_v41, %s4756_s20  ;;  %6506 = vst [vmem:[#allocation10_spill] sm:$0xff] %v5314_v28  ;;  %v1238_v56 = vshll.u32 %v5300_v20, 16  ;;  %v629_v16 = vshll.u32 %v5314_v28, 16  ;;  %v359_v12 = vld [vmem:[%s4859_s18 + $0x60] sm:$0xe]  ;;  %v722_v39 = vrot.slane %v3984_v30, 1  ;;  %v4015_v11 = vcombine.low %v3913_v27, %v3892_v43 }
  0x62   : > { %1281 = vrot.lane.b32.xlu0 %v1222_v32, %s4756_s20  ;;  %v5304_v32 = vld [vmem:[%s4859_s18 + $0x68] ss:$0 sps:$4 sm:$0x11]   ;;  %v938_v31 = vshll.u32 %v5326_v19, 16  ;;  %v5350_v7 = vsel %vm700_vm0, %v5119_v4, %v1328_v25  ;;  %v1236_v48 = vshrl.u32 %v5300_v20, 16  ;;  %v3985_v4 = vcombine.low %v359_v12, %v5295_v9 }
  0x63   : > { %v1023_v14 = vrot.slane %v5304_v32, 1  ;;  %v1245_v30 = vrot.slane %v1243_v60, 1  ;;  %v3891_v27 = vld [vmem:[%s4859_s18 + $0x6c] sm:$0xf]  ;;  %v3893_v60 = vld [vmem:[%s4859_s18 + $0x78] sm:$0xf] }
  0x64   : > { %v5372_v12 = vld [vmem:[%s4859_s18 + $0x80] ss:$0 sps:$4 sm:$0x11]   ;;  %v339_v50 = vld [vmem:[%s4859_s18 + $0x6c] sm:$0xf] }
  0x65   : > { %662 = vrot.lane.b32.xlu1 %v613_v44, %s4755_s19  ;;  %v5323_v44 = vld [vmem:[%s4859_s18 + $0x68] ss:$0 sps:$4 sm:$0x11]   ;;  %v5389_v17 = vld [vmem:[%s4859_s18 + $0x7c] sm:$0xf] }
  0x66   : > { %1043 = vrot.lane.b32.xlu0 %v1021_v6, %s4755_s19  ;;  %v1234_v6 = vsel %vm529_vm1, %v1229_v63, %v1233_v62  ;;  %v634_v49 = vshll.u32 %v5323_v44, 16  ;;  %v1331_v63 = vrot.slane %v5042_v38, 1  ;;  %v625_v62 = vsel %vm529_vm1, %v620_v53, %v624_v13 }
  0x67   : > { %v940_v13 = vrot.slane %v938_v31, 1  ;;  %v627_v53 = vshrl.u32 %v5314_v28, 16  ;;  %v726_v25 = vrot.slane %v5323_v44, 1  ;;  %v1025_v31 = vrot.slane %v4015_v11, 1  ;;  %v5392_v11 = vld [vmem:[%s4859_s18 + $0x48] sm:$0xe] }
  0x68   : > { %v5364_v38 = vsel %vm700_vm0, %v5156_v26, %v1331_v63  ;;  %v636_v10 = vrot.slane %v634_v49, 1  ;;  %v1024_v26 = vsel %vm700_vm0, %v1022_v34, %v1023_v14  ;;  %v6508_v63 = vshrl.u32 %v5171_v24, 16 }
  0x69   : > { %743 = vrot.lane.b32.xlu1 %v721_v1, %s4754_s14  ;;  %v5346_v1 = vcombine.low %v3933_v36, %v5330_v58  ;;  %v1240_v36 = vrot.slane %v1238_v56, 1  ;;  %v631_v56 = vrot.slane %v629_v16, 1  ;;  %v907_v28 = vshll.u32 %v5098_v22, 16 }
  0x6a   : > { %1113 = vrot.lane.b32.xlu0 %v5220_v8, %s4754_s14  ;;  %v936_v8 = vshrl.u32 %v5326_v19, 16  ;;  %v905_v44 = vor.u32 %v5224_v35, %v6508_v63  ;;  %v725_v16 = vrot.slane %v3985_v4, 1  ;;  %v5382_v49 = vcombine.low %v3891_v27, %v3892_v43 }
  0x6b   : > { %v1250_v9 = vshll.u32 %v5346_v1, 16  ;;  %v724_v24 = vsel %vm700_vm0, %v722_v39, %v723_v51  ;;  %v1248_v35 = vshrl.u32 %v5346_v1, 16  ;;  %v909_v34 = vrot.slane %v907_v28, 1 }
  0x6c   : > { %v948_v22 = vshrl.u32 %v5382_v49, 16  ;;  %v950_v43 = vshll.u32 %v5382_v49, 16  ;;  %v1241_v4 = vor.u32 %v1240_v36, %v1236_v48  ;;  %v632_v51 = vor.u32 %v631_v56, %v627_v53  ;;  %v5416_v48 = vld [vmem:[%s4859_s18 + $0x74] ss:$0 sps:$4 sm:$0x11]  }
  0x6d   : > { %813 = vrot.lane.b32.xlu1 %v5269_v21, %s4756_s20  ;;  %v1252_v14 = vrot.slane %v1250_v9, 1  ;;  %v5403_v27 = vsel %vm529_vm1, %v905_v44, %v909_v34  ;;  %v1255_v28 = vshll.u32 %v5372_v12, 16  ;;  %v4041_v9 = vcombine.low %v5392_v11, %v5074_v59  ;;  %v4623_v11 = vld [vmem:[%s4859_s18 + $0x1c] sm:$0xf] }
  0x6e   : > { %1283 = vrot.lane.b32.xlu0 %v1234_v6, %s4756_s20  ;;  %v1026_v6 = vrot.slane %v5359_v37, 1  ;;  %v1246_v36 = vsel %vm529_vm1, %v1241_v4, %v1245_v30  ;;  %v6509_v53 = vshrl.u32 %v5204_v41, 16  ;;  %v941_v63 = vor.u32 %v940_v13, %v936_v8  ;;  %v3947_v30 = vld [vmem:[%s4859_s18 + $0x18] sm:$0xe] }
  0x6f   : > { %v637_v59 = vsel %vm529_vm1, %v632_v51, %v636_v10  ;;  %v952_v44 = vrot.slane %v950_v43, 1  ;;  %v919_v41 = vshll.u32 %v5164_v18, 16  ;;  %v943_v8 = vshll.u32 %v5304_v32, 16  ;;  %v3935_v32 = vld [vmem:[%s4859_s18 + $0x84] sm:$0xf] }
  0x70   : > { %v917_v56 = vor.u32 %v5242_v52, %v6509_v53  ;;  %v727_v18 = vsel %vm700_vm0, %v725_v16, %v726_v25  ;;  %v5445_v51 = vld [vmem:[%s4859_s18 + $0x88] sm:$0xf]  ;;  %v6511_v25 = vrot.slane %v4929_v54, 1  ;;  %v1257_v54 = vrot.slane %v1255_v28, 1 }
  0x71   : > { %664 = vrot.lane.b32.xlu1 %v625_v62, %s4755_s19  ;;  %v5400_v62 = vcombine.low %v3893_v60, %v5389_v17  ;;  %v6510_v60 = vshrl.u32 %v5269_v21, 16  ;;  %v4037_v21 = vcombine.low %v3947_v30, %v4623_v11  ;;  %v945_v4 = vrot.slane %v943_v8, 1 }
  0x72   : > { %1045 = vrot.lane.b32.xlu0 %v1024_v26, %s4755_s19  ;;  %v5409_v26 = vcombine.low %v339_v50, %v5386_v61  ;;  %v953_v53 = vor.u32 %v952_v44, %v948_v22  ;;  %v1253_v44 = vor.u32 %v1252_v14, %v1248_v35  ;;  %v3952_v35 = vld [vmem:[%s4859_s18 + $0x54] sm:$0xe]  ;;  %v3953_v14 = vld [vmem:[%s4859_s18 + $0x60] sm:$0xe] }
  0x73   : > { %v962_v39 = vshll.u32 %v5400_v62, 16  ;;  %v929_v50 = vor.u32 %v5308_v3, %v6510_v60  ;;  %v931_v3 = vshll.u32 %v5235_v2, 16  ;;  %v960_v13 = vshrl.u32 %v5400_v62, 16 }
  0x74   : > { %v641_v52 = vshll.u32 %v5409_v26, 16  ;;  %v639_v10 = vshrl.u32 %v5409_v26, 16  ;;  %v1321_v34 = vrot.slane %v4037_v21, 1  ;;  %v646_v2 = vshll.u32 %v5416_v48, 16 }
  0x75   : > { %745 = vrot.lane.b32.xlu1 %v724_v24, %s4754_s14  ;;  %v4601_v24 = vld [vmem:[%s4859_s18 + $0x80] ss:$0 sps:$4 sm:$0x11]   ;;  %v933_v43 = vrot.slane %v931_v3, 1  ;;  %v1334_v3 = vrot.slane %v5130_v46, 1 }
  0x76   : > { %1115 = vrot.lane.b32.xlu0 %v5300_v20, %s4754_s14  ;;  %v1027_v20 = vsel %vm700_vm0, %v1025_v31, %v1026_v6  ;;  %v964_v31 = vrot.slane %v962_v39, 1  ;;  %v921_v6 = vrot.slane %v919_v41, 1  ;;  %v955_v39 = vshll.u32 %v5359_v37, 16  ;;  %v360_v41 = vld [vmem:[%s4859_s18 + $0x6c] sm:$0xe] }
  0x77   : > { %v643_v60 = vrot.slane %v641_v52, 1  ;;  %v1323_v16 = vsel %vm700_vm0, %v1321_v34, %v6511_v25  ;;  %v5455_v30 = vsel %vm529_vm1, %v929_v50, %v933_v43  ;;  %v4026_v50 = vcombine.low %v3935_v32, %v5445_v51  ;;  %v3954_v43 = vld [vmem:[%s4859_s18 + $0x6c] sm:$0xe]  ;;  %v3955_v32 = vld [vmem:[%s4859_s18 + $0x78] sm:$0xe] }
  0x78   : > { %4425 = vmatprep.mubr.msk.bf16.mxu1 %vm1351_vm2, %v1323_v16  ;;  %v957_v22 = vrot.slane %v955_v39, 1  ;;  %v965_v37 = vor.u32 %v964_v31, %v960_v13  ;;  %v3986_v21 = vcombine.low %v360_v41, %v5386_v61  ;;  %v1029_v8 = vrot.slane %v4601_v24, 1  ;;  %v4611_v13 = vld [vmem:[%s4859_s18 + $0x8c] ss:$0 sps:$4 sm:$0x11]  }
  0x79   : > { %815 = vrot.lane.b32.xlu1 %v5326_v19, %s4756_s20  ;;  %v3914_v19 = vld [vmem:[%s4859_s18 + $0x78] sm:$0xe]  ;;  %4426 = vmatmul.mubr.msk.bf16.vlgmr.msra.gmra.mrb[0].mxu1 %vm1351_vm2, %v5239_v57  ;;  %v644_v28 = vor.u32 %v643_v60, %v639_v10  ;;  %v4042_v31 = vcombine.low %v3952_v35, %v5154_v5  ;;  %v4043_v10 = vcombine.low %v3953_v14, %v5209_v0  ;;  %v1267_v34 = vshll.u32 %v4611_v13, 16 }
  0x7a   : > { %1285 = vrot.lane.b32.xlu0 %v1246_v36, %s4756_s20  ;;  %v5448_v36 = vsel %vm529_vm1, %v917_v56, %v921_v6  ;;  %v967_v56 = vshll.u32 %v4601_v24, 16  ;;  %v4016_v52 = vcombine.low %v3914_v19, %v5389_v17  ;;  %4429 = vmatprep.mubr.msk.bf16.mxu1 %vm1351_vm2, %v5350_v7  ;;  %v648_v17 = vrot.slane %v646_v2, 1 }
  0x7b   : > { %v1258_v7 = vsel %vm529_vm1, %v1253_v44, %v1257_v54  ;;  %v1262_v19 = vshll.u32 %v4026_v50, 16  ;;  %v728_v46 = vrot.slane %v3986_v21, 1  ;;  %v1260_v24 = vshrl.u32 %v4026_v50, 16 }
  0x7c   : > { %v969_v11 = vrot.slane %v967_v56, 1  ;;  %v649_v61 = vsel %vm529_vm1, %v644_v28, %v648_v17  ;;  %v1336_v0 = vrot.slane %v4042_v31, 1  ;;  %v1340_v2 = vrot.slane %v5253_v23, 1  ;;  %v3956_v56 = vld [vmem:[%s4859_s18 + $0x84] sm:$0xe] }
  0x7d   : > { %666 = vrot.lane.b32.xlu1 %v637_v59, %s4755_s19  ;;  %v5458_v59 = vsel %vm529_vm1, %v941_v63, %v945_v4  ;;  %v1333_v63 = vrot.slane %v4041_v9, 1  ;;  %v1028_v9 = vrot.slane %v4016_v52, 1  ;;  %v1264_v5 = vrot.slane %v1262_v19, 1 }
  0x7e   : > { %1047 = vrot.lane.b32.xlu0 %v1027_v20, %s4755_s19  ;;  %v5471_v20 = vsel %vm529_vm1, %v953_v53, %v957_v22  ;;  %v5480_v57 = vsel %vm529_vm1, %v965_v37, %v969_v11  ;;  %v1269_v39 = vrot.slane %v1267_v34, 1  ;;  %v1346_v54 = vrot.slane %v5372_v12, 1 }
  0x7f   : > { %v1335_v6 = vsel %vm700_vm0, %v1333_v63, %v1334_v3  ;;  %v1265_v53 = vor.u32 %v1264_v5, %v1260_v24  ;;  %v4046_v52 = vcombine.low %v3956_v56, %v5445_v51 }
  0x81   : > { %747 = vrot.lane.b32.xlu1 %v727_v18, %s4754_s14  ;;  %v1030_v18 = vsel %vm700_vm0, %v1028_v9, %v1029_v8  ;;  %4430 = vmatmul.mubr.msk.bf16.gmra.mrb[4].mxu1 %vm1351_vm2, %v5364_v38  ;;  %v4044_v38 = vcombine.low %v3954_v43, %v5278_v42  ;;  %v1270_v23 = vsel %vm529_vm1, %v1265_v53, %v1269_v39  ;;  %v1343_v42 = vrot.slane %v5311_v29, 1 }
  0x82   : > { %1117 = vrot.lane.b32.xlu0 %v5346_v1, %s4754_s14  ;;  %v729_v1 = vrot.slane %v5416_v48, 1  ;;  %4433 = vmatprep.mubr.msk.bf16.mxu1 %vm1351_vm2, %v1335_v6  ;;  %v1339_v48 = vrot.slane %v4043_v10, 1  ;;  %v1348_v35 = vrot.slane %v4046_v52, 1  ;;  %v1349_v29 = vrot.slane %v4611_v13, 1  ;;  %v6515_v52 = vld [vmem:[#allocation5_spill] sm:$0xff] }
  0x83   : > { %v1342_v22 = vrot.slane %v4044_v38, 1 }
  0x84   : > { %v730_v4 = vsel %vm700_vm0, %v728_v46, %v729_v1  ;;  %v1341_v41 = vsel %vm700_vm0, %v1339_v48, %v1340_v2  ;;  %v1350_v12 = vsel %vm700_vm0, %v1348_v35, %v1349_v29 }
  0x85   : > { %817 = vrot.lane.b32.xlu1 %v5382_v49, %s4756_s20  ;;  %v1337_v49 = vrot.slane %v5195_v55, 1  ;;  %v4045_v55 = vcombine.low %v3955_v32, %v5330_v58 }
  0x86   : > { %1287 = vrot.lane.b32.xlu0 %v1258_v7, %s4756_s20 }
  0x87   : > { %v1338_v25 = vsel %vm700_vm0, %v1336_v0, %v1337_v49  ;;  %v1345_v37 = vrot.slane %v4045_v55, 1  ;;  %v6512_v0 = vld [vmem:[#allocation9_spill] sm:$0xff]  ;;  %v6514_v55 = vld [vmem:[#allocation11_spill] sm:$0xff] }
  0x89   : > { %668 = vrot.lane.b32.xlu1 %v649_v61, %s4755_s19  ;;  %4434 = vmatmul.mubr.msk.bf16.gmra.mrb[8].mxu1 %vm1351_vm2, %v1338_v25  ;;  %v1347_v63 = vsel %vm700_vm0, %v1345_v37, %v1346_v54 }
  0x8a   : > { %1049 = vrot.lane.b32.xlu0 %v1030_v18, %s4755_s19  ;;  %4437 = vmatprep.mubr.msk.bf16.mxu1 %vm1351_vm2, %v1341_v41 }
  0x8d   : > { %749 = vrot.lane.b32.xlu1 %v730_v4, %s4754_s14 }
  0x8e   : > { %v1104_v60 = vpop.permute.xlu0 %1103  ;;  %1119 = vrot.lane.b32.xlu0 %v4026_v50, %s4754_s14  ;;  %v1344_v50 = vsel %vm700_vm0, %v1342_v22, %v1343_v42 }
  0x8f   : > { %v1102_v16 = vpop.permute.xlu1 %1101 }
  0x91   : > { %819 = vrot.lane.b32.xlu1 %v5400_v62, %s4756_s20  ;;  %4438 = vmatmul.mubr.msk.bf16.gmra.mrb[12].mxu1 %vm1351_vm2, %v1344_v50 }
  0x92   : > { %v1032_v58 = vpop.permute.xlu0 %1031  ;;  %1289 = vrot.lane.b32.xlu0 %v1270_v23, %s4756_s20  ;;  %4441 = vmatprep.mubr.msk.bf16.mxu1 %vm1351_vm2, %v1347_v63 }
  0x93   : > { %v802_v44 = vpop.permute.xlu1 %801  ;;  %v1426_v17 = vsel %vm1351_vm2, %v5049_v33, %v1032_v58 }
  0x94   : > { %v1455_v9 = vsel %vm1372_vm3, %v1426_v17, %v1102_v16 }
  0x96   : > { %v1034_v11 = vpop.permute.xlu0 %1033 }
  0x97   : > { %v732_v62 = vpop.permute.xlu1 %731  ;;  %v1429_v8 = vsel %vm1351_vm2, %v5167_v40, %v1034_v11 }
  0x98   : > { %v1457_v31 = vsel %vm1372_vm3, %v1429_v8, %v1104_v60 }
  0x99   : > { %4442 = vmatmul.mubr.msk.bf16.gmra.mrb[16].mxu1 %vm1351_vm2, %v1350_v12 }
  0x9b   : > { %v734_v14 = vpop.permute.xlu1 %733 }
  0x9c   : > { %v651_v28 = vpop.permute.xlu0 %650 }
  0x9d   : > { %v1353_v51 = vsel %vm1351_vm2, %v4918_v45, %v651_v28 }
  0x9e   : > { %v1374_v3 = vsel %vm1372_vm3, %v1353_v51, %v732_v62 }
  0x9f   : > { %v653_v21 = vpop.permute.xlu1 %652  ;;  %v1395_v33 = vsel %vm1393_vm4, %v1374_v3, %v802_v44  ;;  %v6516_v3 = vld [vmem:[#allocation6_spill] sm:$0xff] }
  0xa0   : > { %v1272_v7 = vpop.permute.xlu0 %1271  ;;  %v1355_v61 = vsel %vm1351_vm2, %v4921_v47, %v653_v21 }
  0xa1   : > { %v1475_v19 = vsel %vm1393_vm4, %v1455_v9, %v1272_v7  ;;  %v1376_v40 = vsel %vm1372_vm3, %v1355_v61, %v734_v14 }
  0xa2   : > { %1717 = vmatprep.mubr.bf16.mxu0 %v1475_v19 }
  0xa3   : > { %v804_v13 = vpop.permute.xlu1 %803  ;;  %1718 = vmatmul.mubr.bf16.vlgmr.msra.gmra.mrb[0].mxu0 %v1395_v33 }
  0xa4   : > { %v1274_v45 = vpop.permute.xlu0 %1273  ;;  %v1398_v6 = vsel %vm1393_vm4, %v1376_v40, %v804_v13 }
  0xa5   : > { %v1478_v10 = vsel %vm1393_vm4, %v1457_v31, %v1274_v45 }
  0xa6   : > { %1725 = vmatprep.mubr.bf16.mxu0 %v1478_v10 }
  0xa7   : > { %v655_v46 = vpop.permute.xlu1 %654 }
  0xa8   : > { %v1036_v1 = vpop.permute.xlu0 %1035  ;;  %v1357_v5 = vsel %vm1351_vm2, %v4950_v15, %v655_v46  ;;  %v6513_v15 = vld [vmem:[#allocation4_spill] sm:$0xff] }
  0xa9   : > { %v1432_v49 = vsel %vm1351_vm2, %v6512_v0, %v1036_v1  ;;  %v6517_v1 = vld [vmem:[#allocation7_spill] sm:$0xff] }
  0xab   : > { %v736_v18 = vpop.permute.xlu1 %735  ;;  %1726 = vmatmul.mubr.bf16.gmra.mrb[4].mxu0 %v1398_v6 }
  0xac   : > { %v1106_v24 = vpop.permute.xlu0 %1105  ;;  %v1378_v48 = vsel %vm1372_vm3, %v1357_v5, %v736_v18 }
  0xad   : > { %v1459_v47 = vsel %vm1372_vm3, %v1432_v49, %v1106_v24 }
  0xaf   : > { %v806_v34 = vpop.permute.xlu1 %805 }
  0xb0   : > { %v1276_v43 = vpop.permute.xlu0 %1275  ;;  %v1401_v4 = vsel %vm1393_vm4, %v1378_v48, %v806_v34 }
  0xb1   : > { %v1481_v2 = vsel %vm1393_vm4, %v1459_v47, %v1276_v43 }
  0xb2   : > { %1733 = vmatprep.mubr.bf16.mxu0 %v1481_v2 }
  0xb3   : > { %v657_v32 = vpop.permute.xlu1 %656  ;;  %1734 = vmatmul.mubr.bf16.gmra.mrb[8].mxu0 %v1401_v4  ;;  %v6518_v4 = vld [vmem:[#allocation8_spill] sm:$0xff] }
  0xb4   : > { %v1038_v53 = vpop.permute.xlu0 %1037  ;;  %v1359_v60 = vsel %vm1351_vm2, %v6513_v15, %v657_v32 }
  0xb5   : > { %v1435_v16 = vsel %vm1351_vm2, %v6514_v55, %v1038_v53 }
  0xb7   : > { %v738_v39 = vpop.permute.xlu1 %737 }
  0xb8   : > { %v1108_v38 = vpop.permute.xlu0 %1107  ;;  %v1380_v41 = vsel %vm1372_vm3, %v1359_v60, %v738_v39 }
  0xb9   : > { %v1461_v23 = vsel %vm1372_vm3, %v1435_v16, %v1108_v38 }
  0xbb   : > { %v808_v25 = vpop.permute.xlu1 %807 }
  0xbc   : > { %v1278_v22 = vpop.permute.xlu0 %1277  ;;  %v1404_v42 = vsel %vm1393_vm4, %v1380_v41, %v808_v25 }
  0xbd   : > { %v1484_v37 = vsel %vm1393_vm4, %v1461_v23, %v1278_v22  ;;  %v6519_v23 = vld [vmem:[#allocation10_spill] sm:$0xff] }
  0xbe   : > { %1741 = vmatprep.mubr.bf16.mxu0 %v1484_v37 }
  0xbf   : > { %v659_v56 = vpop.permute.xlu1 %658  ;;  %1742 = vmatmul.mubr.bf16.gmra.mrb[12].mxu0 %v1404_v42 }
  0xc0   : > { %v1040_v58 = vpop.permute.xlu0 %1039  ;;  %v1361_v50 = vsel %vm1351_vm2, %v6515_v52, %v659_v56 }
  0xc1   : > { %v1438_v11 = vsel %vm1351_vm2, %v5403_v27, %v1040_v58 }
  0xc3   : > { %v740_v44 = vpop.permute.xlu1 %739 }
  0xc4   : > { %v1110_v54 = vpop.permute.xlu0 %1109  ;;  %v1382_v62 = vsel %vm1372_vm3, %v1361_v50, %v740_v44 }
  0xc5   : > { %v1463_v35 = vsel %vm1372_vm3, %v1438_v11, %v1110_v54  ;;  %v1934_v11 = vld [vmem:[#allocation2] sm:$0x1] }
  0xc7   : > { %v810_v63 = vpop.permute.xlu1 %809 }
  0xc8   : > { %v1280_v29 = vpop.permute.xlu0 %1279  ;;  %v1407_v14 = vsel %vm1393_vm4, %v1382_v62, %v810_v63  ;;  %v1935_v62 = vsel %vm5599_vm7, 0, %v1934_v11 }
  0xc9   : > { %v1487_v28 = vsel %vm1393_vm4, %v1463_v35, %v1280_v29  ;;  %1936 = vst [vmem:[#allocation2] sm:$0x1] %v1935_v62 }
  0xca   : > { %1749 = vmatprep.mubr.bf16.mxu0 %v1487_v28 }
  0xcb   : > { %v661_v12 = vpop.permute.xlu1 %660  ;;  %1750 = vmatmul.mubr.bf16.gmra.mrb[16].mxu0 %v1407_v14  ;;  %v1966_v14 = vld [vmem:[#allocation2 + $0x8] sm:$0x1] }
  0xcc   : > { %v1042_v17 = vpop.permute.xlu0 %1041  ;;  %v1363_v7 = vsel %vm1351_vm2, %v6516_v3, %v661_v12  ;;  %v1967_v28 = vsel %vm5607_vm9, 0, %v1966_v14 }
  0xcd   : > { %v1441_v27 = vsel %vm1351_vm2, %v5448_v36, %v1042_v17  ;;  %1968 = vst [vmem:[#allocation2 + $0x8] sm:$0x1] %v1967_v28 }
  0xcf   : > { %v742_v51 = vpop.permute.xlu1 %741 }
  0xd0   : > { %v1112_v21 = vpop.permute.xlu0 %1111  ;;  %v1384_v8 = vsel %vm1372_vm3, %v1363_v7, %v742_v51 }
  0xd1   : > { %v1465_v19 = vsel %vm1372_vm3, %v1441_v27, %v1112_v21 }
  0xd3   : > { %v812_v9 = vpop.permute.xlu1 %811 }
  0xd4   : > { %v1282_v33 = vpop.permute.xlu0 %1281  ;;  %v1410_v13 = vsel %vm1393_vm4, %v1384_v8, %v812_v9  ;;  %v1937_v8 = vld [vmem:[#allocation2 + $0xc] sm:$0x1] }
  0xd5   : > { %v1490_v45 = vsel %vm1393_vm4, %v1465_v19, %v1282_v33  ;;  %v1969_v19 = vld [vmem:[#allocation2 + $0x14] sm:$0x1]  ;;  %v1940_v33 = vld [vmem:[#allocation2 + $0x18] sm:$0x1] }
  0xd6   : > { %1757 = vmatprep.mubr.bf16.mxu0 %v1490_v45  ;;  %v1972_v45 = vld [vmem:[#allocation2 + $0x20] sm:$0x1] }
  0xd7   : > { %v663_v31 = vpop.permute.xlu1 %662  ;;  %1758 = vmatmul.mubr.bf16.gmra.mrb[20].mxu0 %v1410_v13  ;;  %v1941_v13 = vsel %vm5599_vm7, 0, %v1940_v33 }
  0xd8   : > { %v1044_v10 = vpop.permute.xlu0 %1043  ;;  %v1365_v40 = vsel %vm1351_vm2, %v6517_v1, %v663_v31  ;;  %1942 = vst [vmem:[#allocation2 + $0x18] sm:$0x1] %v1941_v13  ;;  %v1973_v31 = vsel %vm5607_vm9, 0, %v1972_v45 }
  0xd9   : > { %v1444_v36 = vsel %vm1351_vm2, %v5455_v30, %v1044_v10  ;;  %1974 = vst [vmem:[#allocation2 + $0x20] sm:$0x1] %v1973_v31  ;;  %v1943_v10 = vld [vmem:[#allocation2 + $0x24] sm:$0x1] }
  0xdb   : > { %v744_v61 = vpop.permute.xlu1 %743 }
  0xdc   : > { %v1114_v46 = vpop.permute.xlu0 %1113  ;;  %v1386_v18 = vsel %vm1372_vm3, %v1365_v40, %v744_v61  ;;  %v1944_v61 = vsel %vm5599_vm7, 0, %v1943_v10  ;;  %v1946_v40 = vld [vmem:[#allocation2 + $0x30] sm:$0x1] }
  0xdd   : > { %v1467_v24 = vsel %vm1372_vm3, %v1444_v36, %v1114_v46  ;;  %1945 = vst [vmem:[#allocation2 + $0x24] sm:$0x1] %v1944_v61  ;;  %v1975_v46 = vld [vmem:[#allocation2 + $0x2c] sm:$0x1]  ;;  %v1978_v36 = vld [vmem:[#allocation2 + $0x38] sm:$0x1] }
  0xde   : > { %v1976_v1 = vsel %vm5607_vm9, 0, %v1975_v46 }
  0xdf   : > { %v814_v6 = vpop.permute.xlu1 %813  ;;  %1977 = vst [vmem:[#allocation2 + $0x2c] sm:$0x1] %v1976_v1 }
  0xe0   : > { %v1284_v5 = vpop.permute.xlu0 %1283  ;;  %v1413_v34 = vsel %vm1393_vm4, %v1386_v18, %v814_v6  ;;  %v1947_v6 = vsel %vm5599_vm7, 0, %v1946_v40  ;;  %v1979_v18 = vsel %vm5607_vm9, 0, %v1978_v36 }
  0xe1   : > { %v1493_v0 = vsel %vm1393_vm4, %v1467_v24, %v1284_v5  ;;  %1948 = vst [vmem:[#allocation2 + $0x30] sm:$0x1] %v1947_v6  ;;  %1980 = vst [vmem:[#allocation2 + $0x38] sm:$0x1] %v1979_v18  ;;  %v1949_v24 = vld [vmem:[#allocation2 + $0x3c] sm:$0x1] }
  0xe2   : > { %1765 = vmatprep.mubr.bf16.mxu0 %v1493_v0  ;;  %v1950_v5 = vsel %vm5599_vm7, 0, %v1949_v24 }
  0xe3   : > { %v665_v49 = vpop.permute.xlu1 %664  ;;  %1766 = vmatmul.mubr.bf16.gmra.mrb[24].mxu0 %v1413_v34  ;;  %1951 = vst [vmem:[#allocation2 + $0x3c] sm:$0x1] %v1950_v5  ;;  %v1981_v34 = vld [vmem:[#allocation2 + $0x44] sm:$0x1] }
  0xe4   : > { %v1046_v48 = vpop.permute.xlu0 %1045  ;;  %v1367_v2 = vsel %vm1351_vm2, %v6518_v4, %v665_v49  ;;  %v1982_v0 = vsel %vm5607_vm9, 0, %v1981_v34  ;;  %v1952_v49 = vld [vmem:[#allocation2 + $0x48] sm:$0x1]  ;;  %v1955_v4 = vld [vmem:[#allocation2 + $0x54] sm:$0x1] }
  0xe5   : > { %v1447_v30 = vsel %vm1351_vm2, %v5458_v59, %v1046_v48  ;;  %1983 = vst [vmem:[#allocation2 + $0x44] sm:$0x1] %v1982_v0  ;;  %v1953_v48 = vsel %vm5599_vm7, 0, %v1952_v49 }
  0xe6   : > { %1954 = vst [vmem:[#allocation2 + $0x48] sm:$0x1] %v1953_v48  ;;  %v2260_v48 = vld [vmem:[#allocation2] sm:$0xf] }
  0xe7   : > { %v746_v47 = vpop.permute.xlu1 %745 }
  0xe8   : > { %v1116_v43 = vpop.permute.xlu0 %1115  ;;  %v1388_v53 = vsel %vm1372_vm3, %v1367_v2, %v746_v47  ;;  %v1984_v47 = vld [vmem:[#allocation2 + $0x50] sm:$0x1]  ;;  %v1956_v2 = vsel %vm5599_vm7, 0, %v1955_v4 }
  0xe9   : > { %v1469_v39 = vsel %vm1372_vm3, %v1447_v30, %v1116_v43  ;;  %v1985_v43 = vsel %vm5607_vm9, 0, %v1984_v47  ;;  %1957 = vst [vmem:[#allocation2 + $0x54] sm:$0x1] %v1956_v2 }
  0xea   : > { %1986 = vst [vmem:[#allocation2 + $0x50] sm:$0x1] %v1985_v43 }
  0xeb   : > { %v816_v32 = vpop.permute.xlu1 %815 }
  0xec   : > { %v1286_v38 = vpop.permute.xlu0 %1285  ;;  %v1416_v15 = vsel %vm1393_vm4, %v1388_v53, %v816_v32  ;;  %v1987_v32 = vld [vmem:[#allocation2 + $0x5c] sm:$0x1] }
  0xed   : > { %v1496_v60 = vsel %vm1393_vm4, %v1469_v39, %v1286_v38  ;;  %v1988_v30 = vsel %vm5607_vm9, 0, %v1987_v32 }
  0xee   : > { %1773 = vmatprep.mubr.bf16.mxu0 %v1496_v60  ;;  %1989 = vst [vmem:[#allocation2 + $0x5c] sm:$0x1] %v1988_v30  ;;  %v1958_v60 = vld [vmem:[#allocation2 + $0x60] sm:$0x1] }
  0xef   : > { %v667_v25 = vpop.permute.xlu1 %666  ;;  %1774 = vmatmul.mubr.bf16.gmra.mrb[28].mxu0 %v1416_v15 }
  0xf0   : > { %v1048_v55 = vpop.permute.xlu0 %1047  ;;  %v1369_v22 = vsel %vm1351_vm2, %v6519_v23, %v667_v25  ;;  %v1959_v25 = vsel %vm5599_vm7, 0, %v1958_v60 }
  0xf1   : > { %v1450_v59 = vsel %vm1351_vm2, %v5471_v20, %v1048_v55  ;;  %1960 = vst [vmem:[#allocation2 + $0x60] sm:$0x1] %v1959_v25 }
  0xf3   : > { %v748_v16 = vpop.permute.xlu1 %747 }
  0xf4   : > { %v1118_v41 = vpop.permute.xlu0 %1117  ;;  %v1390_v37 = vsel %vm1372_vm3, %v1369_v22, %v748_v16  ;;  %v1990_v16 = vld [vmem:[#allocation2 + $0x68] sm:$0x1] }
  0xf5   : > { %v1471_v56 = vsel %vm1372_vm3, %v1450_v59, %v1118_v41  ;;  %v1991_v23 = vsel %vm5607_vm9, 0, %v1990_v16 }
  0xf6   : > { %1992 = vst [vmem:[#allocation2 + $0x68] sm:$0x1] %v1991_v23 }
  0xf7   : > { %v818_v42 = vpop.permute.xlu1 %817 }
  0xf8   : > { %v1288_v58 = vpop.permute.xlu0 %1287  ;;  %v1419_v44 = vsel %vm1393_vm4, %v1390_v37, %v818_v42 }
  0xf9   : > { %v1499_v54 = vsel %vm1393_vm4, %v1471_v56, %v1288_v58  ;;  %v1961_v56 = vld [vmem:[#allocation2 + $0x6c] sm:$0x1] }
  0xfa   : > { %1781 = vmatprep.mubr.bf16.mxu0 %v1499_v54 }
  0xfb   : > { %v669_v52 = vpop.permute.xlu1 %668  ;;  %1782 = vmatmul.mubr.bf16.gmra.mrb[32].mxu0 %v1419_v44  ;;  %v1962_v44 = vsel %vm5599_vm7, 0, %v1961_v56 }
  0xfc   : > { %v1050_v50 = vpop.permute.xlu0 %1049  ;;  %v1371_v12 = vsel %vm1351_vm2, %v5409_v26, %v669_v52  ;;  %v1938_v26 = vsel %vm5599_vm7, 0, %v1937_v8  ;;  %1963 = vst [vmem:[#allocation2 + $0x6c] sm:$0x1] %v1962_v44  ;;  %v1993_v52 = vld [vmem:[#allocation2 + $0x74] sm:$0x1] }
  0xfd   : > { %v1453_v51 = vsel %vm1351_vm2, %v5480_v57, %v1050_v50  ;;  %1939 = vst [vmem:[#allocation2 + $0xc] sm:$0x1] %v1938_v26  ;;  %v1970_v57 = vsel %vm5607_vm9, 0, %v1969_v19  ;;  %v1994_v50 = vsel %vm5607_vm9, 0, %v1993_v52 }
  0xfe   : > { %1971 = vst [vmem:[#allocation2 + $0x14] sm:$0x1] %v1970_v57  ;;  %1995 = vst [vmem:[#allocation2 + $0x74] sm:$0x1] %v1994_v50 }
  0xff   : > { %v750_v63 = vpop.permute.xlu1 %749 }
 0x100   : > { %v1120_v29 = vpop.permute.xlu0 %1119  ;;  %v1392_v21 = vsel %vm1372_vm3, %v1371_v12, %v750_v63 }
 0x101   : > { %v1473_v3 = vsel %vm1372_vm3, %v1453_v51, %v1120_v29 }
 0x103   : > { %v820_v17 = vpop.permute.xlu1 %819 }
 0x104   : > { %v1290_v7 = vpop.permute.xlu0 %1289  ;;  %v1422_v9 = vsel %vm1393_vm4, %v1392_v21, %v820_v17  ;;  %v5694_v21 = vld [vmem:[%s6475_s2] ss:$0 sm:$0xff] }
 0x105   : > { %v1502_v27 = vsel %vm1393_vm4, %v1473_v3, %v1290_v7 }
 0x106   : > { %1789 = vmatprep.mubr.bf16.mxu0 %v1502_v27 }
 0x107   : > { %1790 = vmatmul.mubr.bf16.gmra.mrb[36].mxu0 %v1422_v9 }
 0x14c   : > { %v4427_v53 = vpop.f32.mrb[0].mxu1 }
 0x14d   : > { %v1832_v39 = vpop.f32.mrb[1].mxu1 }
 0x14e   : > { %v5649_v38 = vpop.f32.mrb[2].mxu1 }
 0x14f   : > { %v1835_v15 = vpop.f32.mrb[3].mxu1 }
 0x154   : > { %v5653_v55 = vpop.f32.mrb[4].mxu1 }
 0x155   : > { %v5655_v41 = vpop.f32.mrb[5].mxu1 }
 0x156   : > { %v5659_v22 = vpop.f32.mrb[6].mxu1 }
 0x157   : > { %v5661_v42 = vpop.f32.mrb[7].mxu1 }
 0x15c   : > { %v5663_v59 = vpop.f32.mrb[8].mxu1 }
 0x15d   : > { %v5665_v37 = vpop.f32.mrb[9].mxu1 }
 0x15e   : > { %v5667_v58 = vpop.f32.mrb[10].mxu1 }
 0x15f   : > { %v5671_v54 = vpop.f32.mrb[11].mxu1 }
 0x164   : > { %v5675_v63 = vpop.f32.mrb[12].mxu1 }
 0x165   : > { %v5677_v11 = vpop.f32.mrb[13].mxu1 }
 0x166   : > { %v5679_v62 = vpop.f32.mrb[14].mxu1 }
 0x167   : > { %v5681_v29 = vpop.f32.mrb[15].mxu1 }
 0x16c   : > { %v5683_v14 = vpop.f32.mrb[16].mxu1 }
 0x16d   : > { %v5685_v28 = vpop.f32.mrb[17].mxu1 }
 0x16e   : > { %v5687_v12 = vpop.f32.mrb[18].mxu1 }
 0x16f   : > { %v5689_v17 = vpop.f32.mrb[19].mxu1 }
 0x176   : > { %v4275_v51 = vpop.f32.mrb[0].mxu0 }
 0x177   : > { %v4276_v35 = vpop.f32.mrb[1].mxu0 }
 0x178   : > { %v4277_v3 = vadd.f32 %v4276_v35, %v4275_v51  ;;  %v4278_v7 = vpop.f32.mrb[2].mxu0 }
 0x179   : > { %v4279_v9 = vpop.f32.mrb[3].mxu0 }
 0x17a   : > { %v4280_v27 = vadd.f32 %v4279_v9, %v4278_v7  ;;  %v1720_v8 = vadd.f32 %v4277_v3, %v5694_v21 }
 0x17c   : > { %v1833_v26 = vadd.f32 %v1832_v39, %v1720_v8  ;;  %v1723_v19 = vadd.f32 %v4280_v27, %v5694_v21 }
 0x17e   : > { %v1911_v57 = vmax.f32 %v1833_v26, 0.0  ;;  %v1836_v33 = vadd.f32 %v1835_v15, %v1723_v19  ;;  %v4281_v13 = vpop.f32.mrb[4].mxu0 }
 0x17f   : > { %v4282_v45 = vpop.f32.mrb[5].mxu0 }
 0x180   : > { %v4200_v31 = vpack.c.bf16 %v1911_v57, %v1911_v57  ;;  %v1912_v10 = vmax.f32 %v1836_v33, 0.0  ;;  %v4283_v61 = vadd.f32 %v4282_v45, %v4281_v13  ;;  %v4284_v46 = vpop.f32.mrb[6].mxu0  ;;  %v2268_v57 = vld [vmem:[#allocation2 + $0xc] sm:$0xf] }
 0x181   : > { %v4285_v1 = vpop.f32.mrb[7].mxu0 }
 0x182   : > { %v2059_v40 = vshrl.u32 %v4200_v31, 16  ;;  %v4201_v6 = vpack.c.bf16 %v1912_v10, %v1912_v10  ;;  %v1728_v36 = vadd.f32 %v4283_v61, %v5694_v21  ;;  %v4286_v18 = vadd.f32 %v4285_v1, %v4284_v46 }
 0x183   : > { %v2062_v5 = vshll.u32 %v4200_v31, 16 }
 0x184   : > { %v2061_v24 = vrot.slane %v2059_v40, 7  ;;  %v2067_v34 = vshrl.u32 %v4201_v6, 16  ;;  %v1841_v0 = vadd.f32 %v4427_v53, %v1728_v36  ;;  %v1731_v47 = vadd.f32 %v4286_v18, %v5694_v21  ;;  %v2265_v53 = vld [vmem:[#allocation2 + $0x8] sm:$0x1]  ;;  %v2272_v36 = vld [vmem:[#allocation2 + $0x14] sm:$0x1] }
 0x185   : > { %v2070_v2 = vshll.u32 %v4201_v6, 16 }
 0x186   : > { %v2064_v43 = vor.u32 %v2062_v5, %v2061_v24  ;;  %v2069_v4 = vrot.slane %v2067_v34, 7  ;;  %v1913_v32 = vmax.f32 %v1841_v0, 0.0  ;;  %v4287_v30 = vpop.f32.mrb[8].mxu0  ;;  %v2065_v39 = vrot.slane %v2061_v24, 4 }
 0x187   : > { %v1844_v60 = vadd.f32 %v5649_v38, %v1731_v47  ;;  %v4288_v25 = vpop.f32.mrb[9].mxu0 }
 0x188   : > { %v2261_v16 = vsel %vm5701_vm12, %v2064_v43, %v2260_v48  ;;  %v2072_v23 = vor.u32 %v2070_v2, %v2069_v4  ;;  %v2074_v56 = vrot.slane %v2069_v4, 4  ;;  %v4202_v44 = vpack.c.bf16 %v1913_v32, %v1913_v32  ;;  %v4290_v52 = vpop.f32.mrb[10].mxu0 }
 0x189   : > { %2262 = vst [vmem:[#allocation2] sm:$0xf] %v2261_v16  ;;  %v1914_v50 = vmax.f32 %v1844_v60, 0.0  ;;  %v4289_v51 = vadd.f32 %v4288_v25, %v4287_v30  ;;  %v4291_v35 = vpop.f32.mrb[11].mxu0 }
 0x18a   : > { %v2073_v3 = vsel %vm5708_vm13, %v2065_v39, %v2072_v23  ;;  %v2266_v7 = vsel %vm5599_vm7, %v2074_v56, %v2265_v53  ;;  %v2076_v9 = vshrl.u32 %v4202_v44, 16  ;;  %v4292_v27 = vadd.f32 %v4291_v35, %v4290_v52  ;;  %v2275_v53 = vld [vmem:[#allocation2 + $0x18] sm:$0xf] }
 0x18b   : > { %2264 = vst.msk [vmem:[#allocation2 + $0x4] sm:$0xf] %vm2258_vm10, %v2073_v3  ;;  %2267 = vst [vmem:[#allocation2 + $0x8] sm:$0x1] %v2266_v7  ;;  %v4203_v38 = vpack.c.bf16 %v1914_v50, %v1914_v50  ;;  %v1736_v8 = vadd.f32 %v4289_v51, %v5694_v21  ;;  %v2079_v19 = vshll.u32 %v4202_v44, 16 }
 0x18c   : > { %v2078_v26 = vrot.slane %v2076_v9, 7  ;;  %v1739_v45 = vadd.f32 %v4292_v27, %v5694_v21  ;;  %v2279_v3 = vld [vmem:[#allocation2 + $0x20] sm:$0x1] }
 0x18d   : > { %v2084_v33 = vshrl.u32 %v4203_v38, 16  ;;  %v1849_v13 = vadd.f32 %v5655_v41, %v1736_v8  ;;  %v2087_v61 = vshll.u32 %v4203_v38, 16 }
 0x18e   : > { %v2081_v31 = vor.u32 %v2079_v19, %v2078_v26  ;;  %v1852_v1 = vadd.f32 %v5661_v42, %v1739_v45  ;;  %v2082_v40 = vrot.slane %v2078_v26, 4 }
 0x18f   : > { %v2086_v10 = vrot.slane %v2084_v33, 7  ;;  %v1915_v46 = vmax.f32 %v1849_v13, 0.0 }
 0x190   : > { %v2269_v6 = vsel %vm5701_vm12, %v2081_v31, %v2268_v57  ;;  %v1916_v34 = vmax.f32 %v1852_v1, 0.0  ;;  %v2282_v1 = vld [vmem:[#allocation2 + $0x24] sm:$0xf] }
 0x191   : > { %2270 = vst [vmem:[#allocation2 + $0xc] sm:$0xf] %v2269_v6  ;;  %v2089_v18 = vor.u32 %v2087_v61, %v2086_v10  ;;  %v2091_v24 = vrot.slane %v2086_v10, 4  ;;  %v4204_v5 = vpack.c.bf16 %v1915_v46, %v1915_v46 }
 0x192   : > { %v4293_v0 = vpop.f32.mrb[12].mxu0  ;;  %v4205_v42 = vpack.c.bf16 %v1916_v34, %v1916_v34  ;;  %v2286_v34 = vld [vmem:[#allocation2 + $0x2c] sm:$0x1] }
 0x193   : > { %v2090_v41 = vsel %vm5708_vm13, %v2082_v40, %v2089_v18  ;;  %v2273_v48 = vsel %vm5599_vm7, %v2091_v24, %v2272_v36  ;;  %v2093_v47 = vshrl.u32 %v4204_v5, 16  ;;  %v4294_v43 = vpop.f32.mrb[13].mxu0  ;;  %v2096_v30 = vshll.u32 %v4204_v5, 16 }
 0x194   : > { %2271 = vst.msk [vmem:[#allocation2 + $0x10] sm:$0xf] %vm2258_vm10, %v2090_v41  ;;  %2274 = vst [vmem:[#allocation2 + $0x14] sm:$0x1] %v2273_v48  ;;  %v4295_v4 = vadd.f32 %v4294_v43, %v4293_v0  ;;  %v4296_v2 = vpop.f32.mrb[14].mxu0  ;;  %v2101_v60 = vshrl.u32 %v4205_v42, 16 }
 0x195   : > { %v2095_v32 = vrot.slane %v2093_v47, 7  ;;  %v4297_v39 = vpop.f32.mrb[15].mxu0  ;;  %v2104_v44 = vshll.u32 %v4205_v42, 16 }
 0x196   : > { %v1744_v25 = vadd.f32 %v4295_v4, %v5694_v21  ;;  %v4298_v16 = vadd.f32 %v4297_v39, %v4296_v2  ;;  %v2103_v56 = vrot.slane %v2101_v60, 7 }
 0x197   : > { %v2098_v23 = vor.u32 %v2096_v30, %v2095_v32  ;;  %v2099_v51 = vrot.slane %v2095_v32, 4 }
 0x198   : > { %v1857_v52 = vadd.f32 %v5653_v55, %v1744_v25  ;;  %v1747_v50 = vadd.f32 %v4298_v16, %v5694_v21  ;;  %v2106_v7 = vor.u32 %v2104_v44, %v2103_v56  ;;  %v2108_v9 = vrot.slane %v2103_v56, 4 }
 0x199   : > { %v2276_v35 = vsel %vm5701_vm12, %v2098_v23, %v2275_v53 }
 0x19a   : > { %2277 = vst [vmem:[#allocation2 + $0x18] sm:$0xf] %v2276_v35  ;;  %v1917_v38 = vmax.f32 %v1857_v52, 0.0  ;;  %v1860_v27 = vadd.f32 %v5659_v22, %v1747_v50  ;;  %v2107_v8 = vsel %vm5708_vm13, %v2099_v51, %v2106_v7  ;;  %v2280_v26 = vsel %vm5599_vm7, %v2108_v9, %v2279_v3  ;;  %v2289_v35 = vld [vmem:[#allocation2 + $0x30] sm:$0xf] }
 0x19b   : > { %2278 = vst.msk [vmem:[#allocation2 + $0x1c] sm:$0xf] %vm2258_vm10, %v2107_v8  ;;  %2281 = vst [vmem:[#allocation2 + $0x20] sm:$0x1] %v2280_v26  ;;  %v2293_v8 = vld [vmem:[#allocation2 + $0x38] sm:$0x1] }
 0x19c   : > { %v4206_v55 = vpack.c.bf16 %v1917_v38, %v1917_v38  ;;  %v1918_v19 = vmax.f32 %v1860_v27, 0.0 }
 0x19e   : > { %v2110_v57 = vshrl.u32 %v4206_v55, 16  ;;  %v4207_v33 = vpack.c.bf16 %v1918_v19, %v1918_v19  ;;  %v4299_v13 = vpop.f32.mrb[16].mxu0  ;;  %v2113_v10 = vshll.u32 %v4206_v55, 16 }
 0x19f   : > { %v4300_v45 = vpop.f32.mrb[17].mxu0 }
 0x1a0   : > { %v2112_v31 = vrot.slane %v2110_v57, 7  ;;  %v2118_v61 = vshrl.u32 %v4207_v33, 16  ;;  %v4301_v46 = vadd.f32 %v4300_v45, %v4299_v13  ;;  %v4302_v22 = vpop.f32.mrb[18].mxu0  ;;  %v2121_v18 = vshll.u32 %v4207_v33, 16 }
 0x1a1   : > { %v4303_v40 = vpop.f32.mrb[19].mxu0 }
 0x1a2   : > { %v2115_v6 = vor.u32 %v2113_v10, %v2112_v31  ;;  %v2120_v36 = vrot.slane %v2118_v61, 7  ;;  %v4304_v24 = vadd.f32 %v4303_v40, %v4302_v22  ;;  %v2116_v5 = vrot.slane %v2112_v31, 4 }
 0x1a3   : > { %v1752_v0 = vadd.f32 %v4301_v46, %v5694_v21 }
 0x1a4   : > { %v2283_v41 = vsel %vm5701_vm12, %v2115_v6, %v2282_v1  ;;  %v2123_v48 = vor.u32 %v2121_v18, %v2120_v36  ;;  %v2125_v47 = vrot.slane %v2120_v36, 4  ;;  %v1755_v43 = vadd.f32 %v4304_v24, %v5694_v21 }
 0x1a5   : > { %2284 = vst [vmem:[#allocation2 + $0x24] sm:$0xf] %v2283_v41  ;;  %v1865_v42 = vadd.f32 %v5665_v37, %v1752_v0 }
 0x1a6   : > { %v2124_v4 = vsel %vm5708_vm13, %v2116_v5, %v2123_v48  ;;  %v2287_v2 = vsel %vm5599_vm7, %v2125_v47, %v2286_v34  ;;  %v1868_v32 = vadd.f32 %v5671_v54, %v1755_v43  ;;  %v2296_v34 = vld [vmem:[#allocation2 + $0x3c] sm:$0xf] }
 0x1a7   : > { %2285 = vst.msk [vmem:[#allocation2 + $0x28] sm:$0xf] %vm2258_vm10, %v2124_v4  ;;  %2288 = vst [vmem:[#allocation2 + $0x2c] sm:$0x1] %v2287_v2  ;;  %v1919_v30 = vmax.f32 %v1865_v42, 0.0 }
 0x1a8   : > { %v1920_v39 = vmax.f32 %v1868_v32, 0.0  ;;  %v2300_v42 = vld [vmem:[#allocation2 + $0x44] sm:$0x1] }
 0x1a9   : > { %v4208_v53 = vpack.c.bf16 %v1919_v30, %v1919_v30 }
 0x1aa   : > { %v4209_v60 = vpack.c.bf16 %v1920_v39, %v1920_v39  ;;  %v4305_v25 = vpop.f32.mrb[20].mxu0 }
 0x1ab   : > { %v2127_v16 = vshrl.u32 %v4208_v53, 16  ;;  %v4306_v23 = vpop.f32.mrb[21].mxu0  ;;  %v2130_v50 = vshll.u32 %v4208_v53, 16 }
 0x1ac   : > { %v2135_v56 = vshrl.u32 %v4209_v60, 16  ;;  %v4307_v37 = vadd.f32 %v4306_v23, %v4305_v25  ;;  %v4308_v44 = vpop.f32.mrb[22].mxu0  ;;  %v2138_v7 = vshll.u32 %v4209_v60, 16 }
 0x1ad   : > { %v2129_v52 = vrot.slane %v2127_v16, 7  ;;  %v4309_v51 = vpop.f32.mrb[23].mxu0 }
 0x1ae   : > { %v2137_v3 = vrot.slane %v2135_v56, 7  ;;  %v1760_v54 = vadd.f32 %v4307_v37, %v5694_v21  ;;  %v4310_v9 = vadd.f32 %v4309_v51, %v4308_v44 }
 0x1af   : > { %v2132_v38 = vor.u32 %v2130_v50, %v2129_v52  ;;  %v2133_v27 = vrot.slane %v2129_v52, 4 }
 0x1b0   : > { %v2140_v26 = vor.u32 %v2138_v7, %v2137_v3  ;;  %v2142_v55 = vrot.slane %v2137_v3, 4  ;;  %v1873_v19 = vadd.f32 %v5663_v59, %v1760_v54  ;;  %v1763_v57 = vadd.f32 %v4310_v9, %v5694_v21 }
 0x1b1   : > { %v2290_v33 = vsel %vm5701_vm12, %v2132_v38, %v2289_v35  ;;  %v2303_v38 = vld [vmem:[#allocation2 + $0x48] sm:$0xf] }
 0x1b2   : > { %2291 = vst [vmem:[#allocation2 + $0x30] sm:$0xf] %v2290_v33  ;;  %v2141_v13 = vsel %vm5708_vm13, %v2133_v27, %v2140_v26  ;;  %v2294_v45 = vsel %vm5599_vm7, %v2142_v55, %v2293_v8  ;;  %v1921_v31 = vmax.f32 %v1873_v19, 0.0  ;;  %v1876_v10 = vadd.f32 %v5667_v58, %v1763_v57  ;;  %v2307_v57 = vld [vmem:[#allocation2 + $0x50] sm:$0x1] }
 0x1b3   : > { %2292 = vst.msk [vmem:[#allocation2 + $0x34] sm:$0xf] %vm2258_vm10, %v2141_v13  ;;  %2295 = vst [vmem:[#allocation2 + $0x38] sm:$0x1] %v2294_v45 }
 0x1b4   : > { %v4210_v61 = vpack.c.bf16 %v1921_v31, %v1921_v31  ;;  %v1922_v59 = vmax.f32 %v1876_v10, 0.0 }
 0x1b6   : > { %v2144_v46 = vshrl.u32 %v4210_v61, 16  ;;  %v4211_v22 = vpack.c.bf16 %v1922_v59, %v1922_v59  ;;  %v4311_v1 = vpop.f32.mrb[24].mxu0  ;;  %v2147_v36 = vshll.u32 %v4210_v61, 16 }
 0x1b7   : > { %v4312_v40 = vpop.f32.mrb[25].mxu0 }
 0x1b8   : > { %v2146_v6 = vrot.slane %v2144_v46, 7  ;;  %v2152_v18 = vshrl.u32 %v4211_v22, 16  ;;  %v4313_v24 = vadd.f32 %v4312_v40, %v4311_v1  ;;  %v4314_v5 = vpop.f32.mrb[26].mxu0  ;;  %v2155_v47 = vshll.u32 %v4211_v22, 16 }
 0x1b9   : > { %v4315_v0 = vpop.f32.mrb[27].mxu0 }
 0x1ba   : > { %v2149_v41 = vor.u32 %v2147_v36, %v2146_v6  ;;  %v2154_v48 = vrot.slane %v2152_v18, 7  ;;  %v4316_v58 = vadd.f32 %v4315_v0, %v4314_v5  ;;  %v2150_v43 = vrot.slane %v2146_v6, 4 }
 0x1bb   : > { %v1768_v4 = vadd.f32 %v4313_v24, %v5694_v21 }
 0x1bc   : > { %v2297_v2 = vsel %vm5701_vm12, %v2149_v41, %v2296_v34  ;;  %v2157_v32 = vor.u32 %v2155_v47, %v2154_v48  ;;  %v2159_v30 = vrot.slane %v2154_v48, 4  ;;  %v1771_v39 = vadd.f32 %v4316_v58, %v5694_v21  ;;  %v2310_v48 = vld [vmem:[#allocation2 + $0x54] sm:$0xf] }
 0x1bd   : > { %2298 = vst [vmem:[#allocation2 + $0x3c] sm:$0xf] %v2297_v2  ;;  %v1881_v53 = vadd.f32 %v5677_v11, %v1768_v4  ;;  %v2314_v2 = vld [vmem:[#allocation2 + $0x5c] sm:$0x1] }
 0x1be   : > { %v2158_v60 = vsel %vm5708_vm13, %v2150_v43, %v2157_v32  ;;  %v2301_v25 = vsel %vm5599_vm7, %v2159_v30, %v2300_v42  ;;  %v1884_v16 = vadd.f32 %v5681_v29, %v1771_v39 }
 0x1bf   : > { %2299 = vst.msk [vmem:[#allocation2 + $0x40] sm:$0xf] %vm2258_vm10, %v2158_v60  ;;  %2302 = vst [vmem:[#allocation2 + $0x44] sm:$0x1] %v2301_v25  ;;  %v1923_v23 = vmax.f32 %v1881_v53, 0.0 }
 0x1c0   : > { %v1924_v56 = vmax.f32 %v1884_v16, 0.0 }
 0x1c1   : > { %v4212_v37 = vpack.c.bf16 %v1923_v23, %v1923_v23 }
 0x1c2   : > { %v4213_v44 = vpack.c.bf16 %v1924_v56, %v1924_v56  ;;  %v4317_v52 = vpop.f32.mrb[28].mxu0 }
 0x1c3   : > { %v2161_v50 = vshrl.u32 %v4212_v37, 16  ;;  %v4318_v51 = vpop.f32.mrb[29].mxu0  ;;  %v2164_v54 = vshll.u32 %v4212_v37, 16 }
 0x1c4   : > { %v2169_v35 = vshrl.u32 %v4213_v44, 16  ;;  %v4319_v11 = vadd.f32 %v4318_v51, %v4317_v52  ;;  %v4320_v3 = vpop.f32.mrb[30].mxu0  ;;  %v2172_v8 = vshll.u32 %v4213_v44, 16 }
 0x1c5   : > { %v2163_v7 = vrot.slane %v2161_v50, 7  ;;  %v4321_v9 = vpop.f32.mrb[31].mxu0 }
 0x1c6   : > { %v2171_v27 = vrot.slane %v2169_v35, 7  ;;  %v1776_v29 = vadd.f32 %v4319_v11, %v5694_v21  ;;  %v4322_v26 = vadd.f32 %v4321_v9, %v4320_v3 }
 0x1c7   : > { %v2166_v55 = vor.u32 %v2164_v54, %v2163_v7  ;;  %v2167_v19 = vrot.slane %v2163_v7, 4 }
 0x1c8   : > { %v2174_v33 = vor.u32 %v2172_v8, %v2171_v27  ;;  %v2176_v13 = vrot.slane %v2171_v27, 4  ;;  %v1889_v45 = vadd.f32 %v5675_v63, %v1776_v29  ;;  %v1779_v31 = vadd.f32 %v4322_v26, %v5694_v21  ;;  %v2317_v27 = vld [vmem:[#allocation2 + $0x60] sm:$0xf] }
 0x1c9   : > { %v2304_v10 = vsel %vm5701_vm12, %v2166_v55, %v2303_v38 }
 0x1ca   : > { %2305 = vst [vmem:[#allocation2 + $0x48] sm:$0xf] %v2304_v10  ;;  %v2175_v61 = vsel %vm5708_vm13, %v2167_v19, %v2174_v33  ;;  %v2308_v59 = vsel %vm5599_vm7, %v2176_v13, %v2307_v57  ;;  %v1925_v46 = vmax.f32 %v1889_v45, 0.0  ;;  %v1892_v22 = vadd.f32 %v5679_v62, %v1779_v31  ;;  %v2321_v57 = vld [vmem:[#allocation2 + $0x68] sm:$0x1] }
 0x1cb   : > { %2306 = vst.msk [vmem:[#allocation2 + $0x4c] sm:$0xf] %vm2258_vm10, %v2175_v61  ;;  %2309 = vst [vmem:[#allocation2 + $0x50] sm:$0x1] %v2308_v59 }
 0x1cc   : > { %v4214_v1 = vpack.c.bf16 %v1925_v46, %v1925_v46  ;;  %v1926_v63 = vmax.f32 %v1892_v22, 0.0 }
 0x1ce   : > { %v2178_v40 = vshrl.u32 %v4214_v1, 16  ;;  %v4215_v6 = vpack.c.bf16 %v1926_v63, %v1926_v63  ;;  %v4323_v36 = vpop.f32.mrb[32].mxu0  ;;  %v2181_v5 = vshll.u32 %v4214_v1, 16 }
 0x1cf   : > { %v4324_v18 = vpop.f32.mrb[33].mxu0 }
 0x1d0   : > { %v2180_v24 = vrot.slane %v2178_v40, 7  ;;  %v2186_v34 = vshrl.u32 %v4215_v6, 16  ;;  %v4325_v0 = vadd.f32 %v4324_v18, %v4323_v36  ;;  %v4326_v41 = vpop.f32.mrb[34].mxu0  ;;  %v2189_v42 = vshll.u32 %v4215_v6, 16  ;;  %v2324_v18 = vld [vmem:[#allocation2 + $0x6c] sm:$0xf] }
 0x1d1   : > { %v4327_v47 = vpop.f32.mrb[35].mxu0 }
 0x1d2   : > { %v2183_v58 = vor.u32 %v2181_v5, %v2180_v24  ;;  %v2188_v43 = vrot.slane %v2186_v34, 7  ;;  %v4328_v62 = vadd.f32 %v4327_v47, %v4326_v41  ;;  %v2184_v4 = vrot.slane %v2180_v24, 4 }
 0x1d3   : > { %v1784_v32 = vadd.f32 %v4325_v0, %v5694_v21  ;;  %v2328_v0 = vld [vmem:[#allocation2 + $0x74] sm:$0x1] }
 0x1d4   : > { %v2311_v30 = vsel %vm5701_vm12, %v2183_v58, %v2310_v48  ;;  %v2191_v39 = vor.u32 %v2189_v42, %v2188_v43  ;;  %v2193_v53 = vrot.slane %v2188_v43, 4  ;;  %v1787_v60 = vadd.f32 %v4328_v62, %v5694_v21 }
 0x1d5   : > { %2312 = vst [vmem:[#allocation2 + $0x54] sm:$0xf] %v2311_v30  ;;  %v1897_v25 = vadd.f32 %v5685_v28, %v1784_v32  ;;  %v4757_v42 = vmov (!%p4096_p7), 0  }
 0x1d6   : > { %v2192_v16 = vsel %vm5708_vm13, %v2184_v4, %v2191_v39  ;;  %v2315_v23 = vsel %vm5599_vm7, %v2193_v53, %v2314_v2  ;;  %v1900_v56 = vadd.f32 %v5689_v17, %v1787_v60  ;;  %2335 = vst.msk [vmem:[#allocation2] sm:$0xf] (!%p4096_p7), %vm2258_vm10, %v4757_v42  ;;  %2336 = vst.msk [vmem:[#allocation2 + $0x4] sm:$0xf] (!%p4096_p7), %vm2258_vm10, %v4757_v42 }
 0x1d7   : > { %2313 = vst.msk [vmem:[#allocation2 + $0x58] sm:$0xf] %vm2258_vm10, %v2192_v16  ;;  %2316 = vst [vmem:[#allocation2 + $0x5c] sm:$0x1] %v2315_v23  ;;  %v1927_v37 = vmax.f32 %v1897_v25, 0.0 }
 0x1d8   : > { %v1928_v44 = vmax.f32 %v1900_v56, 0.0  ;;  %2338 = vst.msk [vmem:[#allocation2 + $0x8] sm:$0x1] (!%p4096_p7), %vm1931_vm5, %v4757_v42 }
 0x1d9   : > { %v4216_v52 = vpack.c.bf16 %v1927_v37, %v1927_v37 }
 0x1da   : > { %v4217_v50 = vpack.c.bf16 %v1928_v44, %v1928_v44  ;;  %v4329_v51 = vpop.f32.mrb[36].mxu0 }
 0x1db   : > { %v2195_v35 = vshrl.u32 %v4216_v52, 16  ;;  %v4330_v11 = vpop.f32.mrb[37].mxu0  ;;  %v2198_v9 = vshll.u32 %v4216_v52, 16 }
 0x1dc   : > { %v2203_v3 = vshrl.u32 %v4217_v50, 16  ;;  %v4331_v28 = vadd.f32 %v4330_v11, %v4329_v51  ;;  %v4332_v7 = vpop.f32.mrb[38].mxu0  ;;  %v2206_v29 = vshll.u32 %v4217_v50, 16 }
 0x1dd   : > { %v2197_v54 = vrot.slane %v2195_v35, 7  ;;  %v4333_v38 = vpop.f32.mrb[39].mxu0 }
 0x1de   : > { %v2205_v8 = vrot.slane %v2203_v3, 7  ;;  %v1792_v17 = vadd.f32 %v4331_v28, %v5694_v21  ;;  %v4334_v26 = vadd.f32 %v4333_v38, %v4332_v7 }
 0x1df   : > { %v2200_v55 = vor.u32 %v2198_v9, %v2197_v54  ;;  %v2201_v19 = vrot.slane %v2197_v54, 4 }
 0x1e0   : > { %v2208_v33 = vor.u32 %v2206_v29, %v2205_v8  ;;  %v2210_v13 = vrot.slane %v2205_v8, 4  ;;  %v1905_v45 = vadd.f32 %v5683_v14, %v1792_v17  ;;  %v1795_v31 = vadd.f32 %v4334_v26, %v5694_v21 }
 0x1e1   : > { %v2318_v10 = vsel %vm5701_vm12, %v2200_v55, %v2317_v27 }
 0x1e2   : > { %2319 = vst [vmem:[#allocation2 + $0x60] sm:$0xf] %v2318_v10  ;;  %v2209_v61 = vsel %vm5708_vm13, %v2201_v19, %v2208_v33  ;;  %v2322_v59 = vsel %vm5599_vm7, %v2210_v13, %v2321_v57  ;;  %v1929_v46 = vmax.f32 %v1905_v45, 0.0  ;;  %v1908_v22 = vadd.f32 %v5687_v12, %v1795_v31 }
 0x1e3   : > { %2320 = vst.msk [vmem:[#allocation2 + $0x64] sm:$0xf] %vm2258_vm10, %v2209_v61  ;;  %2323 = vst [vmem:[#allocation2 + $0x68] sm:$0x1] %v2322_v59 }
 0x1e4   : > { %v4218_v1 = vpack.c.bf16 %v1929_v46, %v1929_v46  ;;  %v1930_v14 = vmax.f32 %v1908_v22, 0.0 }
 0x1e6   : > { %v2212_v63 = vshrl.u32 %v4218_v1, 16  ;;  %v4219_v21 = vpack.c.bf16 %v1930_v14, %v1930_v14  ;;  %v2215_v6 = vshll.u32 %v4218_v1, 16 }
 0x1e8   : > { %v2214_v40 = vrot.slane %v2212_v63, 7  ;;  %v2220_v36 = vshrl.u32 %v4219_v21, 16  ;;  %v2223_v34 = vshll.u32 %v4219_v21, 16 }
 0x1e9   : > { %2334 = sbr.rel (%p4096_p7) target bundleno = 496 (0x1f0), region = 48 }
 0x1ea   : > { %v2217_v24 = vor.u32 %v2215_v6, %v2214_v40  ;;  %v2222_v5 = vrot.slane %v2220_v36, 7  ;;  %v2218_v41 = vrot.slane %v2214_v40, 4 }
 0x1ec   : > { %v2325_v48 = vsel %vm5701_vm12, %v2217_v24, %v2324_v18  ;;  %v2225_v12 = vor.u32 %v2223_v34, %v2222_v5  ;;  %v2227_v47 = vrot.slane %v2222_v5, 4 }
 0x1ed   : > { %2326 = vst [vmem:[#allocation2 + $0x6c] sm:$0xf] %v2325_v48 }
 0x1ee   : > { %v2226_v58 = vsel %vm5708_vm13, %v2218_v41, %v2225_v12  ;;  %v2329_v43 = vsel %vm5599_vm7, %v2227_v47, %v2328_v0 }
 0x1ef   : > { %2327 = vst.msk [vmem:[#allocation2 + $0x70] sm:$0xf] %vm2258_vm10, %v2226_v58  ;;  %2330 = vst [vmem:[#allocation2 + $0x74] sm:$0x1] %v2329_v43 }
 0x1f0 PF: > { %p4097_p8 = scmp.ne.s32.totalorder %s4736_s21, 1 }
 0x1f1   : > { %v4758_v49 = vmov (!%p4097_p8), 0  }
 0x1f2   : > { %2342 = sbr.rel (%p4097_p8) target bundleno = 505 (0x1f9), region = 52  ;;  %2344 = vst.msk [vmem:[#allocation2 + $0x6c] sm:$0xf] (!%p4097_p8), %vm2258_vm10, %v4758_v49  ;;  %2345 = vst.msk [vmem:[#allocation2 + $0x70] sm:$0xf] (!%p4097_p8), %vm2258_vm10, %v4758_v49 }
 0x1f3   : > { %2347 = vst.msk [vmem:[#allocation2 + $0x74] sm:$0x1] (!%p4097_p8), %vm1931_vm5, %v4758_v49 }
 0x1f9 PF: > { %v2414_v20 = vld [vmem:[#allocation2 + $0x18] sm:$0xf]  ;;  %v5823_v15 = vld [vmem:[#allocation2 + $0x1c] sm:$0xf]  ;;  %v2382_v62 = vld [vmem:[#allocation2 + $0x10] sm:$0xf] }
 0x1fa   : > { %v4146_v4 = vcombine.low %v2414_v20, %v5823_v15  ;;  %v2405_v2 = vld [vmem:[#allocation2 + $0xc] sm:$0xe]  ;;  %v2349_v32 = vld [vmem:[#allocation2 + $0x4] sm:$0xf]  ;;  %v2372_v60 = vld [vmem:[#allocation2] sm:$0xe] }
 0x1fb   : > { %v5826_v30 = vld [vmem:[#allocation2 + $0x14] ss:$0 sps:$4 sm:$0x11]   ;;  %v4138_v39 = vcombine.low %v2405_v2, %v2382_v62  ;;  %v4689_v53 = vld [vmem:[%s6476_s3 + $0x40] sm:$0xff]   ;;  %v4114_v37 = vcombine.low %v2372_v60, %v2349_v32  ;;  %v2381_v52 = vld [vmem:[#allocation2 + $0xc] sm:$0xf] }
 0x1fc   : > { %2966 = vrot.lane.b32.xlu1 %v4146_v4, %s4754_s14  ;;  %v4627_v25 = vld [vmem:[#allocation2 + $0x8] ss:$0 sps:$4 sm:$0x11]   ;;  %v3007_v16 = vshrl.u32 %v4146_v4, 16  ;;  %v2887_v56 = vrot.slane %v5826_v30, 1  ;;  %4347 = vmatprep.subr.bf16.mxu1 %v4689_v53  ;;  %v3009_v54 = vshll.u32 %v4146_v4, 16  ;;  %v5854_v45 = vcombine.low %v2381_v52, %v2382_v62 }
 0x1fd   : > { %v2886_v23 = vrot.slane %v4138_v39, 1  ;;  %v2348_v44 = vld [vmem:[#allocation2] sm:$0xf]  ;;  %v2647_v50 = vrot.slane %v4627_v25, 1  ;;  %v2518_v35 = vshll.u32 %v4627_v25, 16  ;;  %v2646_v28 = vrot.slane %v4114_v37, 1 }
 0x1fe   : > { %v5833_v51 = vcombine.low %v2348_v44, %v2349_v32  ;;  %v2350_v11 = vld [vmem:[#allocation2 + $0xc] sm:$0xf]  ;;  %v5836_v7 = vld [vmem:[#allocation2 + $0x20] ss:$0 sps:$4 sm:$0x11]   ;;  %v3011_v55 = vrot.slane %v3009_v54, 1 }
 0x1ff   : > { %v2888_v3 = vsel %vm700_vm0, %v2886_v23, %v2887_v56  ;;  %v4690_v9 = vld [vmem:[%s6476_s3] sm:$0xff]   ;;  %v2520_v8 = vrot.slane %v2518_v35, 1  ;;  %v2351_v29 = vld [vmem:[#allocation2 + $0x10] sm:$0xf]  ;;  %v4691_v17 = vld [vmem:[%s6476_s3 + $0x48] sm:$0xff]   ;;  %v2648_v26 = vsel %vm700_vm0, %v2646_v28, %v2647_v50  ;;  %v3014_v19 = vshll.u32 %v5836_v7, 16 }
 0x200   : > { %6528 = vst [vmem:[#allocation9_spill] sm:$0xff] %v5833_v51  ;;  %2910 = vrot.lane.b32.xlu0 %v2888_v3, %s4755_s19  ;;  %v2511_v38 = vshrl.u32 %v5833_v51, 16  ;;  %v2513_v27 = vshll.u32 %v5833_v51, 16  ;;  %v5849_v57 = vcombine.low %v2350_v11, %v2351_v29  ;;  %v5851_v33 = vld [vmem:[#allocation2 + $0x1c] sm:$0xf]  ;;  %4348 = vmatpush3.bf16.msra.mxu1 %v4690_v9  ;;  %v4692_v22 = vld [vmem:[%s6476_s3 + $0x8] sm:$0xff]   ;;  %v3012_v14 = vor.u32 %v3011_v55, %v3007_v16 }
 0x201   : > { %2670 = vrot.lane.b32.xlu1 %v2648_v26, %s4754_s14  ;;  %v4633_v31 = vld [vmem:[#allocation2 + $0x14] ss:$0 sps:$4 sm:$0x11]   ;;  %4349 = vmatprep.subr.bf16.mxu1 %v4691_v17  ;;  %v3016_v10 = vrot.slane %v3014_v19, 1  ;;  %v2406_v46 = vld [vmem:[#allocation2 + $0x18] sm:$0xe] }
 0x202   : > { %6529 = vst [vmem:[#allocation4_spill] sm:$0xff] %v5849_v57  ;;  %v2515_v13 = vrot.slane %v2513_v27, 1  ;;  %v2523_v61 = vshrl.u32 %v5849_v57, 16  ;;  %v2525_v59 = vshll.u32 %v5849_v57, 16  ;;  %v2530_v63 = vshll.u32 %v4633_v31, 16  ;;  %v4693_v47 = vld [vmem:[%s6476_s3 + $0x50] sm:$0xff]  }
 0x203   : > { %v5861_v21 = vld [vmem:[#allocation2 + $0x20] ss:$0 sps:$4 sm:$0x11]   ;;  %v4139_v40 = vcombine.low %v2406_v46, %v5851_v33  ;;  %v2373_v6 = vld [vmem:[#allocation2 + $0xc] sm:$0xe]  ;;  %v2650_v24 = vrot.slane %v4633_v31, 1  ;;  %v3017_v20 = vsel %vm529_vm1, %v3012_v14, %v3016_v10 }
 0x204   : > { %v2516_v1 = vor.u32 %v2515_v13, %v2511_v38  ;;  %v2527_v36 = vrot.slane %v2525_v59, 1  ;;  %v4115_v18 = vcombine.low %v2373_v6, %v2351_v29  ;;  %v2416_v5 = vld [vmem:[#allocation2 + $0x24] sm:$0xf]  ;;  %v5864_v34 = vld [vmem:[#allocation2 + $0x28] sm:$0xf]  ;;  %4350 = vmatpush3.bf16.msra.mxu1 %v4692_v22  ;;  %v2532_v41 = vrot.slane %v2530_v63, 1 }
 0x205   : > { %2726 = vrot.lane.b32.xlu1 %v5854_v45, %s4756_s20  ;;  %v2889_v48 = vrot.slane %v4139_v40, 1  ;;  %v2890_v12 = vrot.slane %v5861_v21, 1  ;;  %v4147_v42 = vcombine.low %v2416_v5, %v5864_v34  ;;  %v5875_v49 = vld [vmem:[#allocation2 + $0x2c] ss:$0 sps:$4 sm:$0x11]   ;;  %4351 = vmatprep.subr.bf16.mxu1 %v4693_v47  ;;  %v4694_v53 = vld [vmem:[%s6476_s3 + $0x10] sm:$0xff]  }
 0x206   : > { %v2521_v0 = vsel %vm529_vm1, %v2516_v1, %v2520_v8  ;;  %v2528_v58 = vor.u32 %v2527_v36, %v2523_v61  ;;  %v2649_v43 = vrot.slane %v4115_v18, 1  ;;  %v2352_v62 = vld [vmem:[#allocation2 + $0x18] sm:$0xf]  ;;  %v2353_v4 = vld [vmem:[#allocation2 + $0x1c] sm:$0xf]  ;;  %v3026_v60 = vshll.u32 %v5875_v49, 16 }
 0x207   : > { %2606 = vrot.lane.b32.xlu0 %v2521_v0, %s4755_s19  ;;  %v3021_v32 = vshll.u32 %v4147_v42, 16  ;;  %v5879_v39 = vld [vmem:[#allocation2 + $0x20] ss:$0 sps:$4 sm:$0x11]   ;;  %v5886_v25 = vcombine.low %v2352_v62, %v2353_v4  ;;  %v4695_v16 = vld [vmem:[%s6476_s3 + $0x58] sm:$0xff]   ;;  %v2891_v23 = vsel %vm700_vm0, %v2889_v48, %v2890_v12  ;;  %v3019_v50 = vshrl.u32 %v4147_v42, 16 }
 0x208   : > { %v2533_v2 = vsel %vm529_vm1, %v2528_v58, %v2532_v41  ;;  %v2651_v56 = vsel %vm700_vm0, %v2649_v43, %v2650_v24  ;;  %v2383_v37 = vld [vmem:[#allocation2 + $0x18] sm:$0xf]  ;;  %v2542_v44 = vshll.u32 %v5879_v39, 16  ;;  %v5895_v52 = vld [vmem:[#allocation2 + $0x28] sm:$0xf]  ;;  %4352 = vmatpush3.bf16.msra.mxu1 %v4694_v53  ;;  %v3028_v8 = vrot.slane %v3026_v60, 1 }
 0x209   : > { %2608 = vrot.lane.b32.xlu1 %v2533_v2, %s4755_s19  ;;  %6530 = vst [vmem:[#allocation11_spill] sm:$0xff] %v5886_v25  ;;  %v3023_v35 = vrot.slane %v3021_v32, 1  ;;  %v2535_v11 = vshrl.u32 %v5886_v25, 16  ;;  %v2537_v3 = vshll.u32 %v5886_v25, 16  ;;  %v2374_v28 = vld [vmem:[#allocation2 + $0x18] sm:$0xe]  ;;  %4353 = vmatprep.subr.bf16.mxu1 %v4695_v16  ;;  %v5903_v27 = vcombine.low %v2383_v37, %v5851_v33 }
 0x20a   : > { %v2407_v54 = vld [vmem:[#allocation2 + $0x24] sm:$0xe]  ;;  %v2418_v9 = vld [vmem:[#allocation2 + $0x30] sm:$0xf]  ;;  %v5899_v38 = vld [vmem:[#allocation2 + $0x34] sm:$0xf]  ;;  %v4116_v19 = vcombine.low %v2374_v28, %v2353_v4 }
 0x20b   : > { %3102 = vrot.lane.b32.xlu0 %v3017_v20, %s4756_s20  ;;  %v2539_v29 = vrot.slane %v2537_v3, 1  ;;  %v4696_v17 = vld [vmem:[%s6476_s3 + $0x18] sm:$0xff]   ;;  %v2544_v26 = vrot.slane %v2542_v44, 1  ;;  %v5909_v55 = vld [vmem:[#allocation2 + $0x2c] ss:$0 sps:$4 sm:$0x11]   ;;  %v3024_v13 = vor.u32 %v3023_v35, %v3019_v50  ;;  %v4140_v10 = vcombine.low %v2407_v54, %v5895_v52 }
 0x20c   : > { %v5913_v61 = vcombine.low %v2418_v9, %v5899_v38  ;;  %v2354_v33 = vld [vmem:[#allocation2 + $0x24] sm:$0xf]  ;;  %v2355_v59 = vld [vmem:[#allocation2 + $0x28] sm:$0xf]  ;;  %4354 = vmatpush3.bf16.msra.mxu1 %v4696_v17  ;;  %v2653_v46 = vrot.slane %v5879_v39, 1  ;;  %v2652_v6 = vrot.slane %v4116_v19, 1 }
 0x20d   : > { %2672 = vrot.lane.b32.xlu1 %v2651_v56, %s4754_s14  ;;  %v2540_v31 = vor.u32 %v2539_v29, %v2535_v11  ;;  %v5916_v22 = vld [vmem:[#allocation2 + $0x38] ss:$0 sps:$4 sm:$0x11]   ;;  %v5918_v1 = vcombine.low %v2354_v33, %v2355_v59  ;;  %v5922_v14 = vld [vmem:[#allocation2 + $0x2c] ss:$0 sps:$4 sm:$0x11]   ;;  %v3029_v5 = vsel %vm529_vm1, %v3024_v13, %v3028_v8 }
 0x20e   : > { %v4697_v63 = vld [vmem:[%s6476_s3 + $0x60] sm:$0xff]   ;;  %v5930_v18 = vld [vmem:[#allocation2 + $0x34] sm:$0xf]  ;;  %v2408_v24 = vld [vmem:[#allocation2 + $0x30] sm:$0xe]  ;;  %v2892_v0 = vrot.slane %v4140_v10, 1  ;;  %v2654_v39 = vsel %vm700_vm0, %v2652_v6, %v2653_v46 }
 0x20f   : > { %2912 = vrot.lane.b32.xlu0 %v2891_v23, %s4755_s19  ;;  %6531 = vst [vmem:[#allocation5_spill] sm:$0xff] %v5918_v1  ;;  %v2545_v40 = vsel %vm529_vm1, %v2540_v31, %v2544_v26  ;;  %v2549_v36 = vshll.u32 %v5918_v1, 16  ;;  %v2893_v41 = vrot.slane %v5909_v55, 1  ;;  %v3033_v48 = vshll.u32 %v5913_v61, 16  ;;  %v2375_v12 = vld [vmem:[#allocation2 + $0x24] sm:$0xe]  ;;  %4355 = vmatprep.subr.bf16.mxu1 %v4697_v63 }
 0x210   : > { %v2385_v47 = vld [vmem:[#allocation2 + $0x24] sm:$0xf]  ;;  %v3038_v58 = vshll.u32 %v5916_v22, 16  ;;  %v2547_v43 = vshrl.u32 %v5918_v1, 16  ;;  %v5937_v20 = vld [vmem:[#allocation2 + $0x40] sm:$0xf]  ;;  %v4141_v2 = vcombine.low %v2408_v24, %v5930_v18  ;;  %v4117_v60 = vcombine.low %v2375_v12, %v2355_v59 }
 0x211   : > { %2728 = vrot.lane.b32.xlu1 %v5903_v27, %s4756_s20  ;;  %v2554_v62 = vshll.u32 %v5922_v14, 16  ;;  %v5941_v4 = vld [vmem:[#allocation2 + $0x38] ss:$0 sps:$4 sm:$0x11]   ;;  %v2551_v53 = vrot.slane %v2549_v36, 1  ;;  %v2894_v56 = vsel %vm700_vm0, %v2892_v0, %v2893_v41  ;;  %v3031_v37 = vshrl.u32 %v5913_v61, 16 }
 0x212   : > { %v5949_v16 = vld [vmem:[#allocation2 + $0x44] ss:$0 sps:$4 sm:$0x11]   ;;  %v2356_v23 = vld [vmem:[#allocation2 + $0x30] sm:$0xf]  ;;  %v3035_v44 = vrot.slane %v3033_v48, 1  ;;  %v5961_v9 = vcombine.low %v2385_v47, %v5895_v52 }
 0x213   : > { %2968 = vrot.lane.b32.xlu0 %v4147_v42, %s4754_s14  ;;  %v2420_v42 = vld [vmem:[#allocation2 + $0x3c] sm:$0xf]  ;;  %v2357_v50 = vld [vmem:[#allocation2 + $0x34] sm:$0xf]  ;;  %v3040_v35 = vrot.slane %v3038_v58, 1  ;;  %v3050_v3 = vshll.u32 %v5949_v16, 16  ;;  %v2552_v19 = vor.u32 %v2551_v53, %v2547_v43 }
 0x214   : > { %v5945_v32 = vcombine.low %v2420_v42, %v5937_v20  ;;  %v5955_v28 = vcombine.low %v2356_v23, %v2357_v50  ;;  %v5957_v54 = vld [vmem:[#allocation2 + $0x38] ss:$0 sps:$4 sm:$0x11]   ;;  %v2556_v8 = vrot.slane %v2554_v62, 1  ;;  %v2895_v29 = vrot.slane %v4141_v2, 1  ;;  %v4698_v26 = vld [vmem:[%s6476_s3 + $0x20] sm:$0xff]  }
 0x215   : > { %2610 = vrot.lane.b32.xlu1 %v2545_v40, %s4755_s19  ;;  %v2656_v17 = vrot.slane %v5922_v14, 1  ;;  %v2896_v13 = vrot.slane %v5941_v4, 1  ;;  %v2655_v31 = vrot.slane %v4117_v60, 1  ;;  %v5969_v10 = vld [vmem:[#allocation2 + $0x40] sm:$0xf]  ;;  %v3036_v59 = vor.u32 %v3035_v44, %v3031_v37  ;;  %4356 = vmatpush3.bf16.msra.mxu1 %v4698_v26  ;;  %v4699_v41 = vld [vmem:[%s6476_s3 + $0x68] sm:$0xff]  }
 0x216   : > { %v3045_v11 = vshll.u32 %v5945_v32, 16  ;;  %6532 = vst [vmem:[#allocation6_spill] sm:$0xff] %v5955_v28  ;;  %v2409_v33 = vld [vmem:[#allocation2 + $0x3c] sm:$0xe]  ;;  %v3043_v52 = vshrl.u32 %v5945_v32, 16  ;;  %v2561_v46 = vshll.u32 %v5955_v28, 16  ;;  %v2557_v48 = vsel %vm529_vm1, %v2552_v19, %v2556_v8  ;;  %4357 = vmatprep.subr.bf16.mxu1 %v4699_v41 }
 0x217   : > { %3104 = vrot.lane.b32.xlu0 %v3029_v5, %s4756_s20  ;;  %v2376_v63 = vld [vmem:[#allocation2 + $0x30] sm:$0xe]  ;;  %v2422_v14 = vld [vmem:[#allocation2 + $0x48] sm:$0xf]  ;;  %v5973_v6 = vrot.slane %v3050_v3, 1  ;;  %v2559_v36 = vshrl.u32 %v5955_v28, 16  ;;  %v4142_v47 = vcombine.low %v2409_v33, %v5969_v10  ;;  %v2657_v44 = vsel %vm700_vm0, %v2655_v31, %v2656_v17 }
 0x218   : > { %v3047_v40 = vrot.slane %v3045_v11, 1  ;;  %v2566_v24 = vshll.u32 %v5957_v54, 16  ;;  %v5977_v5 = vld [vmem:[#allocation2 + $0x4c] sm:$0xf]  ;;  %v2387_v12 = vld [vmem:[#allocation2 + $0x30] sm:$0xf]  ;;  %v4118_v58 = vcombine.low %v2376_v63, %v2357_v50 }
 0x219   : > { %2674 = vrot.lane.b32.xlu1 %v2654_v39, %s4754_s14  ;;  %6533 = vst [vmem:[#allocation7_spill] sm:$0xff] %v5977_v5  ;;  %v5981_v0 = vld [vmem:[#allocation2 + $0x44] ss:$0 sps:$4 sm:$0x11]   ;;  %v5991_v43 = vcombine.low %v2422_v14, %v5977_v5  ;;  %v2358_v62 = vld [vmem:[#allocation2 + $0x3c] sm:$0xf]  ;;  %v3041_v39 = vsel %vm529_vm1, %v3036_v59, %v3040_v35  ;;  %v6019_v17 = vcombine.low %v2387_v12, %v5930_v18 }
 0x21a   : > { %v5993_v42 = vld [vmem:[#allocation2 + $0x50] ss:$0 sps:$4 sm:$0x11]   ;;  %v4700_v2 = vld [vmem:[%s6476_s3 + $0x28] sm:$0xff]   ;;  %v2563_v53 = vrot.slane %v2561_v46, 1  ;;  %v2568_v50 = vrot.slane %v2566_v24, 1  ;;  %v2897_v46 = vsel %vm700_vm0, %v2895_v29, %v2896_v13 }
 0x21b   : > { %2914 = vrot.lane.b32.xlu0 %v2894_v56, %s4755_s19  ;;  %6534 = vst [vmem:[#allocation8_spill] sm:$0xff] %v5993_v42  ;;  %v2359_v60 = vld [vmem:[#allocation2 + $0x40] sm:$0xf]  ;;  %v3057_v23 = vshll.u32 %v5991_v43, 16  ;;  %v6003_v37 = vld [vmem:[#allocation2 + $0x4c] sm:$0xf]  ;;  %4358 = vmatpush3.bf16.msra.mxu1 %v4700_v2 }
 0x21c   : > { %v6001_v56 = vld [vmem:[#allocation2 + $0x44] ss:$0 sps:$4 sm:$0x11]   ;;  %v3062_v11 = vshll.u32 %v5993_v42, 16  ;;  %v6008_v35 = vcombine.low %v2358_v62, %v2359_v60  ;;  %v2410_v3 = vld [vmem:[#allocation2 + $0x48] sm:$0xe]  ;;  %v2564_v41 = vor.u32 %v2563_v53, %v2559_v36 }
 0x21d   : > { %2730 = vrot.lane.b32.xlu1 %v5961_v9, %s4756_s20  ;;  %v6011_v8 = vrot.slane %v4142_v47, 1  ;;  %v6014_v19 = vrot.slane %v4118_v58, 1  ;;  %v2578_v33 = vshll.u32 %v6001_v56, 16  ;;  %v2377_v59 = vld [vmem:[#allocation2 + $0x3c] sm:$0xe]  ;;  %v4143_v63 = vcombine.low %v2410_v3, %v6003_v37  ;;  %v4701_v24 = vld [vmem:[%s6476_s3 + $0x70] sm:$0xff]  }
 0x21e   : > { %6535 = vst [vmem:[#allocation10_spill] sm:$0xff] %v6008_v35  ;;  %v6021_v31 = vld [vmem:[#allocation2 + $0x50] ss:$0 sps:$4 sm:$0x11]   ;;  %v2424_v14 = vld [vmem:[#allocation2 + $0x54] sm:$0xf]  ;;  %4359 = vmatprep.subr.bf16.mxu1 %v4701_v24 }
 0x21f   : > { %2970 = vrot.lane.b32.xlu0 %v5913_v61, %s4754_s14  ;;  %v6028_v47 = vrot.slane %v3057_v23, 1  ;;  %v2573_v58 = vshll.u32 %v6008_v35, 16  ;;  %v2425_v29 = vld [vmem:[#allocation2 + $0x58] sm:$0xf]  ;;  %v4702_v18 = vld [vmem:[%s6476_s3 + $0x30] sm:$0xff]   ;;  %v6035_v13 = vrot.slane %v3062_v11, 1  ;;  %v3048_v11 = vor.u32 %v3047_v40, %v3043_v52 }
 0x220   : > { %v2443_v36 = vld [vmem:[#allocation2 + $0x54] sm:$0xe]  ;;  %v6039_v2 = vcombine.low %v2424_v14, %v2425_v29  ;;  %v6042_v23 = vld [vmem:[#allocation2 + $0x5c] ss:$0 sps:$4 sm:$0x11]   ;;  %v6049_v3 = vrot.slane %v2578_v33, 1  ;;  %4360 = vmatpush3.bf16.msra.mxu1 %v4702_v18  ;;  %v2569_v52 = vsel %vm529_vm1, %v2564_v41, %v2568_v50 }
 0x221   : > { %2612 = vrot.lane.b32.xlu1 %v2557_v48, %s4755_s19  ;;  %v4167_v53 = vcombine.low %v2443_v36, %v2425_v29  ;;  %6536 = vst [vmem:[#allocation12_spill] sm:$0xff] %v6042_v23  ;;  %v6051_v62 = vrot.slane %v4143_v63, 1  ;;  %v2360_v14 = vld [vmem:[#allocation2 + $0x48] sm:$0xf]  ;;  %v2361_v12 = vld [vmem:[#allocation2 + $0x4c] sm:$0xf]  ;;  %v3053_v50 = vsel %vm529_vm1, %v3048_v11, %v5973_v6 }
 0x222   : > { %v2575_v24 = vrot.slane %v2573_v58, 1  ;;  %v6060_v29 = vld [vmem:[%s6476_s3 + $0x80] sm:$0xff]   ;;  %v3074_v40 = vshll.u32 %v6042_v23, 16  ;;  %v6066_v33 = vld [vmem:[#allocation2 + $0x50] ss:$0 sps:$4 sm:$0x11]  }
 0x223   : > { %3106 = vrot.lane.b32.xlu0 %v3041_v39, %s4756_s20  ;;  %v4119_v39 = vcombine.low %v2377_v59, %v2359_v60  ;;  %v3069_v59 = vshll.u32 %v6039_v2, 16  ;;  %v6068_v63 = vld [vmem:[#allocation2 + $0x58] sm:$0xf]  ;;  %v6074_v18 = vrot.slane %v4167_v53, 1  ;;  %4445 = vmatprep.subr.bf16.mxu0 %v6060_v29  ;;  %v2590_v41 = vshll.u32 %v6066_v33, 16 }
 0x224   : > { %v6082_v60 = vld [vmem:[#allocation2 + $0x5c] ss:$0 sps:$4 sm:$0x11]   ;;  %4446 = vmatpush3.bf16.msra.mxu0 %v6060_v29  ;;  %v2378_v48 = vld [vmem:[#allocation2 + $0x48] sm:$0xe]  ;;  %v6090_v61 = vrot.slane %v3074_v40, 1 }
 0x225   : > { %2676 = vrot.lane.b32.xlu1 %v2657_v44, %s4754_s14  ;;  %v4703_v44 = vld [vmem:[%s6476_s3 + $0x78] sm:$0xff]   ;;  %v6072_v58 = vrot.slane %v4119_v39, 1  ;;  %6537 = vst [vmem:[#allocation13_spill] sm:$0xff] %v6074_v18  ;;  %v6085_v39 = vrot.slane %v3069_v59, 1  ;;  %v2426_v26 = vld [vmem:[#allocation2 + $0x60] sm:$0xf]  ;;  %v4120_v53 = vcombine.low %v2378_v48, %v2361_v12 }
 0x226   : > { %4361 = vmatprep.subr.bf16.mxu1 %v4703_v44  ;;  %v6095_v28 = vld [vmem:[#allocation2 + $0x64] sm:$0xf]  ;;  %v2774_v1 = vshll.u32 %v5826_v30, 16  ;;  %v6539_v59 = vrot.slane %v5957_v54, 1  ;;  %v6113_v25 = vrot.slane %v2590_v41, 1 }
 0x227   : > { %2916 = vrot.lane.b32.xlu0 %v2897_v46, %s4755_s19  ;;  %v6055_v46 = vcombine.low %v2360_v14, %v2361_v12  ;;  %v2411_v14 = vld [vmem:[#allocation2 + $0x54] sm:$0xe]  ;;  %6538 = vst [vmem:[#allocation14_spill] sm:$0xff] %v6095_v28  ;;  %v6105_v40 = vcombine.low %v2426_v26, %v6095_v28  ;;  %v6107_v6 = vld [vmem:[#allocation2 + $0x68] ss:$0 sps:$4 sm:$0x11]  }
 0x228   : > { %v4144_v36 = vcombine.low %v2411_v14, %v6068_v63  ;;  %v2660_v14 = vsel %vm700_vm0, %v6014_v19, %v6539_v59  ;;  %6540 = vst [vmem:[#allocation15_spill] sm:$0xff] %v6107_v6  ;;  %v2363_v57 = vld [vmem:[#allocation2 + $0x58] sm:$0xf]  ;;  %v6119_v12 = vld [vmem:[#allocation2 + $0x64] sm:$0xf]  ;;  %v3086_v59 = vshll.u32 %v6107_v6, 16 }
 0x229   : > { %2732 = vrot.lane.b32.xlu1 %v6019_v17, %s4756_s20  ;;  %v2585_v44 = vshll.u32 %v6055_v46, 16  ;;  %v3081_v48 = vshll.u32 %v6105_v40, 16  ;;  %v6128_v41 = vld [vmem:[#allocation2 + $0x5c] ss:$0 sps:$4 sm:$0x11]   ;;  %v2664_v51 = vrot.slane %v4120_v53, 1 }
 0x22a   : > { %v6116_v19 = vrot.slane %v4144_v36, 1  ;;  %v6543_v36 = vshrl.u32 %v5991_v43, 16  ;;  %v6136_v28 = vld [vmem:[#allocation2 + $0x68] ss:$0 sps:$4 sm:$0x11]   ;;  %v2776_v18 = vrot.slane %v2774_v1, 1 }
 0x22b   : > { %2972 = vrot.lane.b32.xlu0 %v5945_v32, %s4754_s14  ;;  %v2389_v32 = vld [vmem:[#allocation2 + $0x3c] sm:$0xf]  ;;  %v6093_v11 = vrot.slane %v2585_v44, 1  ;;  %v6541_v44 = vrot.slane %v5981_v0, 1  ;;  %v2379_v6 = vld [vmem:[#allocation2 + $0x54] sm:$0xe] }
 0x22c   : > { %v6123_v26 = vcombine.low %v2389_v32, %v5969_v10  ;;  %v3079_v10 = vshrl.u32 %v6105_v40, 16  ;;  %v4121_v5 = vcombine.low %v2379_v6, %v2363_v57  ;;  %v3088_v53 = vrot.slane %v3086_v59, 1 }
 0x22d   : > { %2614 = vrot.lane.b32.xlu1 %v2569_v52, %s4755_s19  ;;  %v2900_v30 = vsel %vm700_vm0, %v6011_v8, %v6541_v44  ;;  %v3060_v44 = vor.u32 %v6028_v47, %v6543_v36  ;;  %v6544_v52 = vshrl.u32 %v6008_v35, 16  ;;  %v2428_v47 = vld [vmem:[#allocation2 + $0x6c] sm:$0xf]  ;;  %v6142_v36 = vld [vmem:[#allocation2 + $0x70] sm:$0xf]  ;;  %v2908_v35 = vrot.slane %v6136_v28, 1 }
 0x22e   : > { %6545 = vst [vmem:[#allocation17_spill] sm:$0xff] %v6142_v36  ;;  %v6152_v1 = vcombine.low %v2428_v47, %v6142_v36  ;;  %v2667_v47 = vrot.slane %v4121_v5, 1  ;;  %v2668_v36 = vrot.slane %v6128_v41, 1  ;;  %v6546_v5 = vrot.slane %v6001_v56, 1 }
 0x22f   : > { %3108 = vrot.lane.b32.xlu0 %v3053_v50, %s4756_s20  ;;  %v2362_v50 = vld [vmem:[#allocation2 + $0x54] sm:$0xf]  ;;  %v2576_v54 = vor.u32 %v2575_v24, %v6544_v52  ;;  %v4705_v24 = vld [vmem:[%s6476_s3 + $0x38] sm:$0xff]   ;;  %v3065_v6 = vsel %vm529_vm1, %v3060_v44, %v6035_v13  ;;  %v6548_v56 = vshrl.u32 %v6039_v2, 16 }
 0x230   : > { %v6126_v8 = vcombine.low %v2362_v50, %v2363_v57  ;;  %v2602_v50 = vshll.u32 %v6128_v41, 16  ;;  %v6157_v57 = vld [vmem:[%s6476_s3 + $0x88] sm:$0xff]   ;;  %4362 = vmatpush3.bf16.msra.mxu1 %v4705_v24  ;;  %v3093_v42 = vshll.u32 %v6152_v1, 16  ;;  %v3091_v13 = vshrl.u32 %v6152_v1, 16  ;;  %v2393_v24 = vld [vmem:[#allocation2 + $0x54] sm:$0xf] }
 0x231   : > { %2678 = vrot.lane.b32.xlu1 %v2660_v14, %s4754_s14  ;;  %v2412_v14 = vld [vmem:[#allocation2 + $0x60] sm:$0xe]  ;;  %4447 = vmatprep.subr.bf16.mxu0 %v6157_v57 }
 0x232   : > { %6542 = vst [vmem:[#allocation16_spill] sm:$0xff] %v6126_v8  ;;  %v2597_v32 = vshll.u32 %v6126_v8, 16  ;;  %v4145_v23 = vcombine.low %v2412_v14, %v6119_v12  ;;  %v2595_v52 = vshrl.u32 %v6126_v8, 16  ;;  %v2604_v14 = vrot.slane %v2602_v50, 1  ;;  %4465 = vmatprep.subr.bf16.mxu1 %v6060_v29  ;;  %4448 = vmatpush3.bf16.msra.mxu0 %v6157_v57 }
 0x233   : > { %2918 = vrot.lane.b32.xlu0 %v2900_v30, %s4755_s19  ;;  %v3083_v30 = vrot.slane %v3081_v48, 1  ;;  %v2581_v48 = vsel %vm529_vm1, %v2576_v54, %v6049_v3  ;;  %v2767_v3 = vshrl.u32 %v5854_v45, 16  ;;  %v6547_v54 = vrot.slane %v6021_v31, 1 }
 0x234   : > { %v2599_v59 = vrot.slane %v2597_v32, 1  ;;  %v2907_v8 = vrot.slane %v4145_v23, 1  ;;  %v2663_v23 = vsel %vm700_vm0, %v6072_v58, %v6546_v5  ;;  %v6182_v44 = vrot.slane %v3093_v42, 1  ;;  %v2395_v42 = vld [vmem:[#allocation2 + $0x60] sm:$0xf] }
 0x235   : > { %2734 = vrot.lane.b32.xlu1 %v6123_v26, %s4756_s20  ;;  %v2903_v41 = vsel %vm700_vm0, %v6051_v62, %v6547_v54  ;;  %v2769_v32 = vshll.u32 %v5854_v45, 16  ;;  %v3072_v58 = vor.u32 %v6085_v39, %v6548_v56  ;;  %v2779_v45 = vshrl.u32 %v5903_v27, 16  ;;  %v2439_v54 = vld [vmem:[#allocation2 + $0x24] sm:$0xe] }
 0x236   : > { %v2805_v56 = vshll.u32 %v6019_v17, 16 }
 0x237   : > { %2974 = vrot.lane.b32.xlu0 %v5991_v43, %s4754_s14  ;;  %v2391_v43 = vld [vmem:[#allocation2 + $0x48] sm:$0xf]  ;;  %v2771_v5 = vrot.slane %v2769_v32, 1 }
 0x238   : > { %v6187_v50 = vcombine.low %v2391_v43, %v6003_v37  ;;  %v2600_v37 = vor.u32 %v2599_v59, %v2595_v52  ;;  %v3077_v43 = vsel %vm529_vm1, %v3072_v58, %v6090_v61  ;;  %v6551_v52 = vrot.slane %v6066_v33, 1 }
 0x239   : > { %2616 = vrot.lane.b32.xlu1 %v2581_v48, %s4755_s19  ;;  %v3084_v48 = vor.u32 %v3083_v30, %v3079_v10  ;;  %v2772_v10 = vor.u32 %v2771_v5, %v2767_v3  ;;  %v6550_v30 = vrot.slane %v6082_v60, 1  ;;  %v6219_v61 = vcombine.low %v2395_v42, %v6119_v12 }
 0x23a   : > { %v2666_v59 = vsel %vm700_vm0, %v2664_v51, %v6551_v52  ;;  %v2781_v3 = vshll.u32 %v5903_v27, 16  ;;  %v2605_v51 = vsel %vm529_vm1, %v2600_v37, %v2604_v14  ;;  %v6232_v33 = vsel %vm700_vm0, %v2667_v47, %v2668_v36 }
 0x23b   : > { %3110 = vrot.lane.b32.xlu0 %v3065_v6, %s4756_s20  ;;  %v6549_v6 = vshrl.u32 %v6055_v46, 16  ;;  %v3143_v12 = vrot.slane %v5836_v7, 1  ;;  %v2791_v14 = vshrl.u32 %v5961_v9, 16  ;;  %v2793_v36 = vshll.u32 %v5961_v9, 16 }
 0x23c   : > { %v2798_v47 = vshll.u32 %v5909_v55, 16  ;;  %v2803_v7 = vshrl.u32 %v6019_v17, 16 }
 0x23d   : > { %2680 = vrot.lane.b32.xlu1 %v2663_v23, %s4754_s14  ;;  %v2588_v62 = vor.u32 %v6093_v11, %v6549_v6  ;;  %v6206_v11 = vcombine.low %v2393_v24, %v6068_v63  ;;  %v2906_v23 = vsel %vm700_vm0, %v6116_v19, %v6550_v30  ;;  %v6225_v63 = vsel %vm529_vm1, %v2772_v10, %v2776_v18 }
 0x23e   : > { %v2786_v19 = vshll.u32 %v5861_v21, 16  ;;  %v2783_v18 = vrot.slane %v2781_v3, 1  ;;  %v4163_v21 = vcombine.low %v2439_v54, %v5864_v34  ;;  %v2795_v58 = vrot.slane %v2793_v36, 1 }
 0x23f   : > { %2920 = vrot.lane.b32.xlu0 %v2903_v41, %s4755_s19  ;;  %v2593_v39 = vsel %vm529_vm1, %v2588_v62, %v6113_v25  ;;  %v6222_v25 = vsel %vm700_vm0, %v2907_v8, %v2908_v35  ;;  %v3146_v35 = vrot.slane %v5875_v49, 1  ;;  %v2440_v41 = vld [vmem:[#allocation2 + $0x30] sm:$0xe]  ;;  %v2810_v34 = vshll.u32 %v5941_v4, 16  ;;  %v2441_v62 = vld [vmem:[#allocation2 + $0x3c] sm:$0xe] }
 0x240   : > { %v2788_v8 = vrot.slane %v2786_v19, 1  ;;  %v2784_v32 = vor.u32 %v2783_v18, %v2779_v45  ;;  %v3145_v49 = vrot.slane %v4163_v21, 1  ;;  %v4164_v6 = vcombine.low %v2440_v41, %v5899_v38 }
 0x241   : > { %2736 = vrot.lane.b32.xlu1 %v6187_v50, %s4756_s20  ;;  %v2796_v17 = vor.u32 %v2795_v58, %v2791_v14  ;;  %v2812_v5 = vrot.slane %v2810_v34, 1  ;;  %v3149_v4 = vrot.slane %v5916_v22, 1  ;;  %v4165_v37 = vcombine.low %v2441_v62, %v5937_v20  ;;  %v4688_v20 = vld [vmem:[#allocation2 + $0x74] ss:$0 sps:$4 sm:$0x11]   ;;  %v6554_v58 = vld [vmem:[#allocation12_spill] sm:$0xff] }
 0x242   : > { %v6249_v55 = vsel %vm529_vm1, %v2784_v32, %v2788_v8  ;;  %v3147_v42 = vsel %vm700_vm0, %v3145_v49, %v3146_v35  ;;  %v3148_v45 = vrot.slane %v4164_v6, 1  ;;  %v2822_v22 = vshll.u32 %v5981_v0, 16  ;;  %v6553_v49 = vld [vmem:[#allocation7_spill] sm:$0xff]  ;;  %v6556_v34 = vld [vmem:[#allocation13_spill] sm:$0xff] }
 0x243   : > { %2976 = vrot.lane.b32.xlu0 %v6039_v2, %s4754_s14  ;;  %v6216_v2 = vsel %vm529_vm1, %v3084_v48, %v3088_v53  ;;  %v2438_v53 = vld [vmem:[#allocation2 + $0x18] sm:$0xe]  ;;  %v2807_v48 = vrot.slane %v2805_v56, 1  ;;  %v3151_v52 = vrot.slane %v4165_v37, 1  ;;  %v2829_v3 = vshll.u32 %v6187_v50, 16  ;;  %v6559_v37 = vld [vmem:[#allocation17_spill] sm:$0xff] }
 0x244   : > { %v4162_v27 = vcombine.low %v2438_v53, %v5823_v15  ;;  %v2800_v15 = vrot.slane %v2798_v47, 1  ;;  %v3150_v30 = vsel %vm700_vm0, %v3148_v45, %v3149_v4  ;;  %v2824_v53 = vrot.slane %v2822_v22, 1  ;;  %v6552_v47 = vld [vmem:[#allocation8_spill] sm:$0xff]  ;;  %v6557_v45 = vld [vmem:[#allocation14_spill] sm:$0xff] }
 0x245   : > { %2618 = vrot.lane.b32.xlu1 %v2593_v39, %s4755_s19  ;;  %v2808_v38 = vor.u32 %v2807_v48, %v2803_v7  ;;  %v2815_v39 = vshrl.u32 %v6123_v26, 16  ;;  %v2839_v0 = vshrl.u32 %v6206_v11, 16  ;;  %v2841_v54 = vshll.u32 %v6206_v11, 16 }
 0x246   : > { %v3142_v24 = vrot.slane %v4162_v27, 1  ;;  %v6262_v10 = vsel %vm529_vm1, %v2796_v17, %v2800_v15  ;;  %v2846_v35 = vshll.u32 %v6082_v60, 16  ;;  %v2851_v27 = vshrl.u32 %v6219_v61, 16 }
 0x247   : > { %3112 = vrot.lane.b32.xlu0 %v3077_v43, %s4756_s20  ;;  %v3152_v43 = vrot.slane %v5949_v16, 1  ;;  %v6270_v16 = vsel %vm529_vm1, %v2808_v38, %v2812_v5  ;;  %v2843_v21 = vrot.slane %v2841_v54, 1  ;;  %v2858_v14 = vshll.u32 %v6136_v28, 16  ;;  %v2444_v5 = vld [vmem:[#allocation2 + $0x60] sm:$0xe]  ;;  %v6558_v38 = vld [vmem:[#allocation15_spill] sm:$0xff] }
 0x248   : > { %v3144_v9 = vsel %vm700_vm0, %v3142_v24, %v3143_v12  ;;  %v2848_v41 = vrot.slane %v2846_v35, 1  ;;  %v3098_v36 = vshll.u32 %v4688_v20, 16  ;;  %v3155_v7 = vrot.slane %v6552_v47, 1 }
 0x249   : > { %2682 = vrot.lane.b32.xlu1 %v2666_v59, %s4754_s14  ;;  %4449 = vmatprep.mubr.msk.bf16.mxu0 %vm1351_vm2, %v3144_v9  ;;  %v2827_v59 = vshrl.u32 %v6187_v50, 16  ;;  %v3153_v12 = vsel %vm700_vm0, %v3151_v52, %v3152_v43  ;;  %v2853_v50 = vshll.u32 %v6219_v61, 16  ;;  %v2844_v24 = vor.u32 %v2843_v21, %v2839_v0 }
 0x24a   : > { %4450 = vmatmul.mubr.msk.bf16.vlgmr.msra.gmra.mrb[40].mxu0 %vm1351_vm2, %v3147_v42  ;;  %v6555_v15 = vrot.slane %v6554_v58, 1  ;;  %v3096_v42 = vor.u32 %v6182_v44, %v3091_v13  ;;  %v3100_v48 = vrot.slane %v3098_v36, 1  ;;  %v4168_v4 = vcombine.low %v2444_v5, %v6557_v45  ;;  %v2445_v44 = vld [vmem:[#allocation2 + $0x6c] sm:$0xe] }
 0x24b   : > { %2922 = vrot.lane.b32.xlu0 %v2906_v23, %s4755_s19  ;;  %v2817_v23 = vshll.u32 %v6123_v26, 16  ;;  %4453 = vmatprep.mubr.msk.bf16.mxu0 %vm1351_vm2, %v3150_v30  ;;  %v2834_v26 = vshll.u32 %v6021_v31, 16  ;;  %v2855_v60 = vrot.slane %v2853_v50, 1  ;;  %v6306_v62 = vsel %vm529_vm1, %v2844_v24, %v2848_v41 }
 0x24c   : > { %v6301_v6 = vsel %vm700_vm0, %v6556_v34, %v6555_v15  ;;  %v3161_v13 = vrot.slane %v6558_v38, 1  ;;  %v4169_v43 = vcombine.low %v2445_v44, %v6559_v37  ;;  %v3160_v30 = vrot.slane %v4168_v4, 1  ;;  %v6563_v4 = vld [vmem:[#allocation5_spill] sm:$0xff] }
 0x24d   : > { %2738 = vrot.lane.b32.xlu1 %v6206_v11, %s4756_s20  ;;  %v2819_v19 = vrot.slane %v2817_v23, 1  ;;  %v2836_v8 = vrot.slane %v2834_v26, 1  ;;  %v2856_v28 = vor.u32 %v2855_v60, %v2851_v27  ;;  %v6560_v26 = vld [vmem:[#allocation9_spill] sm:$0xff] }
 0x24e   : > { %v3163_v23 = vrot.slane %v4169_v43, 1 }
 0x24f   : > { %2978 = vrot.lane.b32.xlu0 %v6105_v40, %s4754_s14  ;;  %v2831_v40 = vrot.slane %v2829_v3, 1  ;;  %v2820_v18 = vor.u32 %v2819_v19, %v2815_v39  ;;  %v3164_v39 = vrot.slane %v4688_v20, 1 }
 0x251   : > { %2620 = vrot.lane.b32.xlu1 %v2605_v51, %s4755_s19  ;;  %v2832_v31 = vor.u32 %v2831_v40, %v2827_v59  ;;  %v6287_v11 = vsel %vm529_vm1, %v2820_v18, %v2824_v53  ;;  %v2442_v51 = vld [vmem:[#allocation2 + $0x48] sm:$0xe] }
 0x252   : > { %4454 = vmatmul.mubr.msk.bf16.gmra.mrb[44].mxu0 %vm1351_vm2, %v3153_v12  ;;  %v4166_v56 = vcombine.low %v2442_v51, %v6553_v49  ;;  %v6562_v49 = vld [vmem:[#allocation11_spill] sm:$0xff] }
 0x253   : > { %3114 = vrot.lane.b32.xlu0 %v6216_v2, %s4756_s20  ;;  %v6292_v32 = vsel %vm529_vm1, %v2832_v31, %v2836_v8  ;;  %v2860_v2 = vrot.slane %v2858_v14, 1  ;;  %v6561_v31 = vld [vmem:[#allocation4_spill] sm:$0xff] }
 0x254   : > { %v3154_v9 = vrot.slane %v4166_v56, 1 }
 0x255   : > { %2684 = vrot.lane.b32.xlu1 %v6232_v33, %s4754_s14  ;;  %v6312_v33 = vsel %vm529_vm1, %v2856_v28, %v2860_v2 }
 0x256   : > { %v6315_v17 = vsel %vm700_vm0, %v3154_v9, %v3155_v7 }
 0x257   : > { %2924 = vrot.lane.b32.xlu0 %v6222_v25, %s4755_s19  ;;  %v3101_v25 = vsel %vm529_vm1, %v3096_v42, %v3100_v48 }
 0x259   : > { %2740 = vrot.lane.b32.xlu1 %v6219_v61, %s4756_s20  ;;  %v6327_v61 = vsel %vm700_vm0, %v3160_v30, %v3161_v13 }
 0x25b   : > { %2980 = vrot.lane.b32.xlu0 %v6152_v1, %s4754_s14  ;;  %v6330_v1 = vsel %vm700_vm0, %v3163_v23, %v3164_v39 }
 0x25f   : > { %3116 = vrot.lane.b32.xlu0 %v3101_v25, %s4756_s20 }
 0x26e   : > { %v2967_v22 = vpop.permute.xlu1 %2966 }
 0x272   : > { %v2911_v52 = vpop.permute.xlu0 %2910 }
 0x273   : > { %v2671_v59 = vpop.permute.xlu1 %2670  ;;  %v3224_v53 = vsel %vm1351_vm2, %v6225_v63, %v2911_v52 }
 0x274   : > { %v3247_v54 = vsel %vm1372_vm3, %v3224_v53, %v2967_v22 }
 0x277   : > { %v2727_v3 = vpop.permute.xlu1 %2726 }
 0x279   : > { %v2607_v19 = vpop.permute.xlu0 %2606 }
 0x27a   : > { %v3167_v20 = vsel %vm1351_vm2, %v6560_v26, %v2607_v19 }
 0x27b   : > { %v3183_v0 = vsel %vm1372_vm3, %v3167_v20, %v2671_v59  ;;  %v2609_v12 = vpop.permute.xlu1 %2608 }
 0x27c   : > { %v3199_v18 = vsel %vm1393_vm4, %v3183_v0, %v2727_v3  ;;  %v3169_v21 = vsel %vm1351_vm2, %v6561_v31, %v2609_v12  ;;  %v6564_v3 = vld [vmem:[#allocation6_spill] sm:$0xff] }
 0x27d   : > { %v3103_v40 = vpop.permute.xlu0 %3102 }
 0x27e   : > { %v3263_v35 = vsel %vm1393_vm4, %v3247_v54, %v3103_v40 }
 0x27f   : > { %3493 = vmatprep.mubr.bf16.mxu1 %v3263_v35  ;;  %v2673_v8 = vpop.permute.xlu1 %2672 }
 0x280   : > { %3494 = vmatmul.mubr.bf16.vlgmr.msra.gmra.mrb[20].mxu1 %v3199_v18  ;;  %v3185_v51 = vsel %vm1372_vm3, %v3169_v21, %v2673_v8 }
 0x281   : > { %v2913_v27 = vpop.permute.xlu0 %2912  ;;  %4467 = vmatpush3.bf16.msra.mxu1 %v6060_v29 }
 0x282   : > { %4466 = vmatprep.subr.bf16.mxu1 %v6157_v57  ;;  %v3227_v41 = vsel %vm1351_vm2, %v6249_v55, %v2913_v27  ;;  %v6565_v27 = vld [vmem:[#allocation10_spill] sm:$0xff] }
 0x283   : > { %v2729_v63 = vpop.permute.xlu1 %2728 }
 0x284   : > { %v3202_v47 = vsel %vm1393_vm4, %v3185_v51, %v2729_v63 }
 0x285   : > { %v2969_v50 = vpop.permute.xlu0 %2968  ;;  %4468 = vmatpush3.bf16.msra.mxu1 %v6157_v57 }
 0x286   : > { %v3249_v36 = vsel %vm1372_vm3, %v3227_v41, %v2969_v50 }
 0x287   : > { %v2611_v14 = vpop.permute.xlu1 %2610 }
 0x288   : > { %v3171_v56 = vsel %vm1351_vm2, %v6562_v49, %v2611_v14 }
 0x289   : > { %v3105_v60 = vpop.permute.xlu0 %3104 }
 0x28a   : > { %v3266_v29 = vsel %vm1393_vm4, %v3249_v36, %v3105_v60 }
 0x28b   : > { %3501 = vmatprep.mubr.bf16.mxu1 %v3266_v29  ;;  %v2675_v7 = vpop.permute.xlu1 %2674 }
 0x28c   : > { %3502 = vmatmul.mubr.bf16.gmra.mrb[24].mxu1 %v3202_v47  ;;  %v3187_v34 = vsel %vm1372_vm3, %v3171_v56, %v2675_v7 }
 0x28d   : > { %v2915_v57 = vpop.permute.xlu0 %2914 }
 0x28e   : > { %v3230_v55 = vsel %vm1351_vm2, %v6262_v10, %v2915_v57 }
 0x28f   : > { %v2731_v24 = vpop.permute.xlu1 %2730 }
 0x290   : > { %v3205_v42 = vsel %vm1393_vm4, %v3187_v34, %v2731_v24  ;;  %v6566_v34 = vld [vmem:[#allocation16_spill] sm:$0xff] }
 0x291   : > { %v2971_v2 = vpop.permute.xlu0 %2970 }
 0x292   : > { %v3251_v58 = vsel %vm1372_vm3, %v3230_v55, %v2971_v2 }
 0x293   : > { %v2613_v28 = vpop.permute.xlu1 %2612 }
 0x294   : > { %v3173_v38 = vsel %vm1351_vm2, %v6563_v4, %v2613_v28 }
 0x295   : > { %v3107_v15 = vpop.permute.xlu0 %3106 }
 0x296   : > { %v3269_v9 = vsel %vm1393_vm4, %v3251_v58, %v3107_v15 }
 0x297   : > { %3509 = vmatprep.mubr.bf16.mxu1 %v3269_v9  ;;  %v2677_v48 = vpop.permute.xlu1 %2676 }
 0x298   : > { %3510 = vmatmul.mubr.bf16.gmra.mrb[28].mxu1 %v3205_v42  ;;  %v3189_v43 = vsel %vm1372_vm3, %v3173_v38, %v2677_v48 }
 0x299   : > { %v2917_v25 = vpop.permute.xlu0 %2916 }
 0x29a   : > { %v3233_v10 = vsel %vm1351_vm2, %v6270_v16, %v2917_v25 }
 0x29b   : > { %v2733_v5 = vpop.permute.xlu1 %2732 }
 0x29c   : > { %v3208_v30 = vsel %vm1393_vm4, %v3189_v43, %v2733_v5 }
 0x29d   : > { %v2973_v45 = vpop.permute.xlu0 %2972 }
 0x29e   : > { %v3253_v44 = vsel %vm1372_vm3, %v3233_v10, %v2973_v45 }
 0x29f   : > { %v2615_v13 = vpop.permute.xlu1 %2614 }
 0x2a0   : > { %v3175_v19 = vsel %vm1351_vm2, %v6564_v3, %v2615_v13 }
 0x2a1   : > { %v3109_v37 = vpop.permute.xlu0 %3108 }
 0x2a2   : > { %v3272_v39 = vsel %vm1393_vm4, %v3253_v44, %v3109_v37 }
 0x2a3   : > { %3517 = vmatprep.mubr.bf16.mxu1 %v3272_v39  ;;  %v2679_v23 = vpop.permute.xlu1 %2678 }
 0x2a4   : > { %3518 = vmatmul.mubr.bf16.gmra.mrb[32].mxu1 %v3208_v30  ;;  %v3191_v0 = vsel %vm1372_vm3, %v3175_v19, %v2679_v23 }
 0x2a5   : > { %v2919_v22 = vpop.permute.xlu0 %2918 }
 0x2a6   : > { %v3236_v16 = vsel %vm1351_vm2, %v6287_v11, %v2919_v22 }
 0x2a7   : > { %v2735_v52 = vpop.permute.xlu1 %2734 }
 0x2a8   : > { %v3211_v40 = vsel %vm1393_vm4, %v3191_v0, %v2735_v52 }
 0x2a9   : > { %v2975_v59 = vpop.permute.xlu0 %2974 }
 0x2aa   : > { %v3255_v26 = vsel %vm1372_vm3, %v3236_v16, %v2975_v59 }
 0x2ab   : > { %v2617_v53 = vpop.permute.xlu1 %2616 }
 0x2ac   : > { %v3177_v63 = vsel %vm1351_vm2, %v6565_v27, %v2617_v53 }
 0x2ad   : > { %v3111_v20 = vpop.permute.xlu0 %3110 }
 0x2ae   : > { %v3275_v12 = vsel %vm1393_vm4, %v3255_v26, %v3111_v20 }
 0x2af   : > { %3525 = vmatprep.mubr.bf16.mxu1 %v3275_v12  ;;  %v2681_v54 = vpop.permute.xlu1 %2680 }
 0x2b0   : > { %3526 = vmatmul.mubr.bf16.gmra.mrb[36].mxu1 %v3211_v40  ;;  %v3193_v41 = vsel %vm1372_vm3, %v3177_v63, %v2681_v54 }
 0x2b1   : > { %v2921_v35 = vpop.permute.xlu0 %2920 }
 0x2b2   : > { %v3239_v11 = vsel %vm1351_vm2, %v6292_v32, %v2921_v35  ;;  %v4252_v35 = vld [vmem:[%s4852_s15 + $0x8] sm:$0xff]  }
 0x2b3   : > { %v2737_v18 = vpop.permute.xlu1 %2736 }
 0x2b4   : > { %v3214_v36 = vsel %vm1393_vm4, %v3193_v41, %v2737_v18  ;;  %v4227_v41 = vunpack.c.h.bf16 %v4252_v35 }
 0x2b5   : > { %v2977_v8 = vpop.permute.xlu0 %2976 }
 0x2b6   : > { %v3257_v31 = vsel %vm1372_vm3, %v3239_v11, %v2977_v8  ;;  %v4226_v11 = vunpack.c.l.bf16 %v4252_v35 }
 0x2b7   : > { %v2619_v50 = vpop.permute.xlu1 %2618 }
 0x2b8   : > { %v3179_v7 = vsel %vm1351_vm2, %v6055_v46, %v2619_v50 }
 0x2b9   : > { %v3113_v21 = vpop.permute.xlu0 %3112 }
 0x2ba   : > { %v3278_v14 = vsel %vm1393_vm4, %v3257_v31, %v3113_v21 }
 0x2bb   : > { %3533 = vmatprep.mubr.bf16.mxu1 %v3278_v14  ;;  %v2683_v60 = vpop.permute.xlu1 %2682 }
 0x2bc   : > { %3534 = vmatmul.mubr.bf16.gmra.mrb[40].mxu1 %v3214_v36  ;;  %v3195_v49 = vsel %vm1372_vm3, %v3179_v7, %v2683_v60 }
 0x2bd   : > { %v2923_v51 = vpop.permute.xlu0 %2922 }
 0x2be   : > { %v3242_v32 = vsel %vm1351_vm2, %v6306_v62, %v2923_v51 }
 0x2bf   : > { %v2739_v29 = vpop.permute.xlu1 %2738 }
 0x2c0   : > { %v3217_v55 = vsel %vm1393_vm4, %v3195_v49, %v2739_v29 }
 0x2c1   : > { %v2979_v47 = vpop.permute.xlu0 %2978 }
 0x2c2   : > { %v3259_v24 = vsel %vm1372_vm3, %v3242_v32, %v2979_v47  ;;  %v4253_v32 = vld [vmem:[%s4852_s15 + $0x10] sm:$0xff]  }
 0x2c3   : > { %v2621_v57 = vpop.permute.xlu1 %2620 }
 0x2c4   : > { %v3181_v46 = vsel %vm1351_vm2, %v6566_v34, %v2621_v57 }
 0x2c5   : > { %v3115_v2 = vpop.permute.xlu0 %3114 }
 0x2c6   : > { %v3281_v56 = vsel %vm1393_vm4, %v3259_v24, %v3115_v2 }
 0x2c7   : > { %3541 = vmatprep.mubr.bf16.mxu1 %v3281_v56  ;;  %v2685_v58 = vpop.permute.xlu1 %2684 }
 0x2c8   : > { %3542 = vmatmul.mubr.bf16.gmra.mrb[44].mxu1 %v3217_v55  ;;  %v3197_v25 = vsel %vm1372_vm3, %v3181_v46, %v2685_v58  ;;  %v4230_v55 = vunpack.c.l.bf16 %v4253_v32 }
 0x2c9   : > { %v2925_v28 = vpop.permute.xlu0 %2924 }
 0x2ca   : > { %v3245_v62 = vsel %vm1351_vm2, %v6312_v33, %v2925_v28 }
 0x2cb   : > { %v2741_v9 = vpop.permute.xlu1 %2740 }
 0x2cc   : > { %v3220_v45 = vsel %vm1393_vm4, %v3197_v25, %v2741_v9 }
 0x2cd   : > { %v2981_v15 = vpop.permute.xlu0 %2980 }
 0x2ce   : > { %v3261_v42 = vsel %vm1372_vm3, %v3245_v62, %v2981_v15  ;;  %v4231_v15 = vunpack.c.h.bf16 %v4253_v32 }
 0x2d1   : > { %v3117_v48 = vpop.permute.xlu0 %3116 }
 0x2d2   : > { %v3284_v5 = vsel %vm1393_vm4, %v3261_v42, %v3117_v48 }
 0x2d3   : > { %3549 = vmatprep.mubr.bf16.mxu1 %v3284_v5  ;;  %v4254_v5 = vld [vmem:[%s4852_s15 + $0x18] sm:$0xff]  }
 0x2d4   : > { %3550 = vmatmul.mubr.bf16.gmra.mrb[48].mxu1 %v3220_v45 }
 0x2d5   : > { %4457 = vmatprep.mubr.msk.bf16.mxu1 %vm1351_vm2, %v6315_v17 }
 0x2dc   : > { %4458 = vmatmul.mubr.msk.bf16.vlgmr.msra.gmra.mrb[52].mxu1 %vm1351_vm2, %v6301_v6  ;;  %v6414_v6 = vld [vmem:[%s6477_s4] ss:$0 sm:$0xff] }
 0x2dd   : > { %4461 = vmatprep.mubr.msk.bf16.mxu1 %vm1351_vm2, %v6327_v61  ;;  %v4221_v61 = vld [vmem:[%s4852_s15] sm:$0xff]  }
 0x2de   : > { %v4222_v59 = vunpack.c.l.bf16 %v4221_v61  ;;  %v4223_v16 = vunpack.c.h.bf16 %v4221_v61 }
 0x2e4   : > { %4462 = vmatmul.mubr.msk.bf16.gmra.mrb[56].mxu1 %vm1351_vm2, %v6330_v1 }
 0x31d   : > { %v4451_v33 = vpop.f32.mrb[40].mxu0 }
 0x31e   : > { %v3592_v4 = vpop.f32.mrb[41].mxu0 }
 0x31f   : > { %v4452_v38 = vpop.f32.mrb[42].mxu0 }
 0x320   : > { %v3595_v10 = vpop.f32.mrb[43].mxu0 }
 0x325   : > { %v6407_v13 = vpop.f32.mrb[44].mxu0 }
 0x326   : > { %v3608_v44 = vpop.f32.mrb[45].mxu0 }
 0x327   : > { %v6409_v37 = vpop.f32.mrb[46].mxu0 }
 0x328   : > { %v3611_v43 = vpop.f32.mrb[47].mxu0 }
 0x353   : > { %v4363_v17 = vpop.f32.mrb[20].mxu1 }
 0x354   : > { %v4364_v39 = vpop.f32.mrb[21].mxu1 }
 0x355   : > { %v4365_v1 = vadd.f32 %v4364_v39, %v4363_v17  ;;  %v4366_v30 = vpop.f32.mrb[22].mxu1  ;;  %v4235_v39 = vunpack.c.h.bf16 %v4254_v5 }
 0x356   : > { %v4367_v23 = vpop.f32.mrb[23].mxu1 }
 0x357   : > { %v4368_v22 = vadd.f32 %v4367_v23, %v4366_v30  ;;  %v3496_v52 = vadd.f32 %v4365_v1, %v6414_v6 }
 0x359   : > { %v3593_v3 = vadd.f32 %v3592_v4, %v3496_v52  ;;  %v3499_v19 = vadd.f32 %v4368_v22, %v6414_v6 }
 0x35b   : > { %v3687_v53 = vadd.f32 %v4222_v59, %v3593_v3  ;;  %v3596_v26 = vadd.f32 %v3595_v10, %v3499_v19  ;;  %v4234_v10 = vunpack.c.l.bf16 %v4254_v5 }
 0x35d   : > { %v3703_v20 = vmax.f32 %v3687_v53, 0.0  ;;  %v3688_v0 = vadd.f32 %v4223_v16, %v3596_v26 }
 0x35f   : > { %3719 = vst [vmem:[%s4857_s17] sm:$0xff] %v3703_v20  ;;  %v3704_v12 = vmax.f32 %v3688_v0, 0.0  ;;  %v4369_v40 = vpop.f32.mrb[24].mxu1 }
 0x360   : > { %v4370_v54 = vpop.f32.mrb[25].mxu1 }
 0x361   : > { %3720 = vst [vmem:[%s4857_s17 + $0x8] sm:$0xff] %v3704_v12  ;;  %v4371_v18 = vadd.f32 %v4370_v54, %v4369_v40  ;;  %v4372_v8 = vpop.f32.mrb[26].mxu1 }
 0x362   : > { %v4373_v27 = vpop.f32.mrb[27].mxu1 }
 0x363   : > { %v3504_v63 = vadd.f32 %v4371_v18, %v6414_v6  ;;  %v4374_v50 = vadd.f32 %v4373_v27, %v4372_v8 }
 0x365   : > { %v3601_v31 = vadd.f32 %v4451_v33, %v3504_v63  ;;  %v3507_v21 = vadd.f32 %v4374_v50, %v6414_v6 }
 0x367   : > { %v3689_v14 = vadd.f32 %v4226_v11, %v3601_v31  ;;  %v3604_v36 = vadd.f32 %v4452_v38, %v3507_v21 }
 0x369   : > { %v3705_v60 = vmax.f32 %v3689_v14, 0.0  ;;  %v3690_v51 = vadd.f32 %v4227_v41, %v3604_v36  ;;  %v4256_v14 = vld [vmem:[%s4852_s15 + $0x28] sm:$0xff]   ;;  %v4255_v36 = vld [vmem:[%s4852_s15 + $0x20] sm:$0xff]  }
 0x36b   : > { %3721 = vst [vmem:[%s4857_s17 + $0x10] sm:$0xff] %v3705_v60  ;;  %v3706_v29 = vmax.f32 %v3690_v51, 0.0  ;;  %v4375_v47 = vpop.f32.mrb[28].mxu1  ;;  %v4242_v51 = vunpack.c.l.bf16 %v4256_v14 }
 0x36c   : > { %v4376_v7 = vpop.f32.mrb[29].mxu1 }
 0x36d   : > { %3722 = vst [vmem:[%s4857_s17 + $0x18] sm:$0xff] %v3706_v29  ;;  %v4377_v57 = vadd.f32 %v4376_v7, %v4375_v47  ;;  %v4378_v24 = vpop.f32.mrb[30].mxu1  ;;  %v4238_v7 = vunpack.c.l.bf16 %v4255_v36 }
 0x36e   : > { %v4379_v2 = vpop.f32.mrb[31].mxu1 }
 0x36f   : > { %v4380_v49 = vadd.f32 %v4379_v2, %v4378_v24  ;;  %v3512_v56 = vadd.f32 %v4377_v57, %v6414_v6  ;;  %v4243_v2 = vunpack.c.h.bf16 %v4256_v14 }
 0x371   : > { %v3609_v28 = vadd.f32 %v3608_v44, %v3512_v56  ;;  %v3515_v58 = vadd.f32 %v4380_v49, %v6414_v6 }
 0x373   : > { %v3691_v34 = vadd.f32 %v4230_v55, %v3609_v28  ;;  %v3612_v46 = vadd.f32 %v3611_v43, %v3515_v58  ;;  %v4239_v28 = vunpack.c.h.bf16 %v4255_v36 }
 0x375   : > { %v3707_v62 = vmax.f32 %v3691_v34, 0.0  ;;  %v3692_v9 = vadd.f32 %v4231_v15, %v3612_v46 }
 0x377   : > { %3723 = vst [vmem:[%s4857_s17 + $0x20] sm:$0xff] %v3707_v62  ;;  %v3708_v42 = vmax.f32 %v3692_v9, 0.0  ;;  %v4381_v48 = vpop.f32.mrb[32].mxu1  ;;  %v4258_v9 = vld [vmem:[%s4852_s15 + $0x38] sm:$0xff]  }
 0x378   : > { %v4382_v25 = vpop.f32.mrb[33].mxu1 }
 0x379   : > { %3724 = vst [vmem:[%s4857_s17 + $0x28] sm:$0xff] %v3708_v42  ;;  %v4383_v45 = vadd.f32 %v4382_v25, %v4381_v48  ;;  %v4384_v33 = vpop.f32.mrb[34].mxu1  ;;  %v4257_v25 = vld [vmem:[%s4852_s15 + $0x30] sm:$0xff]  }
 0x37a   : > { %v4385_v4 = vpop.f32.mrb[35].mxu1 }
 0x37b   : > { %v3520_v38 = vadd.f32 %v4383_v45, %v6414_v6  ;;  %v4386_v44 = vadd.f32 %v4385_v4, %v4384_v33 }
 0x37d   : > { %v3617_v17 = vadd.f32 %v6407_v13, %v3520_v38  ;;  %v3523_v43 = vadd.f32 %v4386_v44, %v6414_v6  ;;  %v4250_v38 = vunpack.c.l.bf16 %v4258_v9 }
 0x37f   : > { %v3693_v61 = vadd.f32 %v4234_v10, %v3617_v17  ;;  %v3620_v1 = vadd.f32 %v6409_v37, %v3523_v43  ;;  %v4246_v43 = vunpack.c.l.bf16 %v4257_v25 }
 0x381   : > { %v3709_v30 = vmax.f32 %v3693_v61, 0.0  ;;  %v3694_v23 = vadd.f32 %v4235_v39, %v3620_v1 }
 0x383   : > { %3725 = vst [vmem:[%s4857_s17 + $0x30] sm:$0xff] %v3709_v30  ;;  %v3710_v22 = vmax.f32 %v3694_v23, 0.0  ;;  %v4387_v52 = vpop.f32.mrb[36].mxu1  ;;  %v4251_v30 = vunpack.c.h.bf16 %v4258_v9 }
 0x384   : > { %v4388_v59 = vpop.f32.mrb[37].mxu1 }
 0x385   : > { %3726 = vst [vmem:[%s4857_s17 + $0x38] sm:$0xff] %v3710_v22  ;;  %v4389_v3 = vadd.f32 %v4388_v59, %v4387_v52  ;;  %v4390_v19 = vpop.f32.mrb[38].mxu1  ;;  %v4247_v59 = vunpack.c.h.bf16 %v4257_v25 }
 0x386   : > { %v4391_v16 = vpop.f32.mrb[39].mxu1 }
 0x387   : > { %v4392_v53 = vadd.f32 %v4391_v16, %v4390_v19  ;;  %v3528_v47 = vadd.f32 %v4389_v3, %v6414_v6 }
 0x389   : > { %v3531_v55 = vadd.f32 %v4392_v53, %v6414_v6 }
 0x38f   : > { %v4393_v26 = vpop.f32.mrb[40].mxu1 }
 0x390   : > { %v4394_v20 = vpop.f32.mrb[41].mxu1 }
 0x391   : > { %v4395_v13 = vadd.f32 %v4394_v20, %v4393_v26  ;;  %v4396_v0 = vpop.f32.mrb[42].mxu1 }
 0x392   : > { %v4397_v12 = vpop.f32.mrb[43].mxu1 }
 0x393   : > { %v4398_v40 = vadd.f32 %v4397_v12, %v4396_v0  ;;  %v3536_v60 = vadd.f32 %v4395_v13, %v6414_v6 }
 0x395   : > { %v3539_v24 = vadd.f32 %v4398_v40, %v6414_v6 }
 0x39b   : > { %v4399_v37 = vpop.f32.mrb[44].mxu1 }
 0x39c   : > { %v4400_v54 = vpop.f32.mrb[45].mxu1 }
 0x39d   : > { %v4401_v35 = vadd.f32 %v4400_v54, %v4399_v37  ;;  %v4402_v18 = vpop.f32.mrb[46].mxu1 }
 0x39e   : > { %v4403_v8 = vpop.f32.mrb[47].mxu1 }
 0x39f   : > { %v4404_v27 = vadd.f32 %v4403_v8, %v4402_v18  ;;  %v3544_v17 = vadd.f32 %v4401_v35, %v6414_v6 }
 0x3a1   : > { %v3547_v52 = vadd.f32 %v4404_v27, %v6414_v6 }
 0x3a7   : > { %v4405_v63 = vpop.f32.mrb[48].mxu1 }
 0x3a8   : > { %v4406_v11 = vpop.f32.mrb[49].mxu1 }
 0x3a9   : > { %v4407_v50 = vadd.f32 %v4406_v11, %v4405_v63  ;;  %v4408_v31 = vpop.f32.mrb[50].mxu1 }
 0x3aa   : > { %v4409_v21 = vpop.f32.mrb[51].mxu1 }
 0x3ab   : > { %v4410_v41 = vadd.f32 %v4409_v21, %v4408_v31  ;;  %v3552_v4 = vadd.f32 %v4407_v50, %v6414_v6 }
 0x3ad   : > { %v3555_v1 = vadd.f32 %v4410_v41, %v6414_v6 }
 0x3af   : > { %v4459_v29 = vpop.f32.mrb[52].mxu1 }
 0x3b0   : > { %v3633_v32 = vadd.f32 %v4459_v29, %v3536_v60  ;;  %v3624_v57 = vpop.f32.mrb[53].mxu1 }
 0x3b1   : > { %v3625_v49 = vadd.f32 %v3624_v57, %v3528_v47  ;;  %v4460_v56 = vpop.f32.mrb[54].mxu1 }
 0x3b2   : > { %v3697_v58 = vadd.f32 %v4242_v51, %v3633_v32  ;;  %v3636_v15 = vadd.f32 %v4460_v56, %v3539_v24  ;;  %v3627_v34 = vpop.f32.mrb[55].mxu1 }
 0x3b3   : > { %v3695_v46 = vadd.f32 %v4238_v7, %v3625_v49  ;;  %v3628_v62 = vadd.f32 %v3627_v34, %v3531_v55 }
 0x3b4   : > { %v3713_v42 = vmax.f32 %v3697_v58, 0.0  ;;  %v3698_v48 = vadd.f32 %v4243_v2, %v3636_v15 }
 0x3b5   : > { %v3711_v5 = vmax.f32 %v3695_v46, 0.0  ;;  %v3696_v45 = vadd.f32 %v4239_v28, %v3628_v62 }
 0x3b6   : > { %3729 = vst [vmem:[%s4857_s17 + $0x50] sm:$0xff] %v3713_v42  ;;  %v3714_v33 = vmax.f32 %v3698_v48, 0.0 }
 0x3b7   : > { %3727 = vst [vmem:[%s4857_s17 + $0x40] sm:$0xff] %v3711_v5  ;;  %v3712_v10 = vmax.f32 %v3696_v45, 0.0  ;;  %v4463_v44 = vpop.f32.mrb[56].mxu1 }
 0x3b8   : > { %3730 = vst [vmem:[%s4857_s17 + $0x58] sm:$0xff] %v3714_v33  ;;  %v3649_v39 = vadd.f32 %v4463_v44, %v3552_v4  ;;  %v3640_v61 = vpop.f32.mrb[57].mxu1 }
 0x3b9   : > { %3728 = vst [vmem:[%s4857_s17 + $0x48] sm:$0xff] %v3712_v10  ;;  %v3641_v23 = vadd.f32 %v3640_v61, %v3544_v17  ;;  %v4464_v22 = vpop.f32.mrb[58].mxu1 }
 0x3ba   : > { %v3701_v3 = vadd.f32 %v4250_v38, %v3649_v39  ;;  %v3652_v19 = vadd.f32 %v4464_v22, %v3555_v1  ;;  %v3643_v16 = vpop.f32.mrb[59].mxu1 }
 0x3bb   : > { %v3699_v53 = vadd.f32 %v4246_v43, %v3641_v23  ;;  %v3644_v26 = vadd.f32 %v3643_v16, %v3547_v52 }
 0x3bc   : > { %v3717_v20 = vmax.f32 %v3701_v3, 0.0  ;;  %v3702_v13 = vadd.f32 %v4251_v30, %v3652_v19 }
 0x3bd   : > { %v3715_v0 = vmax.f32 %v3699_v53, 0.0  ;;  %v3700_v12 = vadd.f32 %v4247_v59, %v3644_v26 }
 0x3be   : > { %3733 = vst [vmem:[%s4857_s17 + $0x70] sm:$0xff] %v3717_v20  ;;  %v3718_v40 = vmax.f32 %v3702_v13, 0.0 }
 0x3bf   : > { %3731 = vst [vmem:[%s4857_s17 + $0x60] sm:$0xff] %v3715_v0  ;;  %v3716_v37 = vmax.f32 %v3700_v12, 0.0 }
 0x3c0   : > { %3734 = vst [vmem:[%s4857_s17 + $0x78] sm:$0xff] %v3718_v40 }
 0x3c1   : > { %3732 = vst [vmem:[%s4857_s17 + $0x68] sm:$0xff] %v3716_v37 }
 0x3c2 PF: > { %s16_s25 = sadd.s32 1, %s4752_s25   ;;  %s6567_s15 = sld [smem:[#allocation3_spill]] }
 0x3c3   : > { %p13_p9 = scmp.ge.s32.totalorder %s16_s25, 6   ;;  %s6568_s21 = smov %s4744_s23 }
 0x3c4   : > { %s6569_s22 = smov %s4748_s24  ;;  %s6570_s23 = smov %s6573_s26 }
 0x3c5   :  { %15 = sbr.rel (!%p13_p9) target bundleno = 3 (0x3), region = 91 }
 0x3c8   : > { %s6571_s24 = smov %s6567_s15 }

</bundles_post_ra>
